<compile_context>
chip_gen: v5e
topology: v5e:2x2
jax: 0.10.0
libtpu: 0.0.40
codegen_flags: <defaults>
</compile_context>

<pallas_src>
import jax
import jax.numpy as jnp
from jax.experimental import pallas as pl
from jax.experimental.pallas import tpu as pltpu

EPS = 1e-12


def _fused_kernel(x1_ref, x2_ref, w_ref, b_ref, o_ref):
    # x1_ref, x2_ref: (tm, H) f32
    # w_ref: (H_in, H_out) bf16/f32 (gamma pre-folded, pre-transposed)
    # b_ref: (1, H_out) f32 (beta contribution pre-folded)
    x = x1_ref[...] + x2_ref[...]                         # residual add

    # One-pass LayerNorm statistics; clamp to guard against cancellation.
    mean = jnp.mean(x, axis=-1, keepdims=True)
    mean_sq = jnp.mean(x * x, axis=-1, keepdims=True)
    var = jnp.maximum(mean_sq - mean * mean, 0.0)
    inv = jax.lax.rsqrt(var + EPS)
    xn = (x - mean) * inv                                 # affine folded into W/b

    # Plain NN matmul on the MXU: (tm, H) @ (H, H_out), f32 accumulation.
    acc = jnp.dot(
        xn.astype(w_ref.dtype),
        w_ref[...],
        preferred_element_type=jnp.float32,
    )
    o_ref[...] = (acc + b_ref[...]).astype(o_ref.dtype)


def fused_add_ln_linear(
    x101, x98, gamma, beta, weight, bias, *, tm=96, matmul_dtype=jnp.bfloat16
):
    """x101, x98: (B, S, H); gamma/beta: (H,); weight: (H_out, H_in); bias: (H_out,).

    matmul_dtype: dtype of the MXU operands (weight + normalized activations).
    Default bf16 (f32 accumulation) — an explicit precision choice; pass
    jnp.float32 for exact PyTorch Linear semantics.
    """
    B, S, H = x101.shape
    H_out, H_in = weight.shape
    assert H_in == H
    M = B * S

    if M % tm != 0 or tm % 8 != 0:
        tm = M  # fallback: single step
    assert M % tm == 0 and tm % 8 == 0

    x1 = x101.reshape(M, H)
    x2 = x98.reshape(M, H)

    # Host-side, one-time parameter prep:
    #   fold LayerNorm affine into the linear and pre-transpose the weight.
    w_t = weight.astype(jnp.float32).T                         # (H_in, H_out)
    w_eff = (gamma.astype(jnp.float32)[:, None] * w_t).astype(matmul_dtype)
    b_eff = (
        beta.astype(jnp.float32) @ w_t + bias.astype(jnp.float32)
    ).reshape(1, H_out)

    itemsize = lambda a: jnp.dtype(a.dtype).itemsize
    bytes_accessed = int(
        x1.size * itemsize(x1)
        + x2.size * itemsize(x2)
        + w_eff.size * itemsize(w_eff)
        + b_eff.size * 4
        + M * H_out * 4  # f32 output
    )
    cost = pl.CostEstimate(
        flops=2 * M * H * H_out,
        transcendentals=M,           # one rsqrt per row
        bytes_accessed=bytes_accessed,
    )

    out = pl.pallas_call(
        _fused_kernel,
        out_shape=jax.ShapeDtypeStruct((M, H_out), jnp.float32),
        grid_spec=pltpu.PrefetchScalarGridSpec(
            num_scalar_prefetch=0,
            grid=(M // tm,),
            in_specs=[
                pl.BlockSpec((tm, H), lambda i: (i, 0)),       # x101 tile
                pl.BlockSpec((tm, H), lambda i: (i, 0)),       # x98 tile
                pl.BlockSpec((H, H_out), lambda i: (0, 0)),    # W_eff (resident, NN)
                pl.BlockSpec((1, H_out), lambda i: (0, 0)),    # b_eff (resident)
            ],
            out_specs=pl.BlockSpec((tm, H_out), lambda i: (i, 0)),
        ),
        compiler_params=pltpu.CompilerParams(
            dimension_semantics=("parallel",),
        ),
        cost_estimate=cost,
    )(x1, x2, w_eff, b_eff)

    return out.reshape(B, S, H_out)


def _reference(x101, x98, gamma, beta, weight, bias):
    x = x101 + x98
    mean = jnp.mean(x, axis=-1, keepdims=True)
    var = jnp.mean((x - mean) ** 2, axis=-1, keepdims=True)
    xn = (x - mean) * jax.lax.rsqrt(var + EPS) * gamma + beta
    return jnp.einsum("bsh,oh->bso", xn, weight) + bias


if __name__ == "__main__":
    B, S, H = 1, 384, 768  # shapes implied by the module

    key = jax.random.PRNGKey(0)
    k1, k2, k3, k4, k5, k6 = jax.random.split(key, 6)

    x101 = jax.random.normal(k1, (B, S, H), dtype=jnp.float32)
    x98 = jax.random.normal(k2, (B, S, H), dtype=jnp.float32)

    # Deterministic synthetic parameters (non-trivial affine to exercise the
    # host-side gamma/beta folding).
    gamma = 1.0 + 0.1 * jax.random.normal(k5, (H,), dtype=jnp.float32)
    beta = 0.05 * jax.random.normal(k6, (H,), dtype=jnp.float32)
    weight = jax.random.normal(k3, (H, H), dtype=jnp.float32) * (1.0 / jnp.sqrt(H))
    bias = jax.random.normal(k4, (H,), dtype=jnp.float32) * 0.01

    ref = _reference(x101, x98, gamma, beta, weight, bias)

    # 1) Default bf16 matmul path (f32 accumulation) — the fast path.
    out_bf = jax.block_until_ready(
        fused_add_ln_linear(x101, x98, gamma, beta, weight, bias)
    )
    assert out_bf.shape == (B, S, H)
    assert jnp.allclose(out_bf, ref, atol=3e-2, rtol=3e-2)

    # 2) f32 operand path: matches the PyTorch module closely.
    out_f32 = jax.block_until_ready(
        fused_add_ln_linear(
            x101, x98, gamma, beta, weight, bias, matmul_dtype=jnp.float32
        )
    )
    assert jnp.allclose(out_f32, ref, atol=2e-3, rtol=2e-3)

    print("KERNEL_OK")
</pallas_src>

<mosaic_0001>
module attributes {stable_mosaic.version = 11 : i64} {
  func.func @_fused_kernel(%arg0: i32, %arg1: memref<96x768xf32, #tpu.memory_space<vmem>>, %arg2: memref<96x768xf32, #tpu.memory_space<vmem>>, %arg3: memref<768x768xbf16, #tpu.memory_space<vmem>>, %arg4: memref<1x768xf32, #tpu.memory_space<vmem>>, %arg5: memref<96x768xf32, #tpu.memory_space<vmem>>) attributes {dimension_semantics = [#tpu.dimension_semantics<parallel>], iteration_bounds = array<i64: 4>, scalar_prefetch = 0 : i64, scratch_operands = 0 : i64, tpu.core_type = #tpu.core_type<tc>, window_params = [{transform_indices = @transform_0, window_bounds = array<i64: 96, 768>}, {transform_indices = @transform_1, window_bounds = array<i64: 96, 768>}, {pipeline_mode = #tpu.pipeline_mode<synchronous>, transform_indices = @transform_2, window_bounds = array<i64: 768, 768>}, {pipeline_mode = #tpu.pipeline_mode<synchronous>, transform_indices = @transform_3, window_bounds = array<i64: 1, 768>}, {transform_indices = @transform_4, window_bounds = array<i64: 96, 768>}]} {
    %c0 = arith.constant 0 : index
    %c0_0 = arith.constant 0 : index
    %0 = vector.load %arg1[%c0, %c0_0] : memref<96x768xf32, #tpu.memory_space<vmem>>, vector<96x768xf32>
    %c0_1 = arith.constant 0 : index
    %c0_2 = arith.constant 0 : index
    %1 = vector.load %arg2[%c0_1, %c0_2] : memref<96x768xf32, #tpu.memory_space<vmem>>, vector<96x768xf32>
    %2 = arith.addf %0, %1 : vector<96x768xf32>
    %cst = arith.constant dense<0.000000e+00> : vector<96xf32>
    %3 = vector.multi_reduction <add>, %2, %cst [1] : vector<96x768xf32> to vector<96xf32>
    %4 = vector.shape_cast %3 : vector<96xf32> to vector<96x1xf32>
    %cst_3 = arith.constant 7.680000e+02 : f32
    %5 = vector.broadcast %cst_3 : f32 to vector<96x1xf32>
    %6 = arith.divf %4, %5 : vector<96x1xf32>
    %7 = arith.mulf %2, %2 : vector<96x768xf32>
    %cst_4 = arith.constant dense<0.000000e+00> : vector<96xf32>
    %8 = vector.multi_reduction <add>, %7, %cst_4 [1] : vector<96x768xf32> to vector<96xf32>
    %9 = vector.shape_cast %8 : vector<96xf32> to vector<96x1xf32>
    %cst_5 = arith.constant 7.680000e+02 : f32
    %10 = vector.broadcast %cst_5 : f32 to vector<96x1xf32>
    %11 = arith.divf %9, %10 : vector<96x1xf32>
    %12 = arith.mulf %6, %6 : vector<96x1xf32>
    %13 = arith.subf %11, %12 : vector<96x1xf32>
    %cst_6 = arith.constant 0.000000e+00 : f32
    %14 = vector.broadcast %cst_6 : f32 to vector<96x1xf32>
    %15 = arith.maximumf %13, %14 : vector<96x1xf32>
    %cst_7 = arith.constant 9.99999996E-13 : f32
    %16 = vector.broadcast %cst_7 : f32 to vector<96x1xf32>
    %17 = arith.addf %15, %16 : vector<96x1xf32>
    %18 = math.rsqrt %17 : vector<96x1xf32>
    %19 = vector.broadcast %6 : vector<96x1xf32> to vector<96x768xf32>
    %20 = arith.subf %2, %19 : vector<96x768xf32>
    %21 = vector.broadcast %18 : vector<96x1xf32> to vector<96x768xf32>
    %22 = arith.mulf %20, %21 : vector<96x768xf32>
    %23 = arith.truncf %22 : vector<96x768xf32> to vector<96x768xbf16>
    %c0_8 = arith.constant 0 : index
    %c0_9 = arith.constant 0 : index
    %24 = vector.load %arg3[%c0_8, %c0_9] : memref<768x768xbf16, #tpu.memory_space<vmem>>, vector<768x768xbf16>
    %cst_10 = arith.constant dense<0.000000e+00> : vector<96x768xf32>
    %25 = tpu.matmul %23, %24, %cst_10 {dimension_numbers = #tpu.dot_dimension_numbers<[1], [0], [0], [1], [0, 0, 1, 1], [], []>} : vector<96x768xbf16>, vector<768x768xbf16>, vector<96x768xf32> -> vector<96x768xf32>
    %c0_11 = arith.constant 0 : index
    %c0_12 = arith.constant 0 : index
    %26 = vector.load %arg4[%c0_11, %c0_12] : memref<1x768xf32, #tpu.memory_space<vmem>>, vector<1x768xf32>
    %27 = vector.broadcast %26 : vector<1x768xf32> to vector<96x768xf32>
    %28 = arith.addf %25, %27 : vector<96x768xf32>
    %c0_13 = arith.constant 0 : index
    %c0_14 = arith.constant 0 : index
    %29 = vector.load %arg5[%c0_13, %c0_14] : memref<96x768xf32, #tpu.memory_space<vmem>>, vector<96x768xf32>
    tpu.vector_store %arg5[%c0_13, %c0_14], %28 {strides = array<i32>} : memref<96x768xf32, #tpu.memory_space<vmem>>, vector<96x768xf32>,
    return
  }
  func.func @transform_0(%arg0: i32) -> (i32, i32) {
    %c0_i32 = arith.constant 0 : i32
    %c0_i32_0 = arith.constant 0 : i32
    return %arg0, %c0_i32 : i32, i32
  }
  func.func @transform_1(%arg0: i32) -> (i32, i32) {
    %c0_i32 = arith.constant 0 : i32
    %c0_i32_0 = arith.constant 0 : i32
    return %arg0, %c0_i32 : i32, i32
  }
  func.func @transform_2(%arg0: i32) -> (i32, i32) {
    %c0_i32 = arith.constant 0 : i32
    %c0_i32_0 = arith.constant 0 : i32
    %c0_i32_1 = arith.constant 0 : i32
    return %c0_i32, %c0_i32_0 : i32, i32
  }
  func.func @transform_3(%arg0: i32) -> (i32, i32) {
    %c0_i32 = arith.constant 0 : i32
    %c0_i32_0 = arith.constant 0 : i32
    %c0_i32_1 = arith.constant 0 : i32
    return %c0_i32, %c0_i32_0 : i32, i32
  }
  func.func @transform_4(%arg0: i32) -> (i32, i32) {
    %c0_i32 = arith.constant 0 : i32
    %c0_i32_0 = arith.constant 0 : i32
    return %arg0, %c0_i32 : i32, i32
  }
}

</mosaic_0001>

<bundles_post_ra>
// kernel: tpu_custom_call.1
= control target key start
LH: loop header
LB: loop body
LE: loop exit
PB: predicated region body
PF: predicated region fallthrough
CT: control target
= control target key end

     0   :  { %s8200_s0 = inlined_call_operand.hbm [shape: f32[384,768], index: 0, kind: input, shape index: {}]   ;;  %s8201_s1 = inlined_call_operand.hbm [shape: f32[384,768], index: 1, kind: input, shape index: {}]   ;;  %s8202_s2 = inlined_call_operand.hbm [shape: bf16[768,768], index: 2, kind: input, shape index: {}]   ;;  %s8203_s3 = inlined_call_operand.hbm [shape: f32[1,768], index: 3, kind: input, shape index: {}]   ;;  %s8204_s4 = inlined_call_operand.hbm [shape: f32[384,768], index: 4, kind: output, shape index: {}]  }
   0x1   :  { %8281 = sst [smem:[#allocation69_spill]] %s8200_s0 }
   0x2   :  { %8282 = sst [smem:[#allocation70_spill]] %s8202_s2 }
   0x3   :  { %8283 = sst [smem:[#allocation71_spill]] %s8203_s3 }
   0x4   :  { %9 = vsyncpa [#allocation3], 0 }
   0x5   :  { %11 = vsyncpa [#allocation3 + $0x1], 0 }
   0x6   :  { %12 = vsyncpa [#allocation6], 0 }
   0x7   :  { %14 = vsyncpa [#allocation6 + $0x1], 0 }
   0x8   :  { %15 = vsyncpa [#allocation9], 0 }
   0x9   :  { %16 = vsyncpa [#allocation4], 0 }
   0xa   :  { %18 = vsyncpa [#allocation4 + $0x1], 0  ;;  %s6284_s15 = smov 0   ;;  %s6286_s16 = smov 0  }
   0xb   :  { %s6288_s17 = smov 0   ;;  %s6290_s18 = smov 0  }
   0xc LB: > { %s6305_s19 = sadd.s32 4294967295, %s6248_s18   ;;  %s4481_s20 = sadd.s32 4294967294, %s6248_s18   ;;  %s6248_s18 = sphi %s6290_s18, %s8430_s18   ;;  %s6244_s17 = sphi %s6288_s17, %s8429_s17   ;;  %s6240_s16 = sphi %s6286_s16, %s8428_s16   ;;  %s6236_s15 = sphi %s6284_s15, %s8427_s15  }
   0xd   : > { %p44_p0 = scmp.ne.s32.totalorder %s6240_s16, %s6236_s15  ;;  %p45_p1 = scmp.eq.s32.totalorder %s6305_s19, 0 }
   0xe   : > { %p136_p2 = scmp.eq.s32.totalorder %s6305_s19, 3  ;;  %p142_p3 = scmp.eq.s32.totalorder %s4481_s20, 3 }
   0xf   : > { %p6314_p4 = por %p45_p1, %p44_p0  ;;  %p4482_p5 = scmp.ge.s32.totalorder %s6248_s18, 1 }
  0x10   : > { %p6319_p6 = por %p142_p3, %p44_p0  ;;  %p149_p7 = scmp.lt.s32.totalorder %s6248_s18, 5 }
  0x11   : > { %s8286_s2 = sld [smem:[#allocation70_spill]]  ;;  %s6250_s27 = smov [#allocation7]  }
  0x12   : > { %p6327_p8 = pnand %p4482_p5, %p149_p7  ;;  %s162_s28 = sshll.u32 %s6250_s27, 4  ;;  %s163_s28 = int_to_ptr.vmem [resolvable:$true] %s162_s28 }
  0x13   : > { %s8288_s3 = sld [smem:[#allocation71_spill]]  ;;  %s6251_s6 = smov 384  }
  0x14   : > { %p5954_p9 = pneg %p6327_p8  ;;  %s6252_s7 = smov 24  }
  0x15   : > { %s6253_s8 = smov [#allocation8]   ;;  %s6339_s10 = sadd.s32 1, %s6248_s18  }
  0x16   : > { %p5955_p10 = pnand %p5954_p9, %p45_p1  ;;  %s177_s9 = sshll.u32 %s6253_s8, 4  ;;  %s178_s9 = int_to_ptr.vmem [resolvable:$true] %s177_s9 }
  0x17   : > { %s160_s25 = sshll.u32 %s8286_s2, 4  ;;  %s28_s11 = ssub.s32 %s6248_s18, %s6339_s10  ;;  %s161_s25 = int_to_ptr.hbm [resolvable:$true] %s160_s25 }
  0x18   : > { %5957 = dma.hbm_to_vmem [thread:$0]  (!%p5955_p10), %s161_s25, 36864, %s163_s28, [#allocation6], %s6251_s6, %s6251_s6, %s6252_s7  }
  0x19   : > { %s175_s5 = sshll.u32 %s8288_s3, 4  ;;  %s31_s12 = sadd.s32 1, %s6244_s17  ;;  %s176_s5 = int_to_ptr.hbm [resolvable:$true] %s175_s5 }
  0x1a   : > { %5960 = dma.hbm_to_vmem [thread:$0]  (!%p5955_p10), %s176_s5, 96, %s178_s9, [#allocation9]  }
  0x1b   : > { %p29_p11 = scmp.eq.s32.totalorder %s28_s11, 0  ;;  %p38_p12 = scmp.ne.s32.totalorder %s6244_s17, %s6240_s16 }
  0x1c   : > { %p39_p13 = scmp.eq.s32.totalorder %s6248_s18, 0  ;;  %p5974_p0 = scmp.lt.s32.totalorder %s6248_s18, 4 }
  0x1d   : > { %s6349_s13 = scalar_select %p29_p11, %s6244_s17, %s31_s12  }
  0x1e   : > { %p40_p3 = por %p39_p13, %p38_p12  ;;  %p6353_p5 = por %p136_p2, %p38_p12 }
  0x1f   : > { %s188_s20 = sand.u32 1, %s6244_s17   ;;  %s8205_s23 = smul.u32 576, %s6248_s18 }
  0x20   : > { %s6359_s24 = smul.u32 576, %s188_s20  ;;  %s8290_s0 = sld [smem:[#allocation69_spill]] }
  0x21   : > { %p6366_p7 = pnand %p5974_p0, %p40_p3  ;;  %s189_s7 = scalar_lea.sflag [#allocation3], %s188_s20 }
  0x22   : > { %s192_s5 = scalar_lea.vmem [#allocation2], %s6359_s24 }
  0x23   : > { %s201_s6 = sshll.u32 %s192_s5, 4  ;;  %p6114_p9 = pneg %p6366_p7  ;;  %s202_s6 = int_to_ptr.vmem [resolvable:$true] %s201_s6 }
  0x26   : > { %s198_s28 = scalar_lea.hbm %s8290_s0, %s8205_s23  ;;  %s6117_s25 = scalar_lea.hbm %s8290_s0, 2304 }
  0x27   : > { %s199_s30 = sshll.u32 %s198_s28, 4  ;;  %s200_s30 = int_to_ptr.hbm [resolvable:$true] %s199_s30 }
  0x28   : > { %s6110_s8 = sshra.s32 %s200_s30, 4  ;;  %s6111_s8 = int_to_ptr.hbm [resolvable:$true] %s6110_s8 }
  0x29   : > { %s6112_s9 = scalar_lea.hbm %s6111_s8, 576  ;;  %p6118_p12 = scmp.lt.s32.totalorder %s6111_s8, %s8290_s0 }
  0x2a   : > { %p6113_p2 = scmp.ne.s32.totalorder %s6111_s8, %s6112_s9  ;;  %p6119_p13 = scmp.lt.s32.totalorder %s6117_s25, %s6112_s9 }
  0x2c   : > { %p6115_p10 = pnand %p6114_p9, %p6113_p2  ;;  %p6120_p0 = por %p6119_p13, %p6118_p12 }
  0x2e   : > { %p6116_p11 = pneg %p6115_p10 }
  0x30   : > { %p6121_p3 = pnand %p6120_p0, %p6116_p11 }
  0x32   : > { %6124 = shalt.err (!%p6121_p3)
}
  0x33   : > { %s6254_s20 = smov 768   ;;  %s6255_s5 = smov 48  }
  0x34   : > { %5964 = dma.hbm_to_vmem [thread:$0]  (!%p6366_p7), %s200_s30, 9216, %s202_s6, %s189_s7, %s6254_s20, %s6254_s20, %s6255_s5  }
  0x35   : > { %s211_s23 = sand.u32 1, %s6248_s18   ;;  %s8292_s11 = smul.u32 576, %s6248_s18 }
  0x36   : > { %s215_s9 = scalar_lea.vmem [#allocation5], %s6359_s24  ;;  %s212_s28 = scalar_lea.sflag [#allocation6], %s211_s23 }
  0x37   : > { %s221_s27 = scalar_lea.hbm %s8201_s1, %s8292_s11  ;;  %s224_s25 = sshll.u32 %s215_s9, 4  ;;  %s225_s25 = int_to_ptr.vmem [resolvable:$true] %s224_s25 }
  0x38   : > { %s222_s8 = sshll.u32 %s221_s27, 4  ;;  %s6147_s7 = scalar_lea.hbm %s8201_s1, 2304  ;;  %s223_s8 = int_to_ptr.hbm [resolvable:$true] %s222_s8 }
  0x39   : > { %s6140_s0 = sshra.s32 %s223_s8, 4  ;;  %s6141_s0 = int_to_ptr.hbm [resolvable:$true] %s6140_s0 }
  0x3a   : > { %s6142_s3 = scalar_lea.hbm %s6141_s0, 576  ;;  %p6148_p12 = scmp.lt.s32.totalorder %s6141_s0, %s8201_s1 }
  0x3b   : > { %p6143_p2 = scmp.ne.s32.totalorder %s6141_s0, %s6142_s3  ;;  %p6149_p13 = scmp.lt.s32.totalorder %s6147_s7, %s6142_s3 }
  0x3d   : > { %p6145_p10 = pnand %p6143_p2, %p6114_p9  ;;  %p6150_p0 = por %p6149_p13, %p6148_p12 }
  0x3f   : > { %p6146_p11 = pneg %p6145_p10 }
  0x41   : > { %p6151_p3 = pnand %p6150_p0, %p6146_p11 }
  0x43   : > { %6154 = shalt.err (!%p6151_p3)
}
  0x44   : > { %5967 = dma.hbm_to_vmem [thread:$0]  (!%p6366_p7), %s223_s8, 9216, %s225_s25, %s212_s28, %s6254_s20, %s6254_s20, %s6255_s5  }
  0x45   : > { %236 = sbr.rel (%p6327_p8) target bundleno = 1259 (0x4eb), region = 36 }
  0x4a   : > { %s6405_s23 = sand.u32 1, %s6240_s16  }
  0x4b   : > { %s6408_s24 = smul.u32 576, %s6405_s23  ;;  %s239_s0 = scalar_lea.sflag [#allocation3], %s6405_s23 }
  0x4d   : > { %s6412_s3 = scalar_lea.vmem [#allocation2], %s6408_s24 }
  0x4e   : > { %6215 = dma.done.wait (%p6314_p4), %s239_s0, 9216  }
  0x4f   : > { %6217 = vsyncadd (%p6314_p4), %s239_s0, 4294958080  ;;  %s248_s26 = sand.u32 1, %s6305_s19   ;;  %s6420_s20 = scalar_lea.vmem [#allocation5], %s6408_s24 }
  0x50   : > { %s249_s29 = scalar_lea.sflag [#allocation6], %s248_s26 }
  0x51   : > { %6219 = dma.done.wait (%p6314_p4), %s249_s29, 9216  }
  0x52   : > { %6221 = vsyncadd (%p6314_p4), %s249_s29, 4294958080 }
  0x53   : > { %6223 = dma.done.wait (%p45_p1), [#allocation6], 36864  }
  0x54   : > { %6225 = vsyncadd (%p45_p1), [#allocation6], 4294930432 }
  0x55   : > { %6227 = dma.done.wait (%p45_p1), [#allocation9], 96  }
  0x56   : > { %6229 = vsyncadd (%p45_p1), [#allocation9], 4294967200  ;;  %v296_v0 = vld [vmem:[%s6412_s3] sm:$0xff]  ;;  %v297_v1 = vld [vmem:[%s6412_s3 + $0x8] sm:$0xff]  ;;  %s7668_s21 = scalar_lea.vmem [#allocation10], %s6408_s24  ;;  %s5979_s5 = smul.u32 576, %s6305_s19 }
  0x57   : > { %v298_v2 = vld [vmem:[%s6412_s3 + $0x10] sm:$0xff]  ;;  %v299_v3 = vld [vmem:[%s6412_s3 + $0x18] sm:$0xff]  ;;  %v300_v4 = vld [vmem:[%s6412_s3 + $0x20] sm:$0xff]  ;;  %s4363_s9 = sshll.u32 %s7668_s21, 4  ;;  %s4350_s19 = scalar_lea.sflag [#allocation4], %s6405_s23  ;;  %s4364_s9 = int_to_ptr.vmem [resolvable:$true] %s4363_s9 }
  0x58   : > { %v301_v5 = vld [vmem:[%s6412_s3 + $0x28] sm:$0xff]  ;;  %v368_v6 = vld [vmem:[%s6420_s20] sm:$0xff]  ;;  %v370_v8 = vld [vmem:[%s6420_s20 + $0x10] sm:$0xff]  ;;  %s4362_s8 = scalar_lea.hbm %s8204_s4, %s5979_s5  ;;  %s6190_s2 = scalar_lea.hbm %s8204_s4, 2304 }
  0x59   : > { %v369_v7 = vld [vmem:[%s6420_s20 + $0x8] sm:$0xff]  ;;  %v371_v9 = vld [vmem:[%s6420_s20 + $0x18] sm:$0xff]  ;;  %v372_v10 = vld [vmem:[%s6420_s20 + $0x20] sm:$0xff]  ;;  %v6446_v12 = vadd.f32 %v368_v6, %v296_v0  ;;  %v6450_v14 = vadd.f32 %v370_v8, %v298_v2  ;;  %s4365_s25 = sshll.u32 %s4362_s8, 4  ;;  %s4366_s25 = int_to_ptr.hbm [resolvable:$true] %s4365_s25 }
  0x5a   : > { %v373_v11 = vld [vmem:[%s6420_s20 + $0x28] sm:$0xff]  ;;  %v6448_v13 = vadd.f32 %v369_v7, %v297_v1  ;;  %v6452_v15 = vadd.f32 %v371_v9, %v299_v3  ;;  %v6454_v16 = vadd.f32 %v372_v10, %v300_v4  ;;  %v308_v18 = vld [vmem:[%s6412_s3 + $0x60] sm:$0xff]  ;;  %v310_v20 = vld [vmem:[%s6412_s3 + $0x70] sm:$0xff]  ;;  %s6184_s28 = sshra.s32 %s4366_s25, 4  ;;  %s6185_s28 = int_to_ptr.hbm [resolvable:$true] %s6184_s28 }
  0x5b   : > { %v6456_v17 = vadd.f32 %v373_v11, %v301_v5  ;;  %v309_v19 = vld [vmem:[%s6412_s3 + $0x68] sm:$0xff]  ;;  %v311_v22 = vld [vmem:[%s6412_s3 + $0x78] sm:$0xff]  ;;  %v312_v23 = vld [vmem:[%s6412_s3 + $0x80] sm:$0xff]  ;;  %v615_v25 = vmul.f32 %v6446_v12, %v6446_v12  ;;  %v617_v30 = vmul.f32 %v6450_v14, %v6450_v14  ;;  %s6186_s30 = scalar_lea.hbm %s6185_s28, 576  ;;  %p6191_p7 = scmp.lt.s32.totalorder %s6185_s28, %s8204_s4 }
  0x5c   : > { %8293 = vst [vmem:[#allocation16_spill] sm:$0xff] %v6454_v16  ;;  %v512_v21 = vadd.f32 %v6448_v13, %v6446_v12  ;;  %v313_v24 = vld [vmem:[%s6412_s3 + $0x88] sm:$0xff]  ;;  %v616_v26 = vmul.f32 %v6448_v13, %v6448_v13  ;;  %v380_v27 = vld [vmem:[%s6420_s20 + $0x60] sm:$0xff]  ;;  %v382_v29 = vld [vmem:[%s6420_s20 + $0x70] sm:$0xff]  ;;  %v618_v31 = vmul.f32 %v6452_v15, %v6452_v15  ;;  %v619_v32 = vmul.f32 %v6454_v16, %v6454_v16  ;;  %p6187_p1 = scmp.ne.s32.totalorder %s6185_s28, %s6186_s30  ;;  %p6192_p9 = scmp.lt.s32.totalorder %s6190_s2, %s6186_s30 }
  0x5d   : > { %8294 = vst [vmem:[#allocation17_spill] sm:$0xff] %v6456_v17  ;;  %v381_v28 = vld [vmem:[%s6420_s20 + $0x68] sm:$0xff]  ;;  %v383_v34 = vld [vmem:[%s6420_s20 + $0x78] sm:$0xff]  ;;  %v384_v35 = vld [vmem:[%s6420_s20 + $0x80] sm:$0xff]  ;;  %v6483_v37 = vadd.f32 %v380_v27, %v308_v18  ;;  %v6487_v39 = vadd.f32 %v382_v29, %v310_v20  ;;  %v620_v42 = vmul.f32 %v6456_v17, %v6456_v17 }
  0x5e   : > { %v513_v33 = vadd.f32 %v512_v21, %v6450_v14  ;;  %v385_v36 = vld [vmem:[%s6420_s20 + $0x88] sm:$0xff]  ;;  %v6485_v38 = vadd.f32 %v381_v28, %v309_v19  ;;  %v6489_v40 = vadd.f32 %v383_v34, %v311_v22  ;;  %v6491_v41 = vadd.f32 %v384_v35, %v312_v23  ;;  %v302_v44 = vld [vmem:[%s6412_s3 + $0x30] sm:$0xff]  ;;  %v303_v45 = vld [vmem:[%s6412_s3 + $0x38] sm:$0xff]  ;;  %p6188_p4 = pnand %p6187_p1, %p6353_p5  ;;  %p6193_p2 = por %p6192_p9, %p6191_p7 }
  0x5f   : > { %v687_v43 = vadd.f32 %v616_v26, %v615_v25  ;;  %v304_v46 = vld [vmem:[%s6412_s3 + $0x40] sm:$0xff]  ;;  %v6499_v48 = vadd.f32 %v385_v36, %v313_v24  ;;  %v305_v50 = vld [vmem:[%s6412_s3 + $0x48] sm:$0xff]  ;;  %v306_v51 = vld [vmem:[%s6412_s3 + $0x50] sm:$0xff]  ;;  %v6508_v53 = vmul.f32 %v6483_v37, %v6483_v37  ;;  %v6519_v59 = vmul.f32 %v6487_v39, %v6487_v39 }
  0x60   : > { %8295 = vst [vmem:[#allocation18_spill] sm:$0xff] %v6491_v41  ;;  %v514_v47 = vadd.f32 %v513_v33, %v6452_v15  ;;  %v526_v49 = vadd.f32 %v6485_v38, %v6483_v37  ;;  %v307_v52 = vld [vmem:[%s6412_s3 + $0x58] sm:$0xff]  ;;  %v374_v55 = vld [vmem:[%s6420_s20 + $0x30] sm:$0xff]  ;;  %v376_v57 = vld [vmem:[%s6420_s20 + $0x40] sm:$0xff]  ;;  %v6515_v58 = vmul.f32 %v6485_v38, %v6485_v38  ;;  %v6523_v60 = vmul.f32 %v6489_v40, %v6489_v40  ;;  %p6189_p8 = pneg %p6188_p4 }
  0x61   : > { %8296 = vst [vmem:[#allocation19_spill] sm:$0xff] %v6499_v48  ;;  %v688_v54 = vadd.f32 %v687_v43, %v617_v30  ;;  %v375_v56 = vld [vmem:[%s6420_s20 + $0x38] sm:$0xff]  ;;  %v377_v63 = vld [vmem:[%s6420_s20 + $0x48] sm:$0xff]  ;;  %v378_v0 = vld [vmem:[%s6420_s20 + $0x50] sm:$0xff]  ;;  %v6530_v2 = vadd.f32 %v374_v55, %v302_v44  ;;  %v6534_v5 = vadd.f32 %v376_v57, %v304_v46  ;;  %v6543_v10 = vmul.f32 %v6491_v41, %v6491_v41 }
  0x62   : > { %v515_v61 = vadd.f32 %v514_v47, %v6454_v16  ;;  %v527_v62 = vadd.f32 %v526_v49, %v6487_v39  ;;  %v379_v1 = vld [vmem:[%s6420_s20 + $0x58] sm:$0xff]  ;;  %v6532_v3 = vadd.f32 %v375_v56, %v303_v45  ;;  %v6536_v6 = vadd.f32 %v377_v63, %v305_v50  ;;  %v314_v7 = vld [vmem:[%s6412_s3 + $0x90] sm:$0xff]  ;;  %v316_v9 = vld [vmem:[%s6412_s3 + $0xa0] sm:$0xff]  ;;  %p6194_p10 = pnand %p6193_p2, %p6189_p8 }
  0x63   : > { %v689_v4 = vadd.f32 %v688_v54, %v618_v31  ;;  %v315_v8 = vld [vmem:[%s6412_s3 + $0x98] sm:$0xff]  ;;  %v6547_v19 = vadd.f32 %v378_v0, %v306_v51  ;;  %v317_v21 = vld [vmem:[%s6412_s3 + $0xa8] sm:$0xff]  ;;  %v318_v22 = vld [vmem:[%s6412_s3 + $0xb0] sm:$0xff]  ;;  %v6554_v25 = vadd.f32 %v379_v1, %v307_v52  ;;  %v621_v29 = vmul.f32 %v6530_v2, %v6530_v2 }
  0x64   : > { %v516_v11 = vadd.f32 %v515_v61, %v6456_v17  ;;  %v528_v18 = vadd.f32 %v527_v62, %v6489_v40  ;;  %v519_v20 = vadd.f32 %v6532_v3, %v6530_v2  ;;  %v319_v23 = vld [vmem:[%s6412_s3 + $0xb8] sm:$0xff]  ;;  %v386_v26 = vld [vmem:[%s6420_s20 + $0x90] sm:$0xff]  ;;  %v388_v28 = vld [vmem:[%s6420_s20 + $0xa0] sm:$0xff]  ;;  %v622_v30 = vmul.f32 %v6532_v3, %v6532_v3 }
  0x65   : > { %8297 = vst [vmem:[#allocation20_spill] sm:$0xff] %v6547_v19  ;;  %v690_v24 = vadd.f32 %v689_v4, %v619_v32  ;;  %v387_v27 = vld [vmem:[%s6420_s20 + $0x98] sm:$0xff]  ;;  %v389_v32 = vld [vmem:[%s6420_s20 + $0xa8] sm:$0xff]  ;;  %v390_v34 = vld [vmem:[%s6420_s20 + $0xb0] sm:$0xff]  ;;  %v6568_v36 = vadd.f32 %v386_v26, %v314_v7  ;;  %v6572_v45 = vadd.f32 %v388_v28, %v316_v9  ;;  %v623_v47 = vmul.f32 %v6534_v5, %v6534_v5 }
  0x66   : > { %8298 = vst [vmem:[#allocation21_spill] sm:$0xff] %v6554_v25  ;;  %517 = vadd.xlane.f32.xlu0 %v516_v11  ;;  %v529_v31 = vadd.f32 %v528_v18, %v6491_v41  ;;  %v520_v33 = vadd.f32 %v519_v20, %v6534_v5  ;;  %v391_v35 = vld [vmem:[%s6420_s20 + $0xb8] sm:$0xff]  ;;  %v6570_v43 = vadd.f32 %v387_v27, %v315_v8  ;;  %v320_v49 = vld [vmem:[%s6412_s3 + $0xc0] sm:$0xff]  ;;  %v321_v54 = vld [vmem:[%s6412_s3 + $0xc8] sm:$0xff] }
  0x67   : > { %v691_v44 = vadd.f32 %v690_v24, %v620_v42  ;;  %v6574_v46 = vadd.f32 %v389_v32, %v317_v21  ;;  %v6581_v52 = vadd.f32 %v390_v34, %v318_v22  ;;  %v322_v55 = vld [vmem:[%s6412_s3 + $0xd0] sm:$0xff]  ;;  %v323_v56 = vld [vmem:[%s6412_s3 + $0xd8] sm:$0xff]  ;;  %v6588_v57 = vadd.f32 %v391_v35, %v319_v23  ;;  %v392_v0 = vld [vmem:[%s6420_s20 + $0xc0] sm:$0xff] }
  0x68   : > { %v530_v50 = vadd.f32 %v529_v31, %v6499_v48  ;;  %v521_v51 = vadd.f32 %v520_v33, %v6536_v6  ;;  %v533_v42 = vadd.f32 %v6570_v43, %v6568_v36  ;;  %v624_v61 = vmul.f32 %v6536_v6, %v6536_v6  ;;  %v393_v1 = vld [vmem:[%s6420_s20 + $0xc8] sm:$0xff]  ;;  %v394_v4 = vld [vmem:[%s6420_s20 + $0xd0] sm:$0xff]  ;;  %v324_v18 = vld [vmem:[%s6412_s3 + $0xe0] sm:$0xff] }
  0x69   : > { %8299 = vst [vmem:[#allocation22_spill] sm:$0xff] %v6581_v52  ;;  %692 = vadd.xlane.f32.xlu1 %v691_v44  ;;  %v625_v62 = vmul.f32 %v6547_v19, %v6547_v19  ;;  %v694_v63 = vadd.f32 %v622_v30, %v621_v29  ;;  %v626_v9 = vmul.f32 %v6554_v25, %v6554_v25  ;;  %v395_v20 = vld [vmem:[%s6420_s20 + $0xd8] sm:$0xff]  ;;  %v396_v21 = vld [vmem:[%s6420_s20 + $0xe0] sm:$0xff]  ;;  %v325_v29 = vld [vmem:[%s6412_s3 + $0xe8] sm:$0xff] }
  0x6a   : > { %8300 = vst [vmem:[#allocation23_spill] sm:$0xff] %v6588_v57  ;;  %531 = vadd.xlane.f32.xlu2 %v530_v50  ;;  %v522_v7 = vadd.f32 %v521_v51, %v6547_v19  ;;  %v534_v8 = vadd.f32 %v533_v42, %v6572_v45  ;;  %v701_v11 = vadd.f32 %v6515_v58, %v6508_v53  ;;  %v397_v30 = vld [vmem:[%s6420_s20 + $0xe8] sm:$0xff]  ;;  %v326_v35 = vld [vmem:[%s6412_s3 + $0xf0] sm:$0xff]  ;;  %v327_v44 = vld [vmem:[%s6412_s3 + $0xf8] sm:$0xff] }
  0x6b   : > { %v695_v22 = vadd.f32 %v694_v63, %v623_v47  ;;  %v6606_v23 = vadd.f32 %v392_v0, %v320_v49  ;;  %v6608_v24 = vadd.f32 %v393_v1, %v321_v54  ;;  %v6610_v26 = vadd.f32 %v394_v4, %v322_v55  ;;  %v328_v47 = vld [vmem:[%s6412_s3 + $0x100] sm:$0xff]  ;;  %v329_v42 = vld [vmem:[%s6412_s3 + $0x108] sm:$0xff]  ;;  %v330_v54 = vld [vmem:[%s6412_s3 + $0x110] sm:$0xff] }
  0x6c   : > { %v523_v27 = vadd.f32 %v522_v7, %v6554_v25  ;;  %v535_v28 = vadd.f32 %v534_v8, %v6574_v46  ;;  %v632_v53 = vmul.f32 %v6499_v48, %v6499_v48  ;;  %v702_v58 = vadd.f32 %v701_v11, %v6519_v59  ;;  %v398_v55 = vld [vmem:[%s6420_s20 + $0xf0] sm:$0xff]  ;;  %v399_v0 = vld [vmem:[%s6420_s20 + $0xf8] sm:$0xff]  ;;  %v400_v1 = vld [vmem:[%s6420_s20 + $0x100] sm:$0xff] }
  0x6d   : > { %v696_v31 = vadd.f32 %v695_v22, %v624_v61  ;;  %v6619_v33 = vadd.f32 %v395_v20, %v323_v56  ;;  %v6621_v32 = vadd.f32 %v396_v21, %v324_v18  ;;  %v540_v34 = vadd.f32 %v6608_v24, %v6606_v23  ;;  %v401_v4 = vld [vmem:[%s6420_s20 + $0x108] sm:$0xff]  ;;  %v331_v18 = vld [vmem:[%s6412_s3 + $0x118] sm:$0xff]  ;;  %v402_v20 = vld [vmem:[%s6420_s20 + $0x110] sm:$0xff] }
  0x6e   : > { %524 = vadd.xlane.f32.xlu0 %v523_v27  ;;  %v536_v59 = vadd.f32 %v535_v28, %v6581_v52  ;;  %v703_v49 = vadd.f32 %v702_v58, %v6523_v60  ;;  %v633_v50 = vmul.f32 %v6568_v36, %v6568_v36  ;;  %v634_v51 = vmul.f32 %v6570_v43, %v6570_v43  ;;  %v403_v21 = vld [vmem:[%s6420_s20 + $0x118] sm:$0xff]  ;;  %v350_v17 = vld [vmem:[%s6412_s3 + $0x1b0] sm:$0xff] }
  0x6f   : > { %8301 = vst [vmem:[#allocation24_spill] sm:$0xff] %v6621_v32  ;;  %v697_v56 = vadd.f32 %v696_v31, %v625_v62  ;;  %v6637_v61 = vadd.f32 %v397_v30, %v325_v29  ;;  %v541_v63 = vadd.f32 %v540_v34, %v6610_v26  ;;  %v635_v60 = vmul.f32 %v6572_v45, %v6572_v45 }
  0x70   : > { %v537_v7 = vadd.f32 %v536_v59, %v6588_v57  ;;  %v704_v8 = vadd.f32 %v703_v49, %v6543_v10  ;;  %v636_v11 = vmul.f32 %v6574_v46, %v6574_v46  ;;  %v637_v62 = vmul.f32 %v6581_v52, %v6581_v52 }
  0x71   : > { %8302 = vst [vmem:[#allocation25_spill] sm:$0xff] %v6637_v61  ;;  %v698_v22 = vadd.f32 %v697_v56, %v626_v9  ;;  %v542_v27 = vadd.f32 %v541_v63, %v6619_v33  ;;  %v708_v28 = vadd.f32 %v634_v51, %v633_v50  ;;  %v6655_v58 = vadd.f32 %v398_v55, %v326_v35  ;;  %v332_v55 = vld [vmem:[%s6412_s3 + $0x120] sm:$0xff]  ;;  %v333_v56 = vld [vmem:[%s6412_s3 + $0x128] sm:$0xff]  ;;  %v334_v63 = vld [vmem:[%s6412_s3 + $0x130] sm:$0xff] }
  0x72   : > { %538 = vadd.xlane.f32.xlu2 %v537_v7  ;;  %v705_v29 = vadd.f32 %v704_v8, %v632_v53  ;;  %v6657_v30 = vadd.f32 %v399_v0, %v327_v44  ;;  %v6659_v10 = vadd.f32 %v400_v1, %v328_v47  ;;  %v6661_v31 = vadd.f32 %v401_v4, %v329_v42  ;;  %v335_v7 = vld [vmem:[%s6412_s3 + $0x138] sm:$0xff]  ;;  %v404_v8 = vld [vmem:[%s6420_s20 + $0x120] sm:$0xff] }
  0x73   : > { %699 = vadd.xlane.f32.xlu1 %v698_v22  ;;  %v543_v34 = vadd.f32 %v542_v27, %v6621_v32  ;;  %v709_v9 = vadd.f32 %v708_v28, %v635_v60  ;;  %v6664_v59 = vadd.f32 %v402_v20, %v330_v54  ;;  %v6666_v49 = vadd.f32 %v403_v21, %v331_v18  ;;  %v336_v27 = vld [vmem:[%s6412_s3 + $0x140] sm:$0xff]  ;;  %v406_v28 = vld [vmem:[%s6420_s20 + $0x130] sm:$0xff] }
  0x74   : > { %v547_v53 = vadd.f32 %v6657_v30, %v6655_v58  ;;  %v645_v35 = vmul.f32 %v6655_v58, %v6655_v58  ;;  %v646_v44 = vmul.f32 %v6657_v30, %v6657_v30  ;;  %v647_v47 = vmul.f32 %v6659_v10, %v6659_v10 }
  0x75   : > { %8303 = vst [vmem:[#allocation26_spill] sm:$0xff] %v6664_v59  ;;  %v544_v50 = vadd.f32 %v543_v34, %v6637_v61  ;;  %v638_v51 = vmul.f32 %v6588_v57, %v6588_v57  ;;  %v710_v42 = vadd.f32 %v709_v9, %v636_v11  ;;  %v648_v54 = vmul.f32 %v6661_v31, %v6661_v31  ;;  %v405_v11 = vld [vmem:[%s6420_s20 + $0x128] sm:$0xff] }
  0x76   : > { %8304 = vst [vmem:[#allocation27_spill] sm:$0xff] %v6666_v49  ;;  %706 = vadd.xlane.f32.xlu0 %v705_v29  ;;  %v548_v60 = vadd.f32 %v547_v53, %v6659_v10  ;;  %v649_v0 = vmul.f32 %v6664_v59, %v6664_v59  ;;  %v722_v1 = vadd.f32 %v646_v44, %v645_v35  ;;  %v407_v29 = vld [vmem:[%s6420_s20 + $0x138] sm:$0xff]  ;;  %v337_v35 = vld [vmem:[%s6412_s3 + $0x148] sm:$0xff]  ;;  %v408_v44 = vld [vmem:[%s6420_s20 + $0x140] sm:$0xff] }
  0x77   : > { %v639_v4 = vmul.f32 %v6606_v23, %v6606_v23  ;;  %v711_v18 = vadd.f32 %v710_v42, %v637_v62  ;;  %v650_v20 = vmul.f32 %v6666_v49, %v6666_v49  ;;  %v640_v21 = vmul.f32 %v6608_v24, %v6608_v24  ;;  %v409_v42 = vld [vmem:[%s6420_s20 + $0x148] sm:$0xff] }
  0x78   : > { %v641_v22 = vmul.f32 %v6610_v26, %v6610_v26  ;;  %v549_v34 = vadd.f32 %v548_v60, %v6661_v31  ;;  %v723_v9 = vadd.f32 %v722_v1, %v647_v47  ;;  %v642_v53 = vmul.f32 %v6619_v33, %v6619_v33 }
  0x79   : > { %v643_v62 = vmul.f32 %v6621_v32, %v6621_v32  ;;  %v712_v57 = vadd.f32 %v711_v18, %v638_v51  ;;  %v715_v48 = vadd.f32 %v640_v21, %v639_v4  ;;  %v6709_v52 = vadd.f32 %v404_v8, %v332_v55 }
  0x7a   : > { %v6711_v41 = vadd.f32 %v405_v11, %v333_v56  ;;  %545 = vadd.xlane.f32.xlu2 %v544_v50  ;;  %v550_v47 = vadd.f32 %v549_v34, %v6664_v59  ;;  %v724_v60 = vadd.f32 %v723_v9, %v648_v54  ;;  %v6714_v1 = vadd.f32 %v406_v28, %v334_v63  ;;  %v338_v56 = vld [vmem:[%s6412_s3 + $0x150] sm:$0xff]  ;;  %v341_v9 = vld [vmem:[%s6412_s3 + $0x168] sm:$0xff]  ;;  %v420_v59 = vld [vmem:[%s6420_s20 + $0x1a0] sm:$0xff] }
  0x7b   : > { %8305 = vst [vmem:[#allocation28_spill] sm:$0xff] %v6709_v52  ;;  %v6716_v32 = vadd.f32 %v407_v29, %v335_v7  ;;  %713 = vadd.xlane.f32.xlu1 %v712_v57  ;;  %v716_v25 = vadd.f32 %v715_v48, %v641_v22  ;;  %v6718_v51 = vadd.f32 %v408_v44, %v336_v27  ;;  %v339_v57 = vld [vmem:[%s6412_s3 + $0x158] sm:$0xff]  ;;  %v410_v63 = vld [vmem:[%s6420_s20 + $0x150] sm:$0xff]  ;;  %v340_v22 = vld [vmem:[%s6412_s3 + $0x160] sm:$0xff] }
  0x7c   : > { %8306 = vst [vmem:[#allocation29_spill] sm:$0xff] %v6711_v41  ;;  %v6720_v55 = vadd.f32 %v409_v42, %v337_v35  ;;  %v554_v50 = vadd.f32 %v6711_v41, %v6709_v52  ;;  %v551_v4 = vadd.f32 %v550_v47, %v6666_v49  ;;  %v725_v8 = vadd.f32 %v724_v60, %v649_v0  ;;  %v411_v7 = vld [vmem:[%s6420_s20 + $0x158] sm:$0xff]  ;;  %v412_v27 = vld [vmem:[%s6420_s20 + $0x160] sm:$0xff]  ;;  %v413_v35 = vld [vmem:[%s6420_s20 + $0x168] sm:$0xff] }
  0x7d   : > { %8307 = vst [vmem:[#allocation30_spill] sm:$0xff] %v6714_v1  ;;  %v651_v54 = vmul.f32 %v6709_v52, %v6709_v52  ;;  %v652_v48 = vmul.f32 %v6711_v41, %v6711_v41  ;;  %v644_v11 = vmul.f32 %v6637_v61, %v6637_v61  ;;  %v717_v18 = vadd.f32 %v716_v25, %v642_v53  ;;  %v342_v53 = vld [vmem:[%s6412_s3 + $0x170] sm:$0xff]  ;;  %v343_v42 = vld [vmem:[%s6412_s3 + $0x178] sm:$0xff]  ;;  %v349_v49 = vld [vmem:[%s6412_s3 + $0x1a8] sm:$0xff] }
  0x7e   : > { %8308 = vst [vmem:[#allocation31_spill] sm:$0xff] %v6716_v32  ;;  %v555_v21 = vadd.f32 %v554_v50, %v6714_v1  ;;  %v653_v0 = vmul.f32 %v6714_v1, %v6714_v1  ;;  %552 = vadd.xlane.f32.xlu0 %v551_v4  ;;  %v726_v28 = vadd.f32 %v725_v8, %v650_v20  ;;  %v414_v8 = vld [vmem:[%s6420_s20 + $0x170] sm:$0xff]  ;;  %v419_v61 = vld [vmem:[%s6420_s20 + $0x198] sm:$0xff] }
  0x7f   : > { %8309 = vst [vmem:[#allocation32_spill] sm:$0xff] %v6718_v51  ;;  %v654_v29 = vmul.f32 %v6716_v32, %v6716_v32  ;;  %v729_v34 = vadd.f32 %v652_v48, %v651_v54  ;;  %v718_v44 = vadd.f32 %v717_v18, %v643_v62  ;;  %v6747_v47 = vadd.f32 %v410_v63, %v338_v56  ;;  %v415_v62 = vld [vmem:[%s6420_s20 + $0x178] sm:$0xff]  ;;  %v344_v48 = vld [vmem:[%s6412_s3 + $0x180] sm:$0xff] }
  0x80   : > { %8310 = vst [vmem:[#allocation33_spill] sm:$0xff] %v6720_v55  ;;  %v556_v25 = vadd.f32 %v555_v21, %v6716_v32  ;;  %v6749_v60 = vadd.f32 %v411_v7, %v339_v57  ;;  %v655_v20 = vmul.f32 %v6718_v51, %v6718_v51  ;;  %v656_v50 = vmul.f32 %v6720_v55, %v6720_v55  ;;  %v345_v7 = vld [vmem:[%s6412_s3 + $0x188] sm:$0xff]  ;;  %v346_v21 = vld [vmem:[%s6412_s3 + $0x190] sm:$0xff] }
  0x81   : > { %v730_v4 = vadd.f32 %v729_v34, %v653_v0  ;;  %v6757_v54 = vadd.f32 %v412_v27, %v340_v22  ;;  %v719_v18 = vadd.f32 %v718_v44, %v644_v11  ;;  %v6761_v57 = vadd.f32 %v413_v35, %v341_v9  ;;  %v416_v0 = vld [vmem:[%s6420_s20 + $0x180] sm:$0xff]  ;;  %v347_v9 = vld [vmem:[%s6412_s3 + $0x198] sm:$0xff]  ;;  %v417_v35 = vld [vmem:[%s6420_s20 + $0x188] sm:$0xff] }
  0x82   : > { %v557_v56 = vadd.f32 %v556_v25, %v6718_v51  ;;  %v561_v63 = vadd.f32 %v6749_v60, %v6747_v47  ;;  %727 = vadd.xlane.f32.xlu2 %v726_v28  ;;  %v657_v11 = vmul.f32 %v6747_v47, %v6747_v47  ;;  %v658_v27 = vmul.f32 %v6749_v60, %v6749_v60  ;;  %v418_v44 = vld [vmem:[%s6420_s20 + $0x190] sm:$0xff]  ;;  %v348_v51 = vld [vmem:[%s6412_s3 + $0x1a0] sm:$0xff] }
  0x83   : > { %8311 = vst [vmem:[#allocation34_spill] sm:$0xff] %v6757_v54  ;;  %v731_v22 = vadd.f32 %v730_v4, %v654_v29  ;;  %v659_v34 = vmul.f32 %v6757_v54, %v6757_v54  ;;  %720 = vadd.xlane.f32.xlu1 %v719_v18  ;;  %v6778_v29 = vadd.f32 %v414_v8, %v342_v53  ;;  %v351_v53 = vld [vmem:[%s6412_s3 + $0x1b8] sm:$0xff] }
  0x84   : > { %8312 = vst [vmem:[#allocation35_spill] sm:$0xff] %v6761_v57  ;;  %v558_v28 = vadd.f32 %v557_v56, %v6720_v55  ;;  %v6780_v25 = vadd.f32 %v415_v62, %v343_v42  ;;  %v562_v4 = vadd.f32 %v561_v63, %v6757_v54  ;;  %v660_v18 = vmul.f32 %v6761_v57, %v6761_v57  ;;  %v422_v42 = vld [vmem:[%s6420_s20 + $0x1b0] sm:$0xff]  ;;  %v423_v8 = vld [vmem:[%s6420_s20 + $0x1b8] sm:$0xff]  ;;  %v421_v55 = vld [vmem:[%s6420_s20 + $0x1a8] sm:$0xff] }
  0x85   : > { %8313 = vst [vmem:[#allocation36_spill] sm:$0xff] %v6778_v29  ;;  %v732_v19 = vadd.f32 %v731_v22, %v655_v20  ;;  %v736_v16 = vadd.f32 %v658_v27, %v657_v11  ;;  %v6790_v56 = vadd.f32 %v416_v0, %v344_v48  ;;  %v661_v63 = vmul.f32 %v6778_v29, %v6778_v29  ;;  %v352_v22 = vld [vmem:[%s6412_s3 + $0x1c0] sm:$0xff]  ;;  %v425_v54 = vld [vmem:[%s6420_s20 + $0x1c8] sm:$0xff] }
  0x86   : > { %8314 = vst [vmem:[#allocation37_spill] sm:$0xff] %v6780_v25  ;;  %v563_v62 = vadd.f32 %v562_v4, %v6761_v57  ;;  %v6799_v32 = vadd.f32 %v417_v35, %v345_v7  ;;  %v6801_v20 = vadd.f32 %v418_v44, %v346_v21  ;;  %v424_v11 = vld [vmem:[%s6420_s20 + $0x1c0] sm:$0xff]  ;;  %559 = vadd.xlane.f32.xlu0 %v558_v28  ;;  %v353_v57 = vld [vmem:[%s6412_s3 + $0x1c8] sm:$0xff]  ;;  %v354_v35 = vld [vmem:[%s6412_s3 + $0x1d0] sm:$0xff] }
  0x87   : > { %8315 = vst [vmem:[#allocation38_spill] sm:$0xff] %v6790_v56  ;;  %v733_v48 = vadd.f32 %v732_v19, %v656_v50  ;;  %v662_v0 = vmul.f32 %v6780_v25, %v6780_v25  ;;  %v737_v27 = vadd.f32 %v736_v16, %v659_v34  ;;  %v6807_v4 = vadd.f32 %v419_v61, %v347_v9  ;;  %v355_v16 = vld [vmem:[%s6412_s3 + $0x1d8] sm:$0xff]  ;;  %v426_v61 = vld [vmem:[%s6420_s20 + $0x1d0] sm:$0xff] }
  0x88   : > { %8316 = vst [vmem:[#allocation39_spill] sm:$0xff] %v6799_v32  ;;  %v564_v7 = vadd.f32 %v563_v62, %v6778_v29  ;;  %v568_v21 = vadd.f32 %v6799_v32, %v6790_v56  ;;  %v6815_v44 = vadd.f32 %v422_v42, %v350_v17  ;;  %v6817_v28 = vadd.f32 %v423_v8, %v351_v53  ;;  %v427_v34 = vld [vmem:[%s6420_s20 + $0x1d8] sm:$0xff]  ;;  %v356_v42 = vld [vmem:[%s6412_s3 + $0x1e0] sm:$0xff] }
  0x89   : > { %8317 = vst [vmem:[#allocation40_spill] sm:$0xff] %v6801_v20  ;;  %v738_v19 = vadd.f32 %v737_v27, %v660_v18  ;;  %v6819_v50 = vadd.f32 %v420_v59, %v348_v51  ;;  %v6821_v1 = vadd.f32 %v421_v55, %v349_v49  ;;  %v6826_v9 = vadd.f32 %v424_v11, %v352_v22  ;;  %v428_v27 = vld [vmem:[%s6420_s20 + $0x1e0] sm:$0xff] }
  0x8a   : > { %8318 = vst [vmem:[#allocation41_spill] sm:$0xff] %v6807_v4  ;;  %v565_v62 = vadd.f32 %v564_v7, %v6780_v25  ;;  %v569_v29 = vadd.f32 %v568_v21, %v6801_v20  ;;  %v6830_v41 = vadd.f32 %v425_v54, %v353_v57  ;;  %v575_v17 = vadd.f32 %v6817_v28, %v6815_v44 }
  0x8b   : > { %8319 = vst [vmem:[#allocation42_spill] sm:$0xff] %v6815_v44  ;;  %734 = vadd.xlane.f32.xlu2 %v733_v48  ;;  %v739_v59 = vadd.f32 %v738_v19, %v661_v63  ;;  %v663_v49 = vmul.f32 %v6790_v56, %v6790_v56  ;;  %v664_v51 = vmul.f32 %v6799_v32, %v6799_v32  ;;  %v358_v48 = vld [vmem:[%s6412_s3 + $0x1f0] sm:$0xff]  ;;  %v359_v19 = vld [vmem:[%s6412_s3 + $0x1f8] sm:$0xff] }
  0x8c   : > { %8320 = vst [vmem:[#allocation43_spill] sm:$0xff] %v6817_v28  ;;  %v665_v55 = vmul.f32 %v6801_v20, %v6801_v20  ;;  %566 = vadd.xlane.f32.xlu1 %v565_v62  ;;  %v570_v54 = vadd.f32 %v569_v29, %v6807_v4  ;;  %v6841_v57 = vadd.f32 %v426_v61, %v354_v35  ;;  %v357_v29 = vld [vmem:[%s6412_s3 + $0x1e8] sm:$0xff]  ;;  %v430_v61 = vld [vmem:[%s6420_s20 + $0x1f0] sm:$0xff] }
  0x8d   : > { %8321 = vst [vmem:[#allocation44_spill] sm:$0xff] %v6819_v50  ;;  %v6843_v18 = vadd.f32 %v427_v34, %v355_v16  ;;  %v576_v53 = vadd.f32 %v575_v17, %v6826_v9  ;;  %v740_v8 = vadd.f32 %v739_v59, %v662_v0  ;;  %v666_v63 = vmul.f32 %v6807_v4, %v6807_v4  ;;  %v429_v16 = vld [vmem:[%s6420_s20 + $0x1e8] sm:$0xff] }
  0x8e   : > { %8322 = vst [vmem:[#allocation45_spill] sm:$0xff] %v6821_v1  ;;  %v743_v22 = vadd.f32 %v664_v51, %v663_v49  ;;  %v669_v11 = vmul.f32 %v6815_v44, %v6815_v44  ;;  %v571_v7 = vadd.f32 %v570_v54, %v6819_v50  ;;  %v670_v0 = vmul.f32 %v6817_v28, %v6817_v28  ;;  %v431_v49 = vld [vmem:[%s6420_s20 + $0x1f8] sm:$0xff]  ;;  %v362_v51 = vld [vmem:[%s6412_s3 + $0x210] sm:$0xff] }
  0x8f   : > { %8323 = vst [vmem:[#allocation46_spill] sm:$0xff] %v6826_v9  ;;  %v577_v21 = vadd.f32 %v576_v53, %v6830_v41  ;;  %v671_v35 = vmul.f32 %v6826_v9, %v6826_v9  ;;  %741 = vadd.xlane.f32.xlu0 %v740_v8  ;;  %v667_v34 = vmul.f32 %v6819_v50, %v6819_v50  ;;  %v363_v54 = vld [vmem:[%s6412_s3 + $0x218] sm:$0xff]  ;;  %v360_v50 = vld [vmem:[%s6412_s3 + $0x200] sm:$0xff] }
  0x90   : > { %8324 = vst [vmem:[#allocation47_spill] sm:$0xff] %v6830_v41  ;;  %v668_v62 = vmul.f32 %v6821_v1, %v6821_v1  ;;  %v744_v17 = vadd.f32 %v743_v22, %v665_v55  ;;  %v672_v59 = vmul.f32 %v6830_v41, %v6830_v41  ;;  %v572_v53 = vadd.f32 %v571_v7, %v6821_v1  ;;  %v364_v55 = vld [vmem:[%s6412_s3 + $0x220] sm:$0xff]  ;;  %v434_v22 = vld [vmem:[%s6420_s20 + $0x210] sm:$0xff]  ;;  %v435_v41 = vld [vmem:[%s6420_s20 + $0x218] sm:$0xff] }
  0x91   : > { %8325 = vst [vmem:[#allocation48_spill] sm:$0xff] %v6841_v57  ;;  %v578_v8 = vadd.f32 %v577_v21, %v6841_v57  ;;  %v750_v25 = vadd.f32 %v670_v0, %v669_v11  ;;  %v6875_v4 = vadd.f32 %v428_v27, %v356_v42  ;;  %v673_v20 = vmul.f32 %v6841_v57, %v6841_v57  ;;  %v365_v21 = vld [vmem:[%s6412_s3 + $0x228] sm:$0xff]  ;;  %v436_v11 = vld [vmem:[%s6420_s20 + $0x220] sm:$0xff]  ;;  %v366_v57 = vld [vmem:[%s6412_s3 + $0x230] sm:$0xff] }
  0x92   : > { %8326 = vst [vmem:[#allocation49_spill] sm:$0xff] %v6843_v18  ;;  %v745_v9 = vadd.f32 %v744_v17, %v666_v63  ;;  %v6882_v28 = vadd.f32 %v429_v16, %v357_v29  ;;  %v6884_v7 = vadd.f32 %v430_v61, %v358_v48  ;;  %v437_v0 = vld [vmem:[%s6420_s20 + $0x228] sm:$0xff]  ;;  %v674_v27 = vmul.f32 %v6843_v18, %v6843_v18  ;;  %v432_v63 = vld [vmem:[%s6420_s20 + $0x200] sm:$0xff]  ;;  %v438_v29 = vld [vmem:[%s6420_s20 + $0x230] sm:$0xff] }
  0x93   : > { %v579_v42 = vadd.f32 %v578_v8, %v6843_v18  ;;  %v751_v1 = vadd.f32 %v750_v25, %v671_v35  ;;  %v6893_v17 = vadd.f32 %v431_v49, %v359_v19  ;;  %v361_v48 = vld [vmem:[%s6412_s3 + $0x208] sm:$0xff]  ;;  %v6900_v32 = vadd.f32 %v434_v22, %v362_v51  ;;  %v367_v44 = vld [vmem:[%s6412_s3 + $0x238] sm:$0xff] }
  0x94   : > { %8327 = vst [vmem:[#allocation50_spill] sm:$0xff] %v6882_v28  ;;  %v746_v16 = vadd.f32 %v745_v9, %v667_v34  ;;  %v582_v61 = vadd.f32 %v6882_v28, %v6875_v4  ;;  %v6902_v56 = vadd.f32 %v435_v41, %v363_v54  ;;  %573 = vadd.xlane.f32.xlu1 %v572_v53  ;;  %v433_v18 = vld [vmem:[%s6420_s20 + $0x208] sm:$0xff]  ;;  %v439_v25 = vld [vmem:[%s6420_s20 + $0x238] sm:$0xff] }
  0x95   : > { %8328 = vst [vmem:[#allocation51_spill] sm:$0xff] %v6884_v7  ;;  %580 = vadd.xlane.f32.xlu2 %v579_v42  ;;  %v752_v8 = vadd.f32 %v751_v1, %v672_v59  ;;  %v6907_v35 = vadd.f32 %v436_v11, %v364_v55  ;;  %v6909_v19 = vadd.f32 %v437_v0, %v365_v21 }
  0x96   : > { %8329 = vst [vmem:[#allocation52_spill] sm:$0xff] %v6893_v17  ;;  %v747_v49 = vadd.f32 %v746_v16, %v668_v62  ;;  %v6911_v9 = vadd.f32 %v432_v63, %v360_v50  ;;  %v583_v34 = vadd.f32 %v582_v61, %v6884_v7  ;;  %v6914_v52 = vadd.f32 %v438_v29, %v366_v57 }
  0x97   : > { %8330 = vst [vmem:[#allocation53_spill] sm:$0xff] %v6900_v32  ;;  %v753_v51 = vadd.f32 %v752_v8, %v673_v20  ;;  %v589_v41 = vadd.f32 %v6902_v56, %v6900_v32  ;;  %v681_v1 = vmul.f32 %v6900_v32, %v6900_v32  ;;  %v682_v59 = vmul.f32 %v6902_v56, %v6902_v56 }
  0x98   : > { %8331 = vst [vmem:[#allocation54_spill] sm:$0xff] %v6902_v56  ;;  %748 = vadd.xlane.f32.xlu0 %v747_v49  ;;  %v6922_v54 = vadd.f32 %v433_v18, %v361_v48  ;;  %v584_v50 = vadd.f32 %v583_v34, %v6893_v17  ;;  %v6925_v62 = vadd.f32 %v439_v25, %v367_v44 }
  0x99   : > { %8332 = vst [vmem:[#allocation55_spill] sm:$0xff] %v6907_v35  ;;  %v683_v57 = vmul.f32 %v6907_v35, %v6907_v35  ;;  %v754_v20 = vadd.f32 %v753_v51, %v674_v27  ;;  %v590_v53 = vadd.f32 %v589_v41, %v6907_v35  ;;  %v684_v55 = vmul.f32 %v6909_v19, %v6909_v19 }
  0x9a   : > { %8333 = vst [vmem:[#allocation56_spill] sm:$0xff] %v6909_v19  ;;  %v764_v22 = vadd.f32 %v682_v59, %v681_v1  ;;  %v585_v21 = vadd.f32 %v584_v50, %v6911_v9  ;;  %v675_v18 = vmul.f32 %v6875_v4, %v6875_v4  ;;  %v676_v11 = vmul.f32 %v6882_v28, %v6882_v28 }
  0x9b   : > { %8334 = vst [vmem:[#allocation57_spill] sm:$0xff] %v6911_v9  ;;  %v677_v44 = vmul.f32 %v6884_v7, %v6884_v7  ;;  %v591_v0 = vadd.f32 %v590_v53, %v6909_v19  ;;  %v685_v42 = vmul.f32 %v6914_v52, %v6914_v52  ;;  %v678_v29 = vmul.f32 %v6893_v17, %v6893_v17  ;;  %v4663_v7 = vld [vmem:[#allocation7 + $0x168] sm:$0xf0] }
  0x9c   : > { %8335 = vst [vmem:[#allocation58_spill] sm:$0xff] %v6914_v52  ;;  %v765_v27 = vadd.f32 %v764_v22, %v683_v57  ;;  %v586_v63 = vadd.f32 %v585_v21, %v6922_v54  ;;  %v757_v16 = vadd.f32 %v676_v11, %v675_v18  ;;  %755 = vadd.xlane.f32.xlu1 %v754_v20  ;;  %v6256_v20 = vmov 768.0   ;;  %v5691_v22 = vld [vmem:[#allocation7 + $0x164] sm:$0xf0]  ;;  %v4853_v21 = vld [vmem:[#allocation7 + $0x2d0] sm:$0xf] }
  0x9d   : > { %8336 = vst [vmem:[#allocation59_spill] sm:$0xff] %v6922_v54  ;;  %v592_v48 = vadd.f32 %v591_v0, %v6914_v52  ;;  %v686_v8 = vmul.f32 %v6925_v62, %v6925_v62  ;;  %v679_v25 = vmul.f32 %v6911_v9, %v6911_v9  ;;  %v680_v41 = vmul.f32 %v6922_v54, %v6922_v54  ;;  %v5739_v11 = vld [vmem:[#allocation7 + $0x2e4] sm:$0xf0] }
  0x9e   : > { %8337 = vst [vmem:[#allocation60_spill] sm:$0xff] %v6925_v62  ;;  %v766_v61 = vadd.f32 %v765_v27, %v684_v55  ;;  %587 = vadd.xlane.f32.xlu2 %v586_v63  ;;  %v758_v49 = vadd.f32 %v757_v16, %v677_v44  ;;  %6022 = vrcp.f32 %v6256_v20  ;;  %v4661_v55 = vld [vmem:[#allocation7 + $0x150] sm:$0xf]  ;;  %v5787_v0 = vld [vmem:[#allocation7 + $0x464] sm:$0xf0] }
  0x9f   : > { %v593_v34 = vadd.f32 %v592_v48, %v6925_v62  ;;  %v4662_v18 = vor.u32 %v5691_v22, %v4661_v55  ;;  %v5045_v44 = vld [vmem:[#allocation7 + $0x450] sm:$0xf] }
  0xa0   : > { %v767_v51 = vadd.f32 %v766_v61, %v685_v42  ;;  %v759_v1 = vadd.f32 %v758_v49, %v678_v29  ;;  %v4854_v42 = vor.u32 %v5739_v11, %v4853_v21  ;;  %v5046_v27 = vor.u32 %v5787_v0, %v5045_v44  ;;  %v5237_v63 = vld [vmem:[#allocation7 + $0x5d0] sm:$0xf]  ;;  %v5835_v29 = vld [vmem:[#allocation7 + $0x5e4] sm:$0xf0]  ;;  %v4637_v61 = vld [vmem:[#allocation7 + $0x120] sm:$0xf] }
  0xa1   : > { %594 = vadd.xlane.f32.xlu0 %v593_v34  ;;  %2873 = vmatpush.bf16.msra.mxu0 %v4662_v18  ;;  %v5238_v48 = vor.u32 %v5835_v29, %v5237_v63  ;;  %v5733_v34 = vld [vmem:[#allocation7 + $0x2b4] sm:$0xf0]  ;;  %v4613_v22 = vld [vmem:[#allocation7 + $0xf0] sm:$0xf]  ;;  %v5679_v21 = vld [vmem:[#allocation7 + $0x104] sm:$0xf0] }
  0xa2   : > { %v768_v59 = vadd.f32 %v767_v51, %v686_v8  ;;  %v760_v50 = vadd.f32 %v759_v1, %v679_v25  ;;  %2912 = vmatpush.bf16.msra.mxu1 %v4854_v42  ;;  %2951 = vmatpush.bf16.msra.mxu2 %v5046_v27  ;;  %v5685_v8 = vld [vmem:[#allocation7 + $0x134] sm:$0xf0]  ;;  %v4829_v25 = vld [vmem:[#allocation7 + $0x2a0] sm:$0xf]  ;;  %v4805_v18 = vld [vmem:[#allocation7 + $0x270] sm:$0xf]  ;;  %v4614_v11 = vor.u32 %v5679_v21, %v4613_v22 }
  0xa3   : > { %2990 = vmatpush.bf16.msra.mxu3 %v5238_v48  ;;  %v4638_v49 = vor.u32 %v5685_v8, %v4637_v61  ;;  %v5021_v51 = vld [vmem:[#allocation7 + $0x420] sm:$0xf]  ;;  %v4830_v1 = vor.u32 %v5733_v34, %v4829_v25  ;;  %v5727_v44 = vld [vmem:[#allocation7 + $0x284] sm:$0xf0]  ;;  %v4997_v0 = vld [vmem:[#allocation7 + $0x3f0] sm:$0xf] }
  0xa4   : > { %v761_v57 = vadd.f32 %v760_v50, %v680_v41  ;;  %v6953_v53 = vpop.eup %6022  ;;  %v5781_v41 = vld [vmem:[#allocation7 + $0x434] sm:$0xf0]  ;;  %v5213_v50 = vld [vmem:[#allocation7 + $0x5a0] sm:$0xf]  ;;  %v5775_v42 = vld [vmem:[#allocation7 + $0x404] sm:$0xf0]  ;;  %v4806_v27 = vor.u32 %v5727_v44, %v4805_v18 }
  0xa5   : > { %v597_v16 = vmul.f32 768.0, %v6953_v53  ;;  %2874 = vmatpush.bf16.msra.mxu0 %v4638_v49  ;;  %v4998_v63 = vor.u32 %v5775_v42, %v4997_v0  ;;  %v5189_v29 = vld [vmem:[#allocation7 + $0x570] sm:$0xf]  ;;  %v5823_v48 = vld [vmem:[#allocation7 + $0x584] sm:$0xf0]  ;;  %vm601_vm0 = vweird.f32 %v6953_v53 }
  0xa6   : > { %769 = vadd.xlane.f32.xlu2 %v768_v59  ;;  %762 = vadd.xlane.f32.xlu1 %v761_v57  ;;  %v5022_v59 = vor.u32 %v5781_v41, %v5021_v51  ;;  %v5829_v57 = vld [vmem:[#allocation7 + $0x5b4] sm:$0xf0]  ;;  %v5190_v61 = vor.u32 %v5823_v48, %v5189_v29  ;;  %v4589_v8 = vld [vmem:[#allocation7 + $0xc0] sm:$0xf]  ;;  %v5667_v18 = vld [vmem:[#allocation7 + $0xa4] sm:$0xf0] }
  0xa7   : > { %v598_v20 = vsub.f32 1.0, %v597_v16  ;;  %v5214_v55 = vor.u32 %v5829_v57, %v5213_v50  ;;  %2913 = vmatpush.bf16.msra.mxu1 %v4830_v1  ;;  %v5673_v25 = vld [vmem:[#allocation7 + $0xd4] sm:$0xf0]  ;;  %v4781_v49 = vld [vmem:[#allocation7 + $0x240] sm:$0xf] }
  0xa8   : > { %2952 = vmatpush.bf16.msra.mxu2 %v5022_v59  ;;  %v4590_v34 = vor.u32 %v5673_v25, %v4589_v8  ;;  %v5721_v51 = vld [vmem:[#allocation7 + $0x254] sm:$0xf0]  ;;  %v4973_v41 = vld [vmem:[#allocation7 + $0x3c0] sm:$0xf]  ;;  %v5715_v0 = vld [vmem:[#allocation7 + $0x224] sm:$0xf0] }
  0xa9   : > { %2991 = vmatpush.bf16.msra.mxu3 %v5214_v55  ;;  %2875 = vmatpush.bf16.msra.mxu0 %v4614_v11  ;;  %v599_v16 = vmul.f32 %v6953_v53, %v598_v20  ;;  %v5769_v1 = vld [vmem:[#allocation7 + $0x3d4] sm:$0xf0]  ;;  %v4782_v59 = vor.u32 %v5721_v51, %v4781_v49  ;;  %v5165_v57 = vld [vmem:[#allocation7 + $0x540] sm:$0xf]  ;;  %v4565_v20 = vld [vmem:[#allocation7 + $0x90] sm:$0xf] }
  0xaa   : > { %v4974_v50 = vor.u32 %v5769_v1, %v4973_v41  ;;  %v5817_v55 = vld [vmem:[#allocation7 + $0x554] sm:$0xf0]  ;;  %v4757_v11 = vld [vmem:[#allocation7 + $0x210] sm:$0xf]  ;;  %v4566_v44 = vor.u32 %v5667_v18, %v4565_v20  ;;  %v4541_v25 = vld [vmem:[#allocation7 + $0x60] sm:$0xf] }
  0xab   : > { %2914 = vmatpush.bf16.msra.mxu1 %v4806_v27  ;;  %v5166_v22 = vor.u32 %v5817_v55, %v5165_v57  ;;  %v600_v21 = vadd.f32 %v6953_v53, %v599_v16  ;;  %v4949_v42 = vld [vmem:[#allocation7 + $0x390] sm:$0xf]  ;;  %v5763_v27 = vld [vmem:[#allocation7 + $0x3a4] sm:$0xf0]  ;;  %v5661_v49 = vld [vmem:[#allocation7 + $0x74] sm:$0xf0] }
  0xac   : > { %2953 = vmatpush.bf16.msra.mxu2 %v4998_v63  ;;  %v4758_v63 = vor.u32 %v5715_v0, %v4757_v11  ;;  %v4950_v29 = vor.u32 %v5763_v27, %v4949_v42  ;;  %v5141_v48 = vld [vmem:[#allocation7 + $0x510] sm:$0xf]  ;;  %v4542_v51 = vor.u32 %v5661_v49, %v4541_v25  ;;  %v5709_v41 = vld [vmem:[#allocation7 + $0x1f4] sm:$0xf0]  ;;  %v4925_v1 = vld [vmem:[#allocation7 + $0x360] sm:$0xf] }
  0xad   : > { %2992 = vmatpush.bf16.msra.mxu3 %v5190_v61  ;;  %2876 = vmatpush.bf16.msra.mxu0 %v4590_v34  ;;  %v5811_v61 = vld [vmem:[#allocation7 + $0x524] sm:$0xf0]  ;;  %v6960_v16 = vsel %vm601_vm0, %v6953_v53, %v600_v21  ;;  %v4733_v34 = vld [vmem:[#allocation7 + $0x1e0] sm:$0xf]  ;;  %v5805_v20 = vld [vmem:[#allocation7 + $0x4f4] sm:$0xf0] }
  0xae   : > { %v5142_v8 = vor.u32 %v5811_v61, %v5141_v48  ;;  %v4734_v57 = vor.u32 %v5709_v41, %v4733_v34  ;;  %v4517_v21 = vld [vmem:[#allocation7 + $0x30] sm:$0xf]  ;;  %v5655_v11 = vld [vmem:[#allocation7 + $0x44] sm:$0xf0] }
  0xaf   : > { %2915 = vmatpush.bf16.msra.mxu1 %v4782_v59  ;;  %v5757_v59 = vld [vmem:[#allocation7 + $0x374] sm:$0xf0]  ;;  %v4518_v27 = vor.u32 %v5655_v11, %v4517_v21  ;;  %v5751_v48 = vld [vmem:[#allocation7 + $0x344] sm:$0xf0]  ;;  %v5093_v34 = vld [vmem:[#allocation7 + $0x4b0] sm:$0xf] }
  0xb0   : > { %2954 = vmatpush.bf16.msra.mxu2 %v4974_v50  ;;  %v4926_v55 = vor.u32 %v5757_v59, %v4925_v1  ;;  %v4493_v59 = vld [vmem:[#allocation7] sm:$0xf] }
  0xb1   : > { %2993 = vmatpush.bf16.msra.mxu3 %v5166_v22  ;;  %2877 = vmatpush.bf16.msra.mxu0 %v4566_v44  ;;  %v5117_v22 = vld [vmem:[#allocation7 + $0x4e0] sm:$0xf]  ;;  %v4709_v44 = vld [vmem:[#allocation7 + $0x1b0] sm:$0xf] }
  0xb2   : > { %v5118_v53 = vor.u32 %v5805_v20, %v5117_v22  ;;  %v4877_v21 = vld [vmem:[#allocation7 + $0x300] sm:$0xf] }
  0xb3   : > { %2916 = vmatpush.bf16.msra.mxu1 %v4758_v63  ;;  %v5703_v63 = vld [vmem:[#allocation7 + $0x1c4] sm:$0xf0] }
  0xb4   : > { %2955 = vmatpush.bf16.msra.mxu2 %v4950_v29  ;;  %v4901_v29 = vld [vmem:[#allocation7 + $0x330] sm:$0xf]  ;;  %v4710_v25 = vor.u32 %v5703_v63, %v4709_v44  ;;  %v5069_v63 = vld [vmem:[#allocation7 + $0x480] sm:$0xf] }
  0xb5   : > { %2994 = vmatpush.bf16.msra.mxu3 %v5142_v8  ;;  %2878 = vmatpush.bf16.msra.mxu0 %v4542_v51  ;;  %v4902_v49 = vor.u32 %v5751_v48, %v4901_v29  ;;  %v5799_v51 = vld [vmem:[#allocation7 + $0x4c4] sm:$0xf0] }
  0xb6   : > { %v5094_v41 = vor.u32 %v5799_v51, %v5093_v34 }
  0xb7   : > { %2917 = vmatpush.bf16.msra.mxu1 %v4734_v57  ;;  %v4685_v57 = vld [vmem:[#allocation7 + $0x180] sm:$0xf] }
  0xb8   : > { %2956 = vmatpush.bf16.msra.mxu2 %v4926_v55 }
  0xb9   : > { %2995 = vmatpush.bf16.msra.mxu3 %v5118_v53  ;;  %2879 = vmatpush.bf16.msra.mxu0 %v4518_v27  ;;  %v5697_v53 = vld [vmem:[#allocation7 + $0x194] sm:$0xf0] }
  0xba   : > { %v4686_v44 = vor.u32 %v5697_v53, %v4685_v57  ;;  %v5793_v27 = vld [vmem:[#allocation7 + $0x494] sm:$0xf0] }
  0xbb   : > { %2918 = vmatpush.bf16.msra.mxu1 %v4710_v25  ;;  %v5070_v48 = vor.u32 %v5793_v27, %v5069_v63 }
  0xbc   : > { %2957 = vmatpush.bf16.msra.mxu2 %v4902_v49 }
  0xbd   : > { %2996 = vmatpush.bf16.msra.mxu3 %v5094_v41 }
  0xbf   : > { %2919 = vmatpush.bf16.msra.mxu1 %v4686_v44 }
  0xc1   : > { %2997 = vmatpush.bf16.msra.mxu3 %v5070_v48 }
  0xd9   : > { %v518_v50 = vpop.xlane.xlu0 %517 }
  0xda   : > { %v6963_v18 = vmul.f32 %v6960_v16, %v518_v50  ;;  %v5649_v50 = vld [vmem:[#allocation7 + $0x14] sm:$0xf0] }
  0xdb   : > { %v4494_v20 = vor.u32 %v5649_v50, %v4493_v59 }
  0xdc   : > { %v693_v0 = vpop.xlane.xlu1 %692  ;;  %v783_v42 = vmul.f32 %v6963_v18, %v6963_v18 }
  0xdd   : > { %v532_v61 = vpop.xlane.xlu2 %531  ;;  %v771_v8 = vmul.f32 %v693_v0, %v6960_v16  ;;  %v5745_v0 = vld [vmem:[#allocation7 + $0x314] sm:$0xf0]  ;;  %2880 = vmatpush.bf16.msra.mxu0 %v4494_v20 }
  0xdf   : > { %v795_v1 = vsub.f32 %v771_v8, %v783_v42  ;;  %v4878_v42 = vor.u32 %v5745_v0, %v4877_v21  ;;  %v6974_v8 = vmul.f32 %v6960_v16, %v532_v61 }
  0xe1   : > { %v807_v55 = vmax.f32 %v795_v1, 0.0  ;;  %v525_v22 = vpop.xlane.xlu0 %524  ;;  %2958 = vmatpush.bf16.msra.mxu2 %v4878_v42  ;;  %v785_v41 = vmul.f32 %v6974_v8, %v6974_v8 }
  0xe2   : > { %v6969_v11 = vmul.f32 %v6960_v16, %v525_v22 }
  0xe3   : > { %v6971_v29 = vadd.f32 1e-12, %v807_v55 }
  0xe4   : > { %v784_v49 = vmul.f32 %v6969_v11, %v6969_v11 }
  0xe5   : > { %6024 = vrsqrt.f32 %v6971_v29  ;;  %v539_v25 = vpop.xlane.xlu2 %538  ;;  %vm837_vm2 = vweird.f32 %v6971_v29 }
  0xe6   : > { %v700_v34 = vpop.xlane.xlu1 %699  ;;  %v6983_v1 = vmul.f32 %v6960_v16, %v539_v25 }
  0xe7   : > { %v772_v51 = vmul.f32 %v700_v34, %v6960_v16 }
  0xe8   : > { %v786_v44 = vmul.f32 %v6983_v1, %v6983_v1 }
  0xe9   : > { %v796_v61 = vsub.f32 %v772_v51, %v784_v49  ;;  %v707_v59 = vpop.xlane.xlu0 %706 }
  0xea   : > { %v773_v50 = vmul.f32 %v707_v59, %v6960_v16 }
  0xeb   : > { %v6025_v57 = vpop.eup %6024  ;;  %v808_v55 = vmax.f32 %v796_v61, 0.0 }
  0xec   : > { %v832_v22 = vmul.f32 %v6025_v57, %v6971_v29  ;;  %v797_v20 = vsub.f32 %v773_v50, %v785_v41  ;;  %vm838_vm1 = vweird.f32 %v6025_v57 }
  0xed   : > { %v6987_v53 = vadd.f32 1e-12, %v808_v55  ;;  %v546_v21 = vpop.xlane.xlu2 %545  ;;  %vm839_vm3 = vmor %vm837_vm2, %vm838_vm1 }
  0xee   : > { %v833_v0 = vmul.f32 %v6025_v57, %v832_v22  ;;  %v809_v63 = vmax.f32 %v797_v20, 0.0  ;;  %v714_v27 = vpop.xlane.xlu1 %713  ;;  %v6996_v49 = vmul.f32 %v6960_v16, %v546_v21 }
  0xef   : > { %6026 = vrsqrt.f32 %v6987_v53  ;;  %v774_v42 = vmul.f32 %v714_v27, %v6960_v16  ;;  %vm847_vm5 = vweird.f32 %v6987_v53 }
  0xf0   : > { %v834_v48 = vmul.f32 0.5, %v833_v0  ;;  %v6993_v25 = vadd.f32 1e-12, %v809_v63  ;;  %v787_v21 = vmul.f32 %v6996_v49, %v6996_v49 }
  0xf1   : > { %v798_v34 = vsub.f32 %v774_v42, %v786_v44  ;;  %v553_v51 = vpop.xlane.xlu0 %552  ;;  %v951_v44 = vsub.f32 %v6446_v12, %v6963_v18  ;;  %v952_v42 = vsub.f32 %v6448_v13, %v6963_v18 }
  0xf2   : > { %6028 = vrsqrt.f32 %v6993_v25  ;;  %v7000_v41 = vmul.f32 %v6960_v16, %v553_v51  ;;  %v835_v59 = vsub.f32 1.5, %v834_v48  ;;  %v953_v48 = vsub.f32 %v6450_v14, %v6963_v18 }
  0xf3   : > { %v810_v61 = vmax.f32 %v798_v34, 0.0  ;;  %v954_v51 = vsub.f32 %v6452_v15, %v6963_v18  ;;  %vm857_vm10 = vweird.f32 %v6993_v25 }
  0xf4   : > { %v788_v50 = vmul.f32 %v7000_v41, %v7000_v41 }
  0xf5   : > { %v6027_v55 = vpop.eup %6026  ;;  %v7004_v22 = vadd.f32 1e-12, %v810_v61  ;;  %v728_v20 = vpop.xlane.xlu2 %727 }
  0xf6   : > { %v842_v0 = vmul.f32 %v6027_v55, %v6987_v53  ;;  %v776_v63 = vmul.f32 %v728_v20, %v6960_v16  ;;  %v721_v27 = vpop.xlane.xlu1 %720  ;;  %v836_v20 = vmul.f32 %v6025_v57, %v835_v59  ;;  %vm848_vm4 = vweird.f32 %v6027_v55 }
  0xf7   : > { %6030 = vrsqrt.f32 %v7004_v22  ;;  %v775_v34 = vmul.f32 %v721_v27, %v6960_v16  ;;  %v957_v27 = vsub.f32 %v6530_v2, %v6969_v11  ;;  %v959_v2 = vsub.f32 %v6534_v5, %v6969_v11  ;;  %vm849_vm6 = vmor %vm847_vm5, %vm848_vm4 }
  0xf8   : > { %v7022_v61 = vpop.eup %6028  ;;  %v843_v62 = vmul.f32 %v6027_v55, %v842_v0  ;;  %v800_v54 = vsub.f32 %v776_v63, %v788_v50  ;;  %v7039_v63 = vsel %vm839_vm3, %v6025_v57, %v836_v20  ;;  %vm867_vm7 = vweird.f32 %v7004_v22 }
  0xf9   : > { %v852_v13 = vmul.f32 %v7022_v61, %v6993_v25  ;;  %v799_v14 = vsub.f32 %v775_v34, %v787_v21  ;;  %v560_v52 = vpop.xlane.xlu0 %559  ;;  %v958_v21 = vsub.f32 %v6532_v3, %v6969_v11  ;;  %v960_v3 = vsub.f32 %v6536_v6, %v6969_v11 }
  0xfa   : > { %v844_v12 = vmul.f32 0.5, %v843_v62  ;;  %v812_v9 = vmax.f32 %v800_v54, 0.0  ;;  %v7032_v59 = vmul.f32 %v6960_v16, %v560_v52  ;;  %v1023_v53 = vmul.f32 %v951_v44, %v7039_v63 }
  0xfb   : > { %v853_v50 = vmul.f32 %v7022_v61, %v852_v13  ;;  %v811_v0 = vmax.f32 %v799_v14, 0.0  ;;  %v1025_v20 = vmul.f32 %v953_v48, %v7039_v63  ;;  %vm858_vm8 = vweird.f32 %v7022_v61 }
  0xfc   : > { %v845_v34 = vsub.f32 1.5, %v844_v12  ;;  %v7041_v29 = vadd.f32 1e-12, %v812_v9  ;;  %v789_v9 = vmul.f32 %v7032_v59, %v7032_v59  ;;  %v1024_v12 = vmul.f32 %v952_v42, %v7039_v63  ;;  %v5688_v42 = vld [vmem:[#allocation7 + $0x154] sm:$0xf]  ;;  %vm7109_vm11 = vmor %vm857_vm10, %vm858_vm8 }
  0xfd   : > { %v7043_v54 = vpop.eup %6030  ;;  %v854_v52 = vmul.f32 0.5, %v853_v50  ;;  %v7046_v62 = vadd.f32 1e-12, %v811_v0 }
  0xfe   : > { %v735_v13 = vpop.xlane.xlu2 %734  ;;  %v846_v14 = vmul.f32 %v6027_v55, %v845_v34  ;;  %v862_v5 = vmul.f32 %v7043_v54, %v7004_v22  ;;  %6032 = vrsqrt.f32 %v7041_v29  ;;  %vm868_vm9 = vweird.f32 %v7043_v54 }
  0xff   : > { %v567_v57 = vpop.xlane.xlu1 %566  ;;  %6034 = vrsqrt.f32 %v7046_v62  ;;  %v777_v0 = vmul.f32 %v735_v13, %v6960_v16  ;;  %v855_v15 = vsub.f32 1.5, %v854_v52  ;;  %vm869_vm12 = vmor %vm867_vm7, %vm868_vm9  ;;  %v970_v22 = vsub.f32 %v6570_v43, %v6983_v1 }
 0x100   : > { %v7059_v6 = vsel %vm849_vm6, %v6027_v55, %v846_v14  ;;  %v863_v50 = vmul.f32 %v7043_v54, %v862_v5  ;;  %v7064_v34 = vmul.f32 %v6960_v16, %v567_v57  ;;  %v5429_v5 = vld [vmem:[#allocation7 + $0x750] sm:$0xf]  ;;  %v5883_v57 = vld [vmem:[#allocation7 + $0x764] sm:$0xf0]  ;;  %vm887_vm13 = vweird.f32 %v7041_v29 }
 0x101   : > { %v1029_v17 = vmul.f32 %v957_v27, %v7059_v6  ;;  %v1030_v35 = vmul.f32 %v958_v21, %v7059_v6  ;;  %v1031_v44 = vmul.f32 %v959_v2, %v7059_v6  ;;  %v801_v55 = vsub.f32 %v777_v0, %v789_v9 }
 0x102   : > { %v742_v19 = vpop.xlane.xlu0 %741  ;;  %v864_v48 = vmul.f32 0.5, %v863_v50  ;;  %v790_v14 = vmul.f32 %v7064_v34, %v7064_v34  ;;  %v1026_v21 = vmul.f32 %v954_v51, %v7039_v63  ;;  %v1032_v0 = vmul.f32 %v960_v3, %v7059_v6 }
 0x103   : > { %v778_v13 = vmul.f32 %v742_v19, %v6960_v16  ;;  %v7072_v56 = vpack.c.bf16 %v1029_v17, %v1023_v53  ;;  %v7074_v52 = vpack.c.bf16 %v1030_v35, %v1024_v12  ;;  %v7076_v27 = vpack.c.bf16 %v1031_v44, %v1025_v20  ;;  %v5736_v12 = vld [vmem:[#allocation7 + $0x2d4] sm:$0xf]  ;;  %v4855_v20 = vld [vmem:[#allocation7 + $0x2e8] sm:$0xf0] }
 0x104   : > { %v7079_v2 = vpop.eup %6032  ;;  %v865_v28 = vsub.f32 1.5, %v864_v48  ;;  %v813_v50 = vmax.f32 %v801_v55, 0.0  ;;  %v4666_v35 = vor.u32 %v5688_v42, %v4663_v7  ;;  %v5430_v19 = vor.u32 %v5883_v57, %v5429_v5  ;;  %v5621_v42 = vld [vmem:[#allocation7 + $0x8d0] sm:$0xf]  ;;  %v5682_v57 = vld [vmem:[#allocation7 + $0x124] sm:$0xf] }
 0x105   : > { %8338 = vst [vmem:[#allocation61_spill] sm:$0xff] %v7074_v52  ;;  %v802_v9 = vsub.f32 %v778_v13, %v790_v14  ;;  %v7082_v32 = vpop.eup %6034  ;;  %v882_v17 = vmul.f32 %v7079_v2, %v7041_v29  ;;  %2881 = vmatmul.bf16.vlgmr.msra.gmra.mxu0 %v7072_v56  ;;  %2920 = vmatmul.bf16.vlgmr.msra.gmra.mxu1 %v7074_v52  ;;  %v5931_v14 = vld [vmem:[#allocation7 + $0x8e4] sm:$0xf0]  ;;  %vm877_vm14 = vweird.f32 %v7046_v62  ;;  %vm888_vm15 = vweird.f32 %v7079_v2 }
 0x106   : > { %8339 = vst [vmem:[#allocation62_spill] sm:$0xff] %v7076_v27  ;;  %v856_v51 = vmul.f32 %v7022_v61, %v855_v15  ;;  %v872_v3 = vmul.f32 %v7082_v32, %v7046_v62  ;;  %2959 = vmatmul.bf16.vlgmr.msra.gmra.mxu2 %v7076_v27  ;;  %v866_v48 = vmul.f32 %v7043_v54, %v865_v28  ;;  %v7103_v5 = vadd.f32 1e-12, %v813_v50  ;;  %v4639_v27 = vld [vmem:[#allocation7 + $0x138] sm:$0xf0]  ;;  %vm7203_vm1 = vmor %vm887_vm13, %vm888_vm15 }
 0x107   : > { %v574_v53 = vpop.xlane.xlu1 %573  ;;  %v814_v55 = vmax.f32 %v802_v9, 0.0  ;;  %v7096_v7 = vpack.c.bf16 %v1032_v0, %v1026_v21  ;;  %3107 = vmatpush.bf16.msrb.mxu2 %v4666_v35  ;;  %3029 = vmatpush.bf16.msrb.mxu0 %v5430_v19  ;;  %v883_v13 = vmul.f32 %v7079_v2, %v882_v17  ;;  %v965_v28 = vsub.f32 %v6487_v39, %v6974_v8  ;;  %v5405_v35 = vld [vmem:[#allocation7 + $0x720] sm:$0xf]  ;;  %v5877_v19 = vld [vmem:[#allocation7 + $0x734] sm:$0xf0] }
 0x108   : > { %v581_v44 = vpop.xlane.xlu2 %580  ;;  %v7099_v15 = vmul.f32 %v6960_v16, %v574_v53  ;;  %v873_v9 = vmul.f32 %v7082_v32, %v872_v3  ;;  %v4858_v25 = vor.u32 %v5736_v12, %v4855_v20  ;;  %v5622_v39 = vor.u32 %v5931_v14, %v5621_v42 }
 0x109   : > { %8340 = vst [vmem:[#allocation63_spill] sm:$0xff] %v7096_v7  ;;  %v7114_v0 = vadd.f32 1e-12, %v814_v55  ;;  %2998 = vmatmul.bf16.vlgmr.msra.gmra.mxu3 %v7096_v7  ;;  %v7118_v50 = vmul.f32 %v6960_v16, %v581_v44  ;;  %v5730_v55 = vld [vmem:[#allocation7 + $0x2a4] sm:$0xf]  ;;  %v969_v12 = vsub.f32 %v6568_v36, %v6983_v1  ;;  %v7132_v20 = vsel %vm7109_vm11, %v7022_v61, %v856_v51 }
 0x10a   : > { %v791_v3 = vmul.f32 %v7099_v15, %v7099_v15  ;;  %v4831_v7 = vld [vmem:[#allocation7 + $0x2b8] sm:$0xf0]  ;;  %v7135_v44 = vsel %vm869_vm12, %v7043_v54, %v866_v48  ;;  %3146 = vmatpush.bf16.msrb.mxu3 %v4858_v25  ;;  %3068 = vmatpush.bf16.msrb.mxu1 %v5622_v39  ;;  %v4642_v14 = vor.u32 %v5682_v57, %v4639_v27  ;;  %v874_v52 = vmul.f32 0.5, %v873_v9 }
 0x10b   : > { %v749_v17 = vpop.xlane.xlu0 %748  ;;  %6036 = vrsqrt.f32 %v7114_v0  ;;  %v5406_v36 = vor.u32 %v5877_v19, %v5405_v35  ;;  %v792_v61 = vmul.f32 %v7118_v50, %v7118_v50  ;;  %v4834_v51 = vor.u32 %v5730_v55, %v4831_v7  ;;  %v5597_v55 = vld [vmem:[#allocation7 + $0x8a0] sm:$0xf] }
 0x10c   : > { %v779_v53 = vmul.f32 %v749_v17, %v6960_v16  ;;  %6038 = vrsqrt.f32 %v7103_v5  ;;  %v884_v17 = vmul.f32 0.5, %v883_v13  ;;  %3108 = vmatpush.bf16.msrb.mxu2 %v4642_v14  ;;  %v1041_v21 = vmul.f32 %v969_v12, %v7135_v44  ;;  %v5925_v12 = vld [vmem:[#allocation7 + $0x8b4] sm:$0xf0] }
 0x10d   : > { %3030 = vmatpush.bf16.msrb.mxu0 %v5406_v36  ;;  %v1042_v43 = vmul.f32 %v970_v22, %v7135_v44  ;;  %v966_v25 = vsub.f32 %v6489_v40, %v6974_v8  ;;  %v971_v7 = vsub.f32 %v6572_v45, %v6983_v1  ;;  %v972_v57 = vsub.f32 %v6574_v46, %v6983_v1 }
 0x10e   : > { %v803_v42 = vsub.f32 %v779_v53, %v791_v3  ;;  %3147 = vmatpush.bf16.msrb.mxu3 %v4834_v51  ;;  %v8343_v40 = vsub.f32 %v6483_v37, %v6974_v8  ;;  %v8344_v19 = vsub.f32 %v6485_v38, %v6974_v8  ;;  %v885_v45 = vsub.f32 1.5, %v884_v17  ;;  %v5676_v51 = vld [vmem:[#allocation7 + $0xf4] sm:$0xf] }
 0x10f   : > { %v756_v48 = vpop.xlane.xlu1 %755  ;;  %v875_v46 = vsub.f32 1.5, %v874_v52  ;;  %v1037_v38 = vmul.f32 %v965_v28, %v7132_v20  ;;  %vm878_vm0 = vweird.f32 %v7082_v32  ;;  %v5381_v28 = vld [vmem:[#allocation7 + $0x6f0] sm:$0xf]  ;;  %v981_v62 = vsub.f32 %v6655_v58, %v7000_v41 }
 0x110   : > { %v815_v54 = vmax.f32 %v803_v42, 0.0  ;;  %v780_v27 = vmul.f32 %v756_v48, %v6960_v16  ;;  %v1035_v35 = vmul.f32 %v8343_v40, %v7132_v20  ;;  %v1036_v39 = vmul.f32 %v8344_v19, %v7132_v20  ;;  %v5724_v19 = vld [vmem:[#allocation7 + $0x274] sm:$0xf]  ;;  %vm879_vm2 = vmor %vm877_vm14, %vm878_vm0 }
 0x111   : > { %v588_v13 = vpop.xlane.xlu2 %587  ;;  %v7164_v3 = vpop.eup %6036  ;;  %v1044_v48 = vmul.f32 %v972_v57, %v7135_v44  ;;  %v4807_v57 = vld [vmem:[#allocation7 + $0x288] sm:$0xf0]  ;;  %v977_v58 = vsub.f32 %v6610_v26, %v6996_v49  ;;  %v4783_v26 = vld [vmem:[#allocation7 + $0x258] sm:$0xf0]  ;;  %vm907_vm3 = vweird.f32 %v7114_v0  ;;  %vm897_vm5 = vweird.f32 %v7103_v5 }
 0x112   : > { %v7154_v9 = vadd.f32 1e-12, %v815_v54  ;;  %v804_v53 = vsub.f32 %v780_v27, %v792_v61  ;;  %v7167_v22 = vpop.eup %6038  ;;  %v7170_v42 = vmul.f32 %v6960_v16, %v588_v13  ;;  %v7172_v37 = vpack.c.bf16 %v1041_v21, %v1035_v35  ;;  %v4615_v54 = vld [vmem:[#allocation7 + $0x108] sm:$0xf0]  ;;  %v5871_v27 = vld [vmem:[#allocation7 + $0x704] sm:$0xf0] }
 0x113   : > { %v7174_v14 = vpack.c.bf16 %v1042_v43, %v1036_v39  ;;  %v902_v17 = vmul.f32 %v7164_v3, %v7114_v0  ;;  %v1043_v61 = vmul.f32 %v971_v7, %v7135_v44  ;;  %v5598_v21 = vor.u32 %v5925_v12, %v5597_v55  ;;  %v5573_v12 = vld [vmem:[#allocation7 + $0x870] sm:$0xf]  ;;  %v4759_v0 = vld [vmem:[#allocation7 + $0x228] sm:$0xf0] }
 0x114   : > { %8345 = vst [vmem:[#allocation64_spill] sm:$0xff] %v7172_v37  ;;  %v595_v36 = vpop.xlane.xlu0 %594  ;;  %6040 = vrsqrt.f32 %v7154_v9  ;;  %v816_v52 = vmax.f32 %v804_v53, 0.0  ;;  %v886_v13 = vmul.f32 %v7079_v2, %v885_v45  ;;  %v1038_v35 = vmul.f32 %v966_v25, %v7132_v20 }
 0x115   : > { %8346 = vst [vmem:[#allocation65_spill] sm:$0xff] %v7174_v14  ;;  %v7184_v43 = vmul.f32 %v6960_v16, %v595_v36  ;;  %2886 = vmatmul.bf16.gmra.mxu0 %v7172_v37  ;;  %2925 = vmatmul.bf16.gmra.mxu1 %v7174_v14  ;;  %v7191_v7 = vpack.c.bf16 %v1043_v61, %v1037_v38  ;;  %v5919_v36 = vld [vmem:[#allocation7 + $0x884] sm:$0xf0]  ;;  %vm908_vm4 = vweird.f32 %v7164_v3  ;;  %vm898_vm7 = vweird.f32 %v7167_v22 }
 0x116   : > { %v7187_v40 = vadd.f32 1e-12, %v816_v52  ;;  %v876_v39 = vmul.f32 %v7082_v32, %v875_v46  ;;  %v892_v53 = vmul.f32 %v7167_v22, %v7103_v5  ;;  %3069 = vmatpush.bf16.msrb.mxu1 %v5598_v21  ;;  %v4618_v55 = vor.u32 %v5676_v51, %v4615_v54  ;;  %vm7284_vm6 = vmor %vm907_vm3, %vm908_vm4 }
 0x117   : > { %v794_v45 = vmul.f32 %v7184_v43, %v7184_v43  ;;  %v903_v46 = vmul.f32 %v7164_v3, %v902_v17  ;;  %2964 = vmatmul.bf16.gmra.mxu2 %v7191_v7  ;;  %v7209_v38 = vpack.c.bf16 %v1044_v48, %v1038_v35  ;;  %v793_v61 = vmul.f32 %v7170_v42, %v7170_v42  ;;  %vm7302_vm8 = vmor %vm897_vm5, %vm898_vm7 }
 0x118   : > { %v5382_v54 = vor.u32 %v5871_v27, %v5381_v28  ;;  %6042 = vrsqrt.f32 %v7187_v40  ;;  %3109 = vmatpush.bf16.msrb.mxu2 %v4618_v55  ;;  %v4810_v14 = vor.u32 %v5724_v19, %v4807_v57  ;;  %v5574_v17 = vor.u32 %v5919_v36, %v5573_v12  ;;  %v4591_v55 = vld [vmem:[#allocation7 + $0xd8] sm:$0xf0]  ;;  %v5865_v12 = vld [vmem:[#allocation7 + $0x6d4] sm:$0xf0] }
 0x119   : > { %8349 = vst [vmem:[#allocation66_spill] sm:$0xff] %v7209_v38  ;;  %v770_v52 = vpop.xlane.xlu2 %769  ;;  %v763_v51 = vpop.xlane.xlu1 %762  ;;  %3003 = vmatmul.bf16.gmra.mxu3 %v7209_v38  ;;  %v7226_v48 = vsel %vm7203_vm1, %v7079_v2, %v886_v13  ;;  %v975_v27 = vsub.f32 %v6606_v23, %v6996_v49  ;;  %v976_v19 = vsub.f32 %v6608_v24, %v6996_v49  ;;  %vm917_vm9 = vweird.f32 %v7154_v9 }
 0x11a   : > { %v782_v29 = vmul.f32 %v770_v52, %v6960_v16  ;;  %v781_v21 = vmul.f32 %v763_v51, %v6960_v16  ;;  %v7216_v37 = vpop.eup %6040  ;;  %3031 = vmatpush.bf16.msrb.mxu0 %v5382_v54  ;;  %v7229_v16 = vsel %vm879_vm2, %v7082_v32, %v876_v39  ;;  %3148 = vmatpush.bf16.msrb.mxu3 %v4810_v14  ;;  %v904_v32 = vmul.f32 0.5, %v903_v46  ;;  %v5670_v39 = vld [vmem:[#allocation7 + $0xc4] sm:$0xf]  ;;  %v5549_v51 = vld [vmem:[#allocation7 + $0x840] sm:$0xf] }
 0x11b   : > { %3070 = vmatpush.bf16.msrb.mxu1 %v5574_v17  ;;  %v982_v2 = vsub.f32 %v6657_v30, %v7000_v41  ;;  %v893_v13 = vmul.f32 %v7167_v22, %v892_v53  ;;  %v912_v14 = vmul.f32 %v7216_v37, %v7154_v9  ;;  %v1047_v23 = vmul.f32 %v975_v27, %v7229_v16  ;;  %v5357_v30 = vld [vmem:[#allocation7 + $0x6c0] sm:$0xf] }
 0x11c   : > { %v806_v28 = vsub.f32 %v782_v29, %v794_v45  ;;  %v805_v35 = vsub.f32 %v781_v21, %v793_v61  ;;  %v1053_v45 = vmul.f32 %v981_v62, %v7226_v48  ;;  %v978_v24 = vsub.f32 %v6619_v33, %v6996_v49  ;;  %v5718_v61 = vld [vmem:[#allocation7 + $0x244] sm:$0xf]  ;;  %v5913_v29 = vld [vmem:[#allocation7 + $0x854] sm:$0xf0] }
 0x11d   : > { %v1048_v36 = vmul.f32 %v976_v19, %v7229_v16  ;;  %v1054_v25 = vmul.f32 %v982_v2, %v7226_v48  ;;  %v983_v46 = vsub.f32 %v6659_v10, %v7000_v41  ;;  %v984_v52 = vsub.f32 %v6661_v31, %v7000_v41 }
 0x11e   : > { %v818_v57 = vmax.f32 %v806_v28, 0.0  ;;  %v7248_v53 = vpop.eup %6042  ;;  %v817_v54 = vmax.f32 %v805_v35, 0.0  ;;  %v894_v21 = vmul.f32 0.5, %v893_v13  ;;  %v905_v17 = vsub.f32 1.5, %v904_v32 }
 0x11f   : > { %v913_v28 = vmul.f32 %v7216_v37, %v912_v14  ;;  %v1049_v10 = vmul.f32 %v977_v58, %v7229_v16  ;;  %v922_v31 = vmul.f32 %v7248_v53, %v7187_v40  ;;  %v7264_v27 = vpack.c.bf16 %v1053_v45, %v1047_v23  ;;  %v5664_v58 = vld [vmem:[#allocation7 + $0x94] sm:$0xf] }
 0x120   : > { %v7258_v33 = vadd.f32 1e-12, %v818_v57  ;;  %v1055_v62 = vmul.f32 %v983_v46, %v7226_v48  ;;  %v4594_v19 = vor.u32 %v5670_v39, %v4591_v55  ;;  %v7267_v2 = vpack.c.bf16 %v1054_v25, %v1048_v36  ;;  %v4567_v55 = vld [vmem:[#allocation7 + $0xa8] sm:$0xf0]  ;;  %v5712_v46 = vld [vmem:[#allocation7 + $0x214] sm:$0xf] }
 0x121   : > { %v5358_v57 = vor.u32 %v5865_v12, %v5357_v30  ;;  %v4786_v38 = vor.u32 %v5718_v61, %v4783_v26  ;;  %v5550_v35 = vor.u32 %v5913_v29, %v5549_v51  ;;  %v7270_v13 = vadd.f32 1e-12, %v817_v54  ;;  %v5333_v30 = vld [vmem:[#allocation7 + $0x690] sm:$0xf]  ;;  %v5859_v12 = vld [vmem:[#allocation7 + $0x6a4] sm:$0xf0] }
 0x122   : > { %6044 = vrsqrt.f32 %v7258_v33  ;;  %v1050_v32 = vmul.f32 %v978_v24, %v7229_v16  ;;  %v1056_v14 = vmul.f32 %v984_v52, %v7226_v48  ;;  %3110 = vmatpush.bf16.msrb.mxu2 %v4594_v19  ;;  %v895_v23 = vsub.f32 1.5, %v894_v21  ;;  %v5525_v52 = vld [vmem:[#allocation7 + $0x810] sm:$0xf]  ;;  %v5907_v61 = vld [vmem:[#allocation7 + $0x824] sm:$0xf0] }
 0x123   : > { %3032 = vmatpush.bf16.msrb.mxu0 %v5358_v57  ;;  %3149 = vmatpush.bf16.msrb.mxu3 %v4786_v38  ;;  %v923_v45 = vmul.f32 %v7248_v53, %v922_v31  ;;  %v7277_v39 = vpack.c.bf16 %v1055_v62, %v1049_v10  ;;  %v914_v38 = vmul.f32 0.5, %v913_v28  ;;  %v906_v36 = vmul.f32 %v7164_v3, %v905_v17  ;;  %v5658_v26 = vld [vmem:[#allocation7 + $0x64] sm:$0xf]  ;;  %v4543_v51 = vld [vmem:[#allocation7 + $0x78] sm:$0xf0] }
 0x124   : > { %3071 = vmatpush.bf16.msrb.mxu1 %v5550_v35  ;;  %6046 = vrsqrt.f32 %v7270_v13  ;;  %v7292_v25 = vpack.c.bf16 %v1056_v14, %v1050_v32  ;;  %v896_v29 = vmul.f32 %v7167_v22, %v895_v23  ;;  %v5309_v17 = vld [vmem:[#allocation7 + $0x660] sm:$0xf]  ;;  %v5853_v28 = vld [vmem:[#allocation7 + $0x674] sm:$0xf0]  ;;  %v4570_v62 = vor.u32 %v5664_v58, %v4567_v55  ;;  %v5706_v35 = vld [vmem:[#allocation7 + $0x1e4] sm:$0xf] }
 0x125   : > { %2891 = vmatmul.bf16.gmra.mxu0 %v7264_v27  ;;  %2930 = vmatmul.bf16.gmra.mxu1 %v7267_v2  ;;  %8350 = vst [vmem:[#allocation67_spill] sm:$0xff] %v7277_v39  ;;  %v924_v21 = vmul.f32 0.5, %v923_v45  ;;  %v915_v31 = vsub.f32 1.5, %v914_v38  ;;  %v5334_v19 = vor.u32 %v5859_v12, %v5333_v30  ;;  %v4762_v57 = vor.u32 %v5712_v46, %v4759_v0  ;;  %v4735_v32 = vld [vmem:[#allocation7 + $0x1f8] sm:$0xf0] }
 0x126   : > { %8353 = vst [vmem:[#allocation68_spill] sm:$0xff] %v7292_v25  ;;  %v7309_v14 = vsel %vm7284_vm6, %v7164_v3, %v906_v36  ;;  %v993_v5 = vsub.f32 %v6747_v47, %v7064_v34  ;;  %v5526_v23 = vor.u32 %v5907_v61, %v5525_v52  ;;  %vm927_vm10 = vweird.f32 %v7187_v40  ;;  %3111 = vmatpush.bf16.msrb.mxu2 %v4570_v62  ;;  %v8356_v36 = vld [vmem:[#allocation28_spill] sm:$0xff]  ;;  %v5501_v52 = vld [vmem:[#allocation7 + $0x7e0] sm:$0xf] }
 0x127   : > { %2969 = vmatmul.bf16.gmra.mxu2 %v7277_v39  ;;  %3033 = vmatpush.bf16.msrb.mxu0 %v5334_v19  ;;  %v4546_v58 = vor.u32 %v5658_v26, %v4543_v51  ;;  %v5310_v55 = vor.u32 %v5853_v28, %v5309_v17  ;;  %v7322_v3 = vsel %vm7302_vm8, %v7167_v22, %v896_v29  ;;  %v925_v24 = vsub.f32 1.5, %v924_v21  ;;  %v8357_v22 = vld [vmem:[#allocation29_spill] sm:$0xff]  ;;  %v8359_v29 = vld [vmem:[#allocation34_spill] sm:$0xff]  ;;  %v8366_v40 = vld [vmem:[#allocation16_spill] sm:$0xff] }
 0x128   : > { %v7294_v54 = vpop.eup %6044  ;;  %v994_v47 = vsub.f32 %v6749_v60, %v7064_v34  ;;  %3150 = vmatpush.bf16.msrb.mxu3 %v4762_v57  ;;  %3072 = vmatpush.bf16.msrb.mxu1 %v5526_v23  ;;  %v4738_v30 = vor.u32 %v5706_v35, %v4735_v32  ;;  %v916_v12 = vmul.f32 %v7216_v37, %v915_v31  ;;  %vm918_vm11 = vweird.f32 %v7216_v37  ;;  %v8358_v60 = vld [vmem:[#allocation30_spill] sm:$0xff]  ;;  %v4519_v10 = vld [vmem:[#allocation7 + $0x48] sm:$0xf0]  ;;  %v5285_v57 = vld [vmem:[#allocation7 + $0x630] sm:$0xf] }
 0x129   : > { %3008 = vmatmul.bf16.gmra.mxu3 %v7292_v25  ;;  %v942_v45 = vmul.f32 %v7294_v54, %v7258_v33  ;;  %v987_v46 = vsub.f32 %v8356_v36, %v7032_v59  ;;  %v1065_v0 = vmul.f32 %v993_v5, %v7309_v14  ;;  %v988_v61 = vsub.f32 %v8357_v22, %v7032_v59  ;;  %v5901_v17 = vld [vmem:[#allocation7 + $0x7f4] sm:$0xf0]  ;;  %v5652_v28 = vld [vmem:[#allocation7 + $0x34] sm:$0xf]  ;;  %v5847_v35 = vld [vmem:[#allocation7 + $0x644] sm:$0xf0] }
 0x12a   : > { %v7317_v38 = vpop.eup %6046  ;;  %v1066_v26 = vmul.f32 %v994_v47, %v7309_v14  ;;  %v989_v51 = vsub.f32 %v8358_v60, %v7032_v59  ;;  %v995_v21 = vsub.f32 %v8359_v29, %v7064_v34  ;;  %vm928_vm12 = vweird.f32 %v7248_v53  ;;  %3112 = vmatpush.bf16.msrb.mxu2 %v4546_v58  ;;  %v5700_v32 = vld [vmem:[#allocation7 + $0x1b4] sm:$0xf]  ;;  %v8360_v36 = vld [vmem:[#allocation35_spill] sm:$0xff]  ;;  %v5477_v60 = vld [vmem:[#allocation7 + $0x7b0] sm:$0xf] }
 0x12b   : > { %v943_v31 = vmul.f32 %v7294_v54, %v942_v45  ;;  %v932_v62 = vmul.f32 %v7317_v38, %v7270_v13  ;;  %v1059_v19 = vmul.f32 %v987_v46, %v7322_v3  ;;  %3034 = vmatpush.bf16.msrb.mxu0 %v5310_v55  ;;  %v926_v5 = vmul.f32 %v7248_v53, %v925_v24  ;;  %v4711_v45 = vld [vmem:[#allocation7 + $0x1c8] sm:$0xf0]  ;;  %v5895_v29 = vld [vmem:[#allocation7 + $0x7c4] sm:$0xf0]  ;;  %v8361_v55 = vld [vmem:[#allocation31_spill] sm:$0xff] }
 0x12c   : > { %v1060_v23 = vmul.f32 %v988_v61, %v7322_v3  ;;  %v1067_v47 = vmul.f32 %v995_v21, %v7309_v14  ;;  %v996_v22 = vsub.f32 %v8360_v36, %v7064_v34  ;;  %3151 = vmatpush.bf16.msrb.mxu3 %v4738_v30  ;;  %v1061_v58 = vmul.f32 %v989_v51, %v7322_v3  ;;  %vm7357_vm13 = vmor %vm917_vm9, %vm918_vm11  ;;  %v4495_v24 = vld [vmem:[#allocation7 + $0x18] sm:$0xf0] }
 0x12d   : > { %v7348_v25 = vpack.c.bf16 %v1065_v0, %v1059_v19  ;;  %v990_v46 = vsub.f32 %v8361_v55, %v7032_v59  ;;  %v5502_v39 = vor.u32 %v5901_v17, %v5501_v52  ;;  %v4522_v0 = vor.u32 %v5652_v28, %v4519_v10  ;;  %vm7368_vm14 = vmor %vm927_vm10, %vm928_vm12 }
 0x12e   : > { %v7361_v30 = vpack.c.bf16 %v1066_v26, %v1060_v23  ;;  %v1068_v61 = vmul.f32 %v996_v22, %v7309_v14  ;;  %v5286_v21 = vor.u32 %v5847_v35, %v5285_v57  ;;  %v7372_v51 = vmul.f32 0.5, %v943_v31  ;;  %v8368_v57 = vld [vmem:[#allocation20_spill] sm:$0xff] }
 0x12f   : > { %v933_v9 = vmul.f32 %v7317_v38, %v932_v62  ;;  %3073 = vmatpush.bf16.msrb.mxu1 %v5502_v39  ;;  %v4714_v17 = vor.u32 %v5700_v32, %v4711_v45  ;;  %v5478_v26 = vor.u32 %v5895_v29, %v5477_v60  ;;  %v7377_v28 = vpack.c.bf16 %v1067_v47, %v1061_v58  ;;  %v8367_v39 = vld [vmem:[#allocation42_spill] sm:$0xff]  ;;  %v8370_v45 = vld [vmem:[#allocation17_spill] sm:$0xff]  ;;  %v8372_v58 = vld [vmem:[#allocation43_spill] sm:$0xff] }
 0x130   : > { %v1062_v10 = vmul.f32 %v990_v46, %v7322_v3  ;;  %v955_v19 = vsub.f32 %v8366_v40, %v6963_v18  ;;  %v7385_v31 = vsel %vm7357_vm13, %v7216_v37, %v916_v12  ;;  %v1005_v62 = vsub.f32 %v8367_v39, %v7118_v50  ;;  %3113 = vmatpush.bf16.msrb.mxu2 %v4522_v0  ;;  %v8369_v37 = vld [vmem:[#allocation38_spill] sm:$0xff]  ;;  %v5646_v46 = vld [vmem:[#allocation7 + $0x4] sm:$0xf]  ;;  %v8374_v40 = vld [vmem:[#allocation21_spill] sm:$0xff] }
 0x131   : > { %3035 = vmatpush.bf16.msrb.mxu0 %v5286_v21  ;;  %v961_v35 = vsub.f32 %v8368_v57, %v6969_v11  ;;  %v7394_v32 = vsel %vm7368_vm14, %v7248_v53, %v926_v5  ;;  %v999_v12 = vsub.f32 %v8369_v37, %v7099_v15  ;;  %3152 = vmatpush.bf16.msrb.mxu3 %v4714_v17  ;;  %v945_v47 = vsub.f32 1.5, %v7372_v51  ;;  %v8371_v5 = vld [vmem:[#allocation39_spill] sm:$0xff]  ;;  %v8373_v21 = vld [vmem:[#allocation40_spill] sm:$0xff]  ;;  %v5841_v17 = vld [vmem:[#allocation7 + $0x614] sm:$0xf0] }
 0x132   : > { %v7397_v23 = vpack.c.bf16 %v1068_v61, %v1062_v10  ;;  %v7402_v36 = vmul.f32 0.5, %v933_v9  ;;  %v1027_v22 = vmul.f32 %v955_v19, %v7039_v63  ;;  %v956_v60 = vsub.f32 %v8370_v45, %v6963_v18  ;;  %v5261_v61 = vld [vmem:[#allocation7 + $0x600] sm:$0xf]  ;;  %v4687_v10 = vld [vmem:[#allocation7 + $0x198] sm:$0xf0] }
 0x133   : > { %3074 = vmatpush.bf16.msrb.mxu1 %v5478_v26  ;;  %v1071_v53 = vmul.f32 %v999_v12, %v7385_v31  ;;  %v1000_v29 = vsub.f32 %v8371_v5, %v7099_v15  ;;  %v1006_v55 = vsub.f32 %v8372_v58, %v7118_v50  ;;  %v1033_v0 = vmul.f32 %v961_v35, %v7059_v6  ;;  %v5694_v26 = vld [vmem:[#allocation7 + $0x184] sm:$0xf]  ;;  %v5453_v37 = vld [vmem:[#allocation7 + $0x780] sm:$0xf]  ;;  %v8376_v45 = vld [vmem:[#allocation46_spill] sm:$0xff] }
 0x134   : > { %vm937_vm15 = vweird.f32 %v7270_v13  ;;  %vm938_vm0 = vweird.f32 %v7317_v38  ;;  %v1077_v18 = vmul.f32 %v1005_v62, %v7394_v32  ;;  %v1001_v52 = vsub.f32 %v8373_v21, %v7099_v15  ;;  %v5889_v62 = vld [vmem:[#allocation7 + $0x794] sm:$0xf0] }
 0x135   : > { %2896 = vmatmul.bf16.gmra.mxu0 %v7348_v25  ;;  %2935 = vmatmul.bf16.gmra.mxu1 %v7361_v30  ;;  %v4498_v9 = vor.u32 %v5646_v46, %v4495_v24  ;;  %v962_v19 = vsub.f32 %v8374_v40, %v6969_v11  ;;  %vm947_vm1 = vweird.f32 %v7258_v33  ;;  %vm948_vm2 = vweird.f32 %v7294_v54  ;;  %vm939_vm3 = vmor %vm937_vm15, %vm938_vm0  ;;  %v8391_v33 = vld [vmem:[#allocation50_spill] sm:$0xff] }
 0x136   : > { %v1072_v39 = vmul.f32 %v1000_v29, %v7385_v31  ;;  %v5262_v57 = vor.u32 %v5841_v17, %v5261_v61  ;;  %v4690_v35 = vor.u32 %v5694_v26, %v4687_v10  ;;  %v7424_v12 = vpack.c.bf16 %v1033_v0, %v1027_v22  ;;  %v8377_v29 = vld [vmem:[#allocation18_spill] sm:$0xff]  ;;  %v8379_v17 = vld [vmem:[#allocation47_spill] sm:$0xff]  ;;  %vm949_vm4 = vmor %vm947_vm1, %vm948_vm2 }
 0x137   : > { %2974 = vmatmul.bf16.gmra.mxu2 %v7377_v28  ;;  %v1007_v5 = vsub.f32 %v8376_v45, %v7118_v50  ;;  %v5454_v58 = vor.u32 %v5889_v62, %v5453_v37  ;;  %v1028_v46 = vmul.f32 %v956_v60, %v7039_v63  ;;  %v1034_v11 = vmul.f32 %v962_v19, %v7059_v6  ;;  %v8378_v22 = vld [vmem:[#allocation22_spill] sm:$0xff]  ;;  %v8381_v63 = vld [vmem:[#allocation19_spill] sm:$0xff]  ;;  %v8383_v62 = vld [vmem:[#allocation24_spill] sm:$0xff] }
 0x138   : > { %8375 = vst [vmem:[#allocation28_spill] sm:$0xff] %v7424_v12  ;;  %3114 = vmatpush.bf16.msrb.mxu2 %v4498_v9  ;;  %v935_v24 = vsub.f32 1.5, %v7402_v36  ;;  %v1078_v21 = vmul.f32 %v1006_v55, %v7394_v32  ;;  %3036 = vmatpush.bf16.msrb.mxu0 %v5262_v57  ;;  %v967_v61 = vsub.f32 %v8377_v29, %v6974_v8  ;;  %v8382_v36 = vld [vmem:[#allocation23_spill] sm:$0xff] }
 0x139   : > { %3013 = vmatmul.bf16.gmra.mxu3 %v7397_v23  ;;  %v973_v0 = vsub.f32 %v8378_v22, %v6983_v1  ;;  %v1008_v9 = vsub.f32 %v8379_v17, %v7118_v50  ;;  %3075 = vmatpush.bf16.msrb.mxu1 %v5454_v58  ;;  %v7438_v26 = vpack.c.bf16 %v1034_v11, %v1028_v46  ;;  %v8387_v58 = vld [vmem:[#allocation27_spill] sm:$0xff]  ;;  %v8390_v17 = vld [vmem:[#allocation53_spill] sm:$0xff] }
 0x13a   : > { %3153 = vmatpush.bf16.msrb.mxu3 %v4690_v35  ;;  %v968_v6 = vsub.f32 %v8381_v63, %v6974_v8  ;;  %v974_v60 = vsub.f32 %v8382_v36, %v6983_v1  ;;  %v7444_v55 = vpack.c.bf16 %v1077_v18, %v1071_v53  ;;  %v1073_v10 = vmul.f32 %v1001_v52, %v7385_v31  ;;  %v8385_v1 = vld [vmem:[#allocation26_spill] sm:$0xff]  ;;  %v8386_v18 = vld [vmem:[#allocation25_spill] sm:$0xff] }
 0x13b   : > { %8380 = vst [vmem:[#allocation29_spill] sm:$0xff] %v7438_v26  ;;  %v1039_v40 = vmul.f32 %v967_v61, %v7132_v20  ;;  %v1045_v19 = vmul.f32 %v973_v0, %v7135_v44  ;;  %v1079_v57 = vmul.f32 %v1007_v5, %v7394_v32  ;;  %v979_v8 = vsub.f32 %v8383_v62, %v6996_v49  ;;  %v5880_v36 = vld [vmem:[#allocation7 + $0x754] sm:$0xf] }
 0x13c   : > { %v1040_v35 = vmul.f32 %v968_v6, %v7132_v20  ;;  %v1046_v37 = vmul.f32 %v974_v60, %v7135_v44  ;;  %v985_v53 = vsub.f32 %v8385_v1, %v7000_v41  ;;  %v980_v52 = vsub.f32 %v8386_v18, %v6996_v49  ;;  %v8388_v20 = vld [vmem:[#allocation41_spill] sm:$0xff] }
 0x13d   : > { %v7454_v45 = vpack.c.bf16 %v1045_v19, %v1039_v40  ;;  %v986_v46 = vsub.f32 %v8387_v58, %v7000_v41  ;;  %v7462_v11 = vpack.c.bf16 %v1078_v21, %v1072_v39  ;;  %v1002_v5 = vsub.f32 %v8388_v20, %v7099_v15  ;;  %v5431_v60 = vld [vmem:[#allocation7 + $0x768] sm:$0xf0]  ;;  %v8392_v40 = vld [vmem:[#allocation54_spill] sm:$0xff] }
 0x13e   : > { %v1080_v44 = vmul.f32 %v1008_v9, %v7394_v32  ;;  %v7467_v29 = vpack.c.bf16 %v1046_v37, %v1040_v35  ;;  %v1051_v61 = vmul.f32 %v979_v8, %v7229_v16  ;;  %v1057_v22 = vmul.f32 %v985_v53, %v7226_v48  ;;  %v5623_v35 = vld [vmem:[#allocation7 + $0x8e8] sm:$0xf0]  ;;  %v5832_v8 = vld [vmem:[#allocation7 + $0x5d4] sm:$0xf]  ;;  %v5874_v53 = vld [vmem:[#allocation7 + $0x724] sm:$0xf] }
 0x13f   : > { %8384 = vst [vmem:[#allocation30_spill] sm:$0xff] %v7454_v45  ;;  %v1052_v0 = vmul.f32 %v980_v52, %v7229_v16  ;;  %v1058_v49 = vmul.f32 %v986_v46, %v7226_v48  ;;  %v946_v41 = vmul.f32 %v7294_v54, %v945_v47  ;;  %v936_v39 = vmul.f32 %v7317_v38, %v935_v24  ;;  %v5239_v1 = vld [vmem:[#allocation7 + $0x5e8] sm:$0xf0]  ;;  %v8393_v52 = vld [vmem:[#allocation51_spill] sm:$0xff] }
 0x140   : > { %8389 = vst [vmem:[#allocation34_spill] sm:$0xff] %v7467_v29  ;;  %v7477_v21 = vpack.c.bf16 %v1079_v57, %v1073_v10  ;;  %v1074_v16 = vmul.f32 %v1002_v5, %v7385_v31  ;;  %v7486_v48 = vpack.c.bf16 %v1057_v22, %v1051_v61  ;;  %v1011_v13 = vsub.f32 %v6875_v4, %v7170_v42  ;;  %v5784_v10 = vld [vmem:[#allocation7 + $0x454] sm:$0xf]  ;;  %v8394_v46 = vld [vmem:[#allocation55_spill] sm:$0xff] }
 0x141   : > { %v7488_v51 = vpack.c.bf16 %v1058_v49, %v1052_v0  ;;  %v7500_v24 = vsel %vm939_vm3, %v7317_v38, %v936_v39  ;;  %v1017_v9 = vsub.f32 %v8390_v17, %v7184_v43  ;;  %v7505_v63 = vsel %vm949_vm4, %v7294_v54, %v946_v41  ;;  %v5047_v38 = vld [vmem:[#allocation7 + $0x468] sm:$0xf0]  ;;  %v5928_v57 = vld [vmem:[#allocation7 + $0x8d4] sm:$0xf]  ;;  %v5778_v61 = vld [vmem:[#allocation7 + $0x424] sm:$0xf] }
 0x142   : > { %v7495_v47 = vpack.c.bf16 %v1080_v44, %v1074_v16  ;;  %v1012_v6 = vsub.f32 %v8391_v33, %v7170_v42  ;;  %v1018_v4 = vsub.f32 %v8392_v40, %v7184_v43  ;;  %v5434_v19 = vor.u32 %v5880_v36, %v5431_v60  ;;  %v5407_v44 = vld [vmem:[#allocation7 + $0x738] sm:$0xf0]  ;;  %v5922_v39 = vld [vmem:[#allocation7 + $0x8a4] sm:$0xf] }
 0x143   : > { %v1083_v37 = vmul.f32 %v1011_v13, %v7500_v24  ;;  %v5050_v62 = vor.u32 %v5784_v10, %v5047_v38  ;;  %v5626_v54 = vor.u32 %v5928_v57, %v5623_v35  ;;  %v1089_v18 = vmul.f32 %v1017_v9, %v7505_v63  ;;  %v5023_v22 = vld [vmem:[#allocation7 + $0x438] sm:$0xf0]  ;;  %v8395_v17 = vld [vmem:[#allocation52_spill] sm:$0xff]  ;;  %v8399_v38 = vld [vmem:[#allocation33_spill] sm:$0xff] }
 0x144   : > { %v1013_v58 = vsub.f32 %v8393_v52, %v7170_v42  ;;  %v1019_v20 = vsub.f32 %v8394_v46, %v7184_v43  ;;  %3263 = vmatpush.bf16.msra.mxu2 %v5434_v19  ;;  %v5242_v5 = vor.u32 %v5832_v8, %v5239_v1  ;;  %v1084_v0 = vmul.f32 %v1012_v6, %v7500_v24  ;;  %v5599_v16 = vld [vmem:[#allocation7 + $0x8b8] sm:$0xf0]  ;;  %v8396_v36 = vld [vmem:[#allocation32_spill] sm:$0xff]  ;;  %v8400_v35 = vld [vmem:[#allocation37_spill] sm:$0xff] }
 0x145   : > { %2901 = vmatmul.bf16.gmra.mxu0 %v7444_v55  ;;  %2940 = vmatmul.bf16.gmra.mxu1 %v7462_v11  ;;  %v5410_v49 = vor.u32 %v5874_v53, %v5407_v44  ;;  %v5026_v41 = vor.u32 %v5778_v61, %v5023_v22  ;;  %v1090_v13 = vmul.f32 %v1018_v4, %v7505_v63  ;;  %v8397_v10 = vld [vmem:[#allocation56_spill] sm:$0xff] }
 0x146   : > { %3185 = vmatpush.bf16.msra.mxu0 %v5050_v62  ;;  %3302 = vmatpush.bf16.msra.mxu3 %v5626_v54  ;;  %v1014_v9 = vsub.f32 %v8395_v17, %v7170_v42  ;;  %v5602_v33 = vor.u32 %v5922_v39, %v5599_v16  ;;  %v991_v60 = vsub.f32 %v8396_v36, %v7032_v59  ;;  %v8398_v6 = vld [vmem:[#allocation36_spill] sm:$0xff]  ;;  %v8405_v16 = vld [vmem:[#allocation49_spill] sm:$0xff] }
 0x147   : > { %2979 = vmatmul.bf16.gmra.mxu2 %v7477_v21  ;;  %3224 = vmatpush.bf16.msra.mxu1 %v5242_v5  ;;  %v1020_v40 = vsub.f32 %v8397_v10, %v7184_v43  ;;  %v997_v19 = vsub.f32 %v8398_v6, %v7064_v34  ;;  %v992_v57 = vsub.f32 %v8399_v38, %v7032_v59  ;;  %v5826_v22 = vld [vmem:[#allocation7 + $0x5a4] sm:$0xf]  ;;  %v4999_v36 = vld [vmem:[#allocation7 + $0x408] sm:$0xf0]  ;;  %v5916_v6 = vld [vmem:[#allocation7 + $0x874] sm:$0xf] }
 0x148   : > { %v998_v4 = vsub.f32 %v8400_v35, %v7064_v34  ;;  %v1085_v62 = vmul.f32 %v1013_v58, %v7500_v24  ;;  %v1091_v54 = vmul.f32 %v1019_v20, %v7505_v63  ;;  %3264 = vmatpush.bf16.msra.mxu2 %v5410_v49  ;;  %v1063_v8 = vmul.f32 %v991_v60, %v7322_v3  ;;  %v5868_v49 = vld [vmem:[#allocation7 + $0x6f4] sm:$0xf] }
 0x149   : > { %3018 = vmatmul.bf16.gmra.mxu3 %v7495_v47  ;;  %v1069_v1 = vmul.f32 %v997_v19, %v7309_v14  ;;  %v1064_v53 = vmul.f32 %v992_v57, %v7322_v3  ;;  %v7538_v46 = vpack.c.bf16 %v1089_v18, %v1083_v37  ;;  %v7540_v59 = vpack.c.bf16 %v1090_v13, %v1084_v0  ;;  %v8402_v3 = vld [vmem:[#allocation44_spill] sm:$0xff]  ;;  %v8403_v18 = vld [vmem:[#allocation45_spill] sm:$0xff]  ;;  %v5215_v0 = vld [vmem:[#allocation7 + $0x5b8] sm:$0xf0] }
 0x14a   : > { %3186 = vmatpush.bf16.msra.mxu0 %v5026_v41  ;;  %3303 = vmatpush.bf16.msra.mxu3 %v5602_v33  ;;  %v1070_v52 = vmul.f32 %v998_v4, %v7309_v14  ;;  %v1086_v34 = vmul.f32 %v1014_v9, %v7500_v24  ;;  %v1092_v58 = vmul.f32 %v1020_v40, %v7505_v63  ;;  %v8404_v41 = vld [vmem:[#allocation48_spill] sm:$0xff]  ;;  %v5772_v33 = vld [vmem:[#allocation7 + $0x3f4] sm:$0xf] }
 0x14b   : > { %8401 = vst [vmem:[#allocation35_spill] sm:$0xff] %v7540_v59  ;;  %v7544_v20 = vpack.c.bf16 %v1069_v1, %v1063_v8  ;;  %v7550_v44 = vpack.c.bf16 %v1091_v54, %v1085_v62  ;;  %v1003_v37 = vsub.f32 %v8402_v3, %v7099_v15  ;;  %v1004_v61 = vsub.f32 %v8403_v18, %v7099_v15  ;;  %v5383_v9 = vld [vmem:[#allocation7 + $0x708] sm:$0xf0]  ;;  %v5820_v38 = vld [vmem:[#allocation7 + $0x574] sm:$0xf] }
 0x14c   : > { %v7546_v5 = vpack.c.bf16 %v1070_v52, %v1064_v53  ;;  %v7553_v14 = vpack.c.bf16 %v1092_v58, %v1086_v34  ;;  %v1009_v39 = vsub.f32 %v8404_v41, %v7118_v50  ;;  %v1010_v13 = vsub.f32 %v8405_v16, %v7118_v50  ;;  %v5575_v19 = vld [vmem:[#allocation7 + $0x888] sm:$0xf0]  ;;  %v8407_v53 = vld [vmem:[#allocation58_spill] sm:$0xff] }
 0x14d   : > { %v5218_v17 = vor.u32 %v5826_v22, %v5215_v0  ;;  %v1075_v60 = vmul.f32 %v1003_v37, %v7385_v31  ;;  %v1076_v10 = vmul.f32 %v1004_v61, %v7385_v31  ;;  %v5386_v15 = vor.u32 %v5868_v49, %v5383_v9  ;;  %v5191_v50 = vld [vmem:[#allocation7 + $0x588] sm:$0xf0]  ;;  %v5359_v41 = vld [vmem:[#allocation7 + $0x6d8] sm:$0xf0] }
 0x14e   : > { %v5002_v40 = vor.u32 %v5772_v33, %v4999_v36  ;;  %v1081_v57 = vmul.f32 %v1009_v39, %v7394_v32  ;;  %v1082_v35 = vmul.f32 %v1010_v13, %v7394_v32  ;;  %v5578_v4 = vor.u32 %v5916_v6, %v5575_v19  ;;  %v8406_v31 = vld [vmem:[#allocation57_spill] sm:$0xff]  ;;  %v8408_v32 = vld [vmem:[#allocation59_spill] sm:$0xff]  ;;  %v8409_v58 = vld [vmem:[#allocation60_spill] sm:$0xff] }
 0x14f   : > { %3225 = vmatpush.bf16.msra.mxu1 %v5218_v17  ;;  %3265 = vmatpush.bf16.msra.mxu2 %v5386_v15  ;;  %v5194_v62 = vor.u32 %v5820_v38, %v5191_v50  ;;  %v1015_v1 = vsub.f32 %v8406_v31, %v7170_v42  ;;  %v1021_v52 = vsub.f32 %v8407_v53, %v7184_v43  ;;  %v8410_v49 = vld [vmem:[#allocation61_spill] sm:$0xff]  ;;  %v5766_v39 = vld [vmem:[#allocation7 + $0x3c4] sm:$0xf]  ;;  %v4975_v13 = vld [vmem:[#allocation7 + $0x3d8] sm:$0xf0] }
 0x150   : > { %3187 = vmatpush.bf16.msra.mxu0 %v5002_v40  ;;  %v7568_v54 = vpack.c.bf16 %v1081_v57, %v1075_v60  ;;  %v7570_v8 = vpack.c.bf16 %v1082_v35, %v1076_v10  ;;  %3304 = vmatpush.bf16.msra.mxu3 %v5578_v4  ;;  %v1016_v34 = vsub.f32 %v8408_v32, %v7170_v42  ;;  %v5910_v17 = vld [vmem:[#allocation7 + $0x844] sm:$0xf]  ;;  %v5551_v9 = vld [vmem:[#allocation7 + $0x858] sm:$0xf0]  ;;  %v8412_v15 = vld [vmem:[#allocation65_spill] sm:$0xff] }
 0x151   : > { %v1022_v3 = vsub.f32 %v8409_v58, %v7184_v43  ;;  %v1087_v37 = vmul.f32 %v1015_v1, %v7500_v24  ;;  %v1093_v18 = vmul.f32 %v1021_v52, %v7505_v63  ;;  %v5862_v43 = vld [vmem:[#allocation7 + $0x6c4] sm:$0xf]  ;;  %v4978_v33 = vor.u32 %v5766_v39, %v4975_v13  ;;  %v5167_v60 = vld [vmem:[#allocation7 + $0x558] sm:$0xf0]  ;;  %v5856_v40 = vld [vmem:[#allocation7 + $0x694] sm:$0xf] }
 0x152   : > { %v1088_v61 = vmul.f32 %v1016_v34, %v7500_v24  ;;  %v5362_v16 = vor.u32 %v5862_v43, %v5359_v41  ;;  %v5554_v36 = vor.u32 %v5910_v17, %v5551_v9  ;;  %v5814_v24 = vld [vmem:[#allocation7 + $0x544] sm:$0xf]  ;;  %v5335_v6 = vld [vmem:[#allocation7 + $0x6a8] sm:$0xf0]  ;;  %v5760_v19 = vld [vmem:[#allocation7 + $0x394] sm:$0xf] }
 0x153   : > { %3226 = vmatpush.bf16.msra.mxu1 %v5194_v62  ;;  %v1094_v22 = vmul.f32 %v1022_v3, %v7505_v63  ;;  %v7587_v0 = vpack.c.bf16 %v1093_v18, %v1087_v37  ;;  %v5170_v63 = vor.u32 %v5814_v24, %v5167_v60  ;;  %v8411_v10 = vld [vmem:[#allocation64_spill] sm:$0xff]  ;;  %v5338_v38 = vor.u32 %v5856_v40, %v5335_v6  ;;  %v5904_v35 = vld [vmem:[#allocation7 + $0x814] sm:$0xf]  ;;  %v7596_v31 = vld [vmem:[#allocation8] sm:$0x3f] }
 0x154   : > { %3266 = vmatpush.bf16.msra.mxu2 %v5362_v16  ;;  %3188 = vmatpush.bf16.msra.mxu0 %v4978_v33  ;;  %v4951_v57 = vld [vmem:[#allocation7 + $0x3a8] sm:$0xf0]  ;;  %v5808_v1 = vld [vmem:[#allocation7 + $0x514] sm:$0xf]  ;;  %v7599_v32 = vperm.slane %v7596_v31, 0 }
 0x155   : > { %2906 = vmatmul.bf16.gmra.mxu0 %v7538_v46  ;;  %2945 = vmatmul.bf16.gmra.mxu1 %v7540_v59  ;;  %v7589_v42 = vpack.c.bf16 %v1094_v22, %v1088_v61  ;;  %v5527_v4 = vld [vmem:[#allocation7 + $0x828] sm:$0xf0]  ;;  %v4954_v50 = vor.u32 %v5760_v19, %v4951_v57  ;;  %v5850_v18 = vld [vmem:[#allocation7 + $0x664] sm:$0xf]  ;;  %v5311_v61 = vld [vmem:[#allocation7 + $0x678] sm:$0xf0] }
 0x156   : > { %3305 = vmatpush.bf16.msra.mxu3 %v5554_v36  ;;  %v5530_v62 = vor.u32 %v5904_v35, %v5527_v4  ;;  %v5143_v53 = vld [vmem:[#allocation7 + $0x528] sm:$0xf0]  ;;  %v5754_v22 = vld [vmem:[#allocation7 + $0x364] sm:$0xf]  ;;  %v5314_v43 = vor.u32 %v5850_v18, %v5311_v61  ;;  %v4927_v41 = vld [vmem:[#allocation7 + $0x378] sm:$0xf0] }
 0x157   : > { %2984 = vmatmul.bf16.gmra.mxu2 %v7550_v44  ;;  %3227 = vmatpush.bf16.msra.mxu1 %v5170_v63  ;;  %v5146_v52 = vor.u32 %v5808_v1, %v5143_v53  ;;  %v5898_v39 = vld [vmem:[#allocation7 + $0x7e4] sm:$0xf]  ;;  %v5503_v16 = vld [vmem:[#allocation7 + $0x7f8] sm:$0xf0]  ;;  %v4930_v13 = vor.u32 %v5754_v22, %v4927_v41  ;;  %v5844_v35 = vld [vmem:[#allocation7 + $0x634] sm:$0xf] }
 0x158   : > { %3267 = vmatpush.bf16.msra.mxu2 %v5338_v38  ;;  %3189 = vmatpush.bf16.msra.mxu0 %v4954_v50  ;;  %v5506_v17 = vor.u32 %v5898_v39, %v5503_v16  ;;  %v5802_v33 = vld [vmem:[#allocation7 + $0x4e4] sm:$0xf]  ;;  %v5119_v36 = vld [vmem:[#allocation7 + $0x4f8] sm:$0xf0]  ;;  %v5287_v4 = vld [vmem:[#allocation7 + $0x648] sm:$0xf0] }
 0x159   : > { %3023 = vmatmul.bf16.gmra.mxu3 %v7553_v14  ;;  %v5122_v40 = vor.u32 %v5802_v33, %v5119_v36  ;;  %v5748_v50 = vld [vmem:[#allocation7 + $0x334] sm:$0xf]  ;;  %v4903_v1 = vld [vmem:[#allocation7 + $0x348] sm:$0xf0] }
 0x15a   : > { %3306 = vmatpush.bf16.msra.mxu3 %v5530_v62  ;;  %v5290_v62 = vor.u32 %v5844_v35, %v5287_v4  ;;  %v5892_v53 = vld [vmem:[#allocation7 + $0x7b4] sm:$0xf]  ;;  %v5742_v35 = vld [vmem:[#allocation7 + $0x304] sm:$0xf] }
 0x15b   : > { %3228 = vmatpush.bf16.msra.mxu1 %v5146_v52  ;;  %v5479_v52 = vld [vmem:[#allocation7 + $0x7c8] sm:$0xf0]  ;;  %v5796_v16 = vld [vmem:[#allocation7 + $0x4b4] sm:$0xf] }
 0x15c   : > { %3268 = vmatpush.bf16.msra.mxu2 %v5314_v43  ;;  %3190 = vmatpush.bf16.msra.mxu0 %v4930_v13  ;;  %v5095_v13 = vld [vmem:[#allocation7 + $0x4c8] sm:$0xf0] }
 0x15e   : > { %3307 = vmatpush.bf16.msra.mxu3 %v5506_v17  ;;  %v5098_v17 = vor.u32 %v5796_v16, %v5095_v13 }
 0x15f   : > { %3229 = vmatpush.bf16.msra.mxu1 %v5122_v40 }
 0x160   : > { %3269 = vmatpush.bf16.msra.mxu2 %v5290_v62  ;;  %v5886_v62 = vld [vmem:[#allocation7 + $0x784] sm:$0xf] }
 0x163   : > { %3230 = vmatpush.bf16.msra.mxu1 %v5098_v17  ;;  %v5053_v17 = vld [vmem:[#allocation7 + $0x458] sm:$0xf] }
 0x165   : > { %3037 = vmatmul.bf16.vlgmr.msrb.gmra.mxu0 %v7424_v12  ;;  %3076 = vmatmul.bf16.vlgmr.msrb.gmra.mxu1 %v7438_v26 }
 0x167   : > { %3115 = vmatmul.bf16.vlgmr.msrb.gmra.mxu2 %v7072_v56 }
 0x169   : > { %3154 = vmatmul.bf16.vlgmr.msrb.gmra.mxu3 %v8410_v49 }
 0x175   : > { %3042 = vmatmul.bf16.gmra.mxu0 %v7454_v45  ;;  %3081 = vmatmul.bf16.gmra.mxu1 %v7467_v29 }
 0x177   : > { %3120 = vmatmul.bf16.gmra.mxu2 %v8411_v10 }
 0x179   : > { %3159 = vmatmul.bf16.gmra.mxu3 %v8412_v15 }
 0x182   : > { %v2882_v34 = vpop.f32.mrf.mxu0  ;;  %v2921_v58 = vpop.f32.mrf.mxu1 }
 0x183   : > { %v2883_v3 = vadd.f32 %v2882_v34, %v7599_v32  ;;  %v4906_v34 = vor.u32 %v5748_v50, %v4903_v1  ;;  %v4879_v50 = vld [vmem:[#allocation7 + $0x318] sm:$0xf0] }
 0x184   : > { %v5455_v1 = vld [vmem:[#allocation7 + $0x798] sm:$0xf0] }
 0x185   : > { %v2922_v37 = vadd.f32 %v2921_v58, %v2883_v3  ;;  %3047 = vmatmul.bf16.gmra.mxu0 %v7486_v48  ;;  %3086 = vmatmul.bf16.gmra.mxu1 %v7488_v51  ;;  %v5482_v58 = vor.u32 %v5892_v53, %v5479_v52  ;;  %v4882_v53 = vor.u32 %v5742_v35, %v4879_v50 }
 0x186   : > { %3191 = vmatpush.bf16.msra.mxu0 %v4906_v34  ;;  %v5458_v52 = vor.u32 %v5886_v62, %v5455_v1  ;;  %v5790_v34 = vld [vmem:[#allocation7 + $0x484] sm:$0xf] }
 0x187   : > { %3125 = vmatmul.bf16.gmra.mxu2 %v7264_v27  ;;  %3308 = vmatpush.bf16.msra.mxu3 %v5482_v58  ;;  %v5071_v58 = vld [vmem:[#allocation7 + $0x498] sm:$0xf0] }
 0x189   : > { %3164 = vmatmul.bf16.gmra.mxu3 %v7267_v2  ;;  %v2960_v9 = vpop.f32.mrf.mxu2 }
 0x18a   : > { %v2961_v24 = vadd.f32 %v2960_v9, %v2922_v37  ;;  %v2884_v60 = vpop.f32.mrf.mxu0  ;;  %v2923_v63 = vpop.f32.mrf.mxu1  ;;  %3192 = vmatpush.bf16.msra.mxu0 %v4882_v53 }
 0x18b   : > { %v2885_v6 = vadd.f32 %v2884_v60, %v7599_v32  ;;  %3309 = vmatpush.bf16.msra.mxu3 %v5458_v52 }
 0x18c   : > { %v2999_v19 = vpop.f32.mrf.mxu3 }
 0x18d   : > { %v7607_v38 = vadd.f32 %v2999_v19, %v2961_v24  ;;  %v2924_v57 = vadd.f32 %v2923_v63, %v2885_v6  ;;  %v5838_v19 = vld [vmem:[#allocation7 + $0x604] sm:$0xf] }
 0x191   : > { %v2962_v3 = vpop.f32.mrf.mxu2 }
 0x192   : > { %v2963_v37 = vadd.f32 %v2962_v3, %v2924_v57  ;;  %v2887_v18 = vpop.f32.mrf.mxu0  ;;  %v2926_v61 = vpop.f32.mrf.mxu1  ;;  %v5263_v57 = vld [vmem:[#allocation7 + $0x618] sm:$0xf0]  ;;  %v5074_v3 = vor.u32 %v5790_v34, %v5071_v58  ;;  %v4861_v34 = vld [vmem:[#allocation7 + $0x2d8] sm:$0xf]  ;;  %v5740_v58 = vld [vmem:[#allocation7 + $0x2ec] sm:$0xf0] }
 0x193   : > { %v2888_v22 = vadd.f32 %v2887_v18, %v7599_v32  ;;  %v5266_v4 = vor.u32 %v5838_v19, %v5263_v57  ;;  %v5836_v19 = vld [vmem:[#allocation7 + $0x5ec] sm:$0xf0] }
 0x194   : > { %v3001_v43 = vpop.f32.mrf.mxu3  ;;  %3231 = vmatpush.bf16.msra.mxu1 %v5074_v3  ;;  %v4862_v3 = vor.u32 %v5740_v58, %v4861_v34 }
 0x195   : > { %v7610_v41 = vadd.f32 %v3001_v43, %v2963_v37  ;;  %v2927_v39 = vadd.f32 %v2926_v61, %v2888_v22  ;;  %3052 = vmatmul.bf16.gmra.mxu0 %v7544_v20  ;;  %3091 = vmatmul.bf16.gmra.mxu1 %v7546_v5 }
 0x196   : > { %3270 = vmatpush.bf16.msra.mxu2 %v5266_v4 }
 0x197   : > { %3130 = vmatmul.bf16.gmra.mxu2 %v7348_v25 }
 0x198   : > { %3380 = vmatpush.bf16.msrb.mxu1 %v4862_v3 }
 0x199   : > { %3169 = vmatmul.bf16.gmra.mxu3 %v7361_v30 }
 0x19a   : > { %v2965_v9 = vpop.f32.mrf.mxu2  ;;  %v2889_v33 = vpop.f32.mrf.mxu0 }
 0x19b   : > { %v2966_v36 = vadd.f32 %v2965_v9, %v2927_v39  ;;  %v2890_v24 = vadd.f32 %v2889_v33, %v7599_v32  ;;  %v2928_v60 = vpop.f32.mrf.mxu1  ;;  %v5788_v9 = vld [vmem:[#allocation7 + $0x46c] sm:$0xf0]  ;;  %v4669_v33 = vld [vmem:[#allocation7 + $0x158] sm:$0xf] }
 0x19c   : > { %v3004_v63 = vpop.f32.mrf.mxu3 }
 0x19d   : > { %v7617_v40 = vadd.f32 %v3004_v63, %v2966_v36  ;;  %v2929_v6 = vadd.f32 %v2928_v60, %v2890_v24  ;;  %v5054_v60 = vor.u32 %v5788_v9, %v5053_v17  ;;  %v5692_v63 = vld [vmem:[#allocation7 + $0x16c] sm:$0xf0]  ;;  %v5029_v9 = vld [vmem:[#allocation7 + $0x428] sm:$0xf] }
 0x19e   : > { %v4670_v50 = vor.u32 %v5692_v63, %v4669_v33  ;;  %v5782_v33 = vld [vmem:[#allocation7 + $0x43c] sm:$0xf0]  ;;  %v5221_v63 = vld [vmem:[#allocation7 + $0x5a8] sm:$0xf] }
 0x19f   : > { %3419 = vmatpush.bf16.msrb.mxu2 %v5054_v60  ;;  %v5686_v60 = vld [vmem:[#allocation7 + $0x13c] sm:$0xf0] }
 0x1a0   : > { %3341 = vmatpush.bf16.msrb.mxu0 %v4670_v50 }
 0x1a2   : > { %v2967_v37 = vpop.f32.mrf.mxu2  ;;  %v2892_v18 = vpop.f32.mrf.mxu0 }
 0x1a3   : > { %v2968_v61 = vadd.f32 %v2967_v37, %v2929_v6  ;;  %v2893_v22 = vadd.f32 %v2892_v18, %v7599_v32  ;;  %v2931_v43 = vpop.f32.mrf.mxu1  ;;  %v5245_v6 = vld [vmem:[#allocation7 + $0x5d8] sm:$0xf] }
 0x1a4   : > { %v3006_v39 = vpop.f32.mrf.mxu3  ;;  %v5246_v62 = vor.u32 %v5836_v19, %v5245_v6  ;;  %v5830_v6 = vld [vmem:[#allocation7 + $0x5bc] sm:$0xf0] }
 0x1a5   : > { %v7620_v16 = vadd.f32 %v3006_v39, %v2968_v61  ;;  %v2932_v13 = vadd.f32 %v2931_v43, %v2893_v22  ;;  %3057 = vmatmul.bf16.gmra.mxu0 %v7568_v54  ;;  %3096 = vmatmul.bf16.gmra.mxu1 %v7570_v8 }
 0x1a6   : > { %3458 = vmatpush.bf16.msrb.mxu3 %v5246_v62 }
 0x1a7   : > { %3135 = vmatmul.bf16.gmra.mxu2 %v7444_v55 }
 0x1a9   : > { %3174 = vmatmul.bf16.gmra.mxu3 %v7462_v11 }
 0x1aa   : > { %v2970_v36 = vpop.f32.mrf.mxu2  ;;  %v2894_v24 = vpop.f32.mrf.mxu0 }
 0x1ab   : > { %v2971_v57 = vadd.f32 %v2970_v36, %v2932_v13  ;;  %v2895_v35 = vadd.f32 %v2894_v24, %v7599_v32  ;;  %v2933_v4 = vpop.f32.mrf.mxu1  ;;  %v4645_v36 = vld [vmem:[#allocation7 + $0x128] sm:$0xf]  ;;  %v5030_v24 = vor.u32 %v5782_v33, %v5029_v9  ;;  %v5680_v9 = vld [vmem:[#allocation7 + $0x10c] sm:$0xf0]  ;;  %v5197_v33 = vld [vmem:[#allocation7 + $0x578] sm:$0xf] }
 0x1ac   : > { %v3009_v1 = vpop.f32.mrf.mxu3  ;;  %v4646_v19 = vor.u32 %v5686_v60, %v4645_v36  ;;  %v5824_v36 = vld [vmem:[#allocation7 + $0x58c] sm:$0xf0] }
 0x1ad   : > { %v7627_v53 = vadd.f32 %v3009_v1, %v2971_v57  ;;  %v2934_v52 = vadd.f32 %v2933_v4, %v2895_v35  ;;  %v5222_v57 = vor.u32 %v5830_v6, %v5221_v63  ;;  %3420 = vmatpush.bf16.msrb.mxu2 %v5030_v24  ;;  %v4837_v35 = vld [vmem:[#allocation7 + $0x2a8] sm:$0xf]  ;;  %v5734_v4 = vld [vmem:[#allocation7 + $0x2bc] sm:$0xf0]  ;;  %v5198_v60 = vor.u32 %v5824_v36, %v5197_v33 }
 0x1ae   : > { %3342 = vmatpush.bf16.msrb.mxu0 %v4646_v19  ;;  %v4838_v1 = vor.u32 %v5734_v4, %v4837_v35  ;;  %v4981_v36 = vld [vmem:[#allocation7 + $0x3c8] sm:$0xf] }
 0x1af   : > { %3459 = vmatpush.bf16.msrb.mxu3 %v5222_v57 }
 0x1b0   : > { %3381 = vmatpush.bf16.msrb.mxu1 %v4838_v1  ;;  %v8414_v1 = vld [vmem:[#allocation63_spill] sm:$0xff] }
 0x1b2   : > { %v2972_v37 = vpop.f32.mrf.mxu2  ;;  %v2897_v18 = vpop.f32.mrf.mxu0 }
 0x1b3   : > { %v2973_v61 = vadd.f32 %v2972_v37, %v2934_v52  ;;  %v2898_v22 = vadd.f32 %v2897_v18, %v7599_v32  ;;  %v2936_v43 = vpop.f32.mrf.mxu1  ;;  %3460 = vmatpush.bf16.msrb.mxu3 %v5198_v60 }
 0x1b4   : > { %v3011_v39 = vpop.f32.mrf.mxu3 }
 0x1b5   : > { %v7630_v13 = vadd.f32 %v3011_v39, %v2973_v61  ;;  %v2937_v17 = vadd.f32 %v2936_v43, %v2898_v22  ;;  %3062 = vmatmul.bf16.gmra.mxu0 %v7587_v0  ;;  %3101 = vmatmul.bf16.gmra.mxu1 %v7589_v42  ;;  %v5005_v61 = vld [vmem:[#allocation7 + $0x3f8] sm:$0xf]  ;;  %v5776_v22 = vld [vmem:[#allocation7 + $0x40c] sm:$0xf0] }
 0x1b6   : > { %v4621_v43 = vld [vmem:[#allocation7 + $0xf8] sm:$0xf]  ;;  %v5006_v39 = vor.u32 %v5776_v22, %v5005_v61 }
 0x1b7   : > { %3140 = vmatmul.bf16.gmra.mxu2 %v7538_v46  ;;  %v4622_v24 = vor.u32 %v5680_v9, %v4621_v43 }
 0x1b8   : > { %3421 = vmatpush.bf16.msrb.mxu2 %v5006_v39 }
 0x1b9   : > { %3179 = vmatmul.bf16.gmra.mxu3 %v7540_v59  ;;  %3343 = vmatpush.bf16.msrb.mxu0 %v4622_v24  ;;  %v5770_v24 = vld [vmem:[#allocation7 + $0x3dc] sm:$0xf0] }
 0x1ba   : > { %v2975_v50 = vpop.f32.mrf.mxu2  ;;  %v2899_v62 = vpop.f32.mrf.mxu0  ;;  %v4982_v60 = vor.u32 %v5770_v24, %v4981_v36  ;;  %v8415_v24 = vld [vmem:[#allocation66_spill] sm:$0xff] }
 0x1bb   : > { %v2976_v52 = vadd.f32 %v2975_v50, %v2937_v17  ;;  %v2900_v34 = vadd.f32 %v2899_v62, %v7599_v32  ;;  %v2938_v58 = vpop.f32.mrf.mxu1  ;;  %v8413_v62 = vld [vmem:[#allocation62_spill] sm:$0xff] }
 0x1bc   : > { %v3014_v3 = vpop.f32.mrf.mxu3  ;;  %3422 = vmatpush.bf16.msrb.mxu2 %v4982_v60  ;;  %v4957_v60 = vld [vmem:[#allocation7 + $0x398] sm:$0xf] }
 0x1bd   : > { %v7637_v37 = vadd.f32 %v3014_v3, %v2976_v52  ;;  %v2939_v18 = vadd.f32 %v2938_v58, %v2900_v34  ;;  %v4813_v52 = vld [vmem:[#allocation7 + $0x278] sm:$0xf]  ;;  %v5728_v34 = vld [vmem:[#allocation7 + $0x28c] sm:$0xf0] }
 0x1be   : > { %v4814_v58 = vor.u32 %v5728_v34, %v4813_v52  ;;  %v5722_v52 = vld [vmem:[#allocation7 + $0x25c] sm:$0xf0] }
 0x1c0   : > { %3382 = vmatpush.bf16.msrb.mxu1 %v4814_v58 }
 0x1c2   : > { %v2977_v17 = vpop.f32.mrf.mxu2  ;;  %v2902_v63 = vpop.f32.mrf.mxu0 }
 0x1c3   : > { %v2978_v6 = vadd.f32 %v2977_v17, %v2939_v18  ;;  %v2903_v19 = vadd.f32 %v2902_v63, %v7599_v32  ;;  %v2941_v57 = vpop.f32.mrf.mxu1  ;;  %v4597_v17 = vld [vmem:[#allocation7 + $0xc8] sm:$0xf]  ;;  %v5674_v63 = vld [vmem:[#allocation7 + $0xdc] sm:$0xf0] }
 0x1c4   : > { %v3016_v35 = vpop.f32.mrf.mxu3 }
 0x1c5   : > { %v7640_v4 = vadd.f32 %v3016_v35, %v2978_v6  ;;  %v2942_v50 = vadd.f32 %v2941_v57, %v2903_v19  ;;  %3193 = vmatmul.bf16.vlgmr.msra.gmra.mxu0 %v8413_v62  ;;  %3232 = vmatmul.bf16.vlgmr.msra.gmra.mxu1 %v8414_v1  ;;  %v5173_v6 = vld [vmem:[#allocation7 + $0x548] sm:$0xf]  ;;  %v4598_v19 = vor.u32 %v5674_v63, %v4597_v17  ;;  %v5818_v57 = vld [vmem:[#allocation7 + $0x55c] sm:$0xf0]  ;;  %v5764_v17 = vld [vmem:[#allocation7 + $0x3ac] sm:$0xf0] }
 0x1c6   : > { %v4789_v35 = vld [vmem:[#allocation7 + $0x248] sm:$0xf]  ;;  %v5174_v34 = vor.u32 %v5818_v57, %v5173_v6  ;;  %v5668_v57 = vld [vmem:[#allocation7 + $0xac] sm:$0xf0] }
 0x1c7   : > { %3271 = vmatmul.bf16.vlgmr.msra.gmra.mxu2 %v7424_v12  ;;  %3344 = vmatpush.bf16.msrb.mxu0 %v4598_v19  ;;  %v4958_v19 = vor.u32 %v5764_v17, %v4957_v60 }
 0x1c8   : > { %3461 = vmatpush.bf16.msrb.mxu3 %v5174_v34 }
 0x1c9   : > { %3310 = vmatmul.bf16.vlgmr.msra.gmra.mxu3 %v7438_v26  ;;  %3423 = vmatpush.bf16.msrb.mxu2 %v4958_v19 }
 0x1ca   : > { %v2980_v3 = vpop.f32.mrf.mxu2  ;;  %v2904_v18 = vpop.f32.mrf.mxu0 }
 0x1cb   : > { %v2981_v61 = vadd.f32 %v2980_v3, %v2942_v50  ;;  %v2905_v22 = vadd.f32 %v2904_v18, %v7599_v32  ;;  %v2943_v43 = vpop.f32.mrf.mxu1  ;;  %v4790_v50 = vor.u32 %v5722_v52, %v4789_v35  ;;  %v5149_v35 = vld [vmem:[#allocation7 + $0x518] sm:$0xf]  ;;  %v5812_v52 = vld [vmem:[#allocation7 + $0x52c] sm:$0xf0] }
 0x1cc   : > { %v3019_v39 = vpop.f32.mrf.mxu3 }
 0x1cd   : > { %v7647_v9 = vadd.f32 %v3019_v39, %v2981_v61  ;;  %v2944_v33 = vadd.f32 %v2943_v43, %v2905_v22  ;;  %3383 = vmatpush.bf16.msrb.mxu1 %v4790_v50 }
 0x1d2   : > { %v2982_v58 = vpop.f32.mrf.mxu2  ;;  %v2907_v3 = vpop.f32.mrf.mxu0 }
 0x1d3   : > { %v2983_v18 = vadd.f32 %v2982_v58, %v2944_v33  ;;  %v2908_v61 = vadd.f32 %v2907_v3, %v7599_v32  ;;  %v2946_v22 = vpop.f32.mrf.mxu1  ;;  %v4573_v33 = vld [vmem:[#allocation7 + $0x98] sm:$0xf] }
 0x1d4   : > { %v3021_v43 = vpop.f32.mrf.mxu3  ;;  %v4574_v3 = vor.u32 %v5668_v57, %v4573_v33  ;;  %v8416_v57 = vld [vmem:[#allocation67_spill] sm:$0xff] }
 0x1d5   : > { %v7650_v39 = vadd.f32 %v3021_v43, %v2983_v18  ;;  %v2947_v36 = vadd.f32 %v2946_v22, %v2908_v61  ;;  %3198 = vmatmul.bf16.gmra.mxu0 %v7191_v7  ;;  %3237 = vmatmul.bf16.gmra.mxu1 %v8415_v24  ;;  %v5150_v18 = vor.u32 %v5812_v52, %v5149_v35  ;;  %v8417_v35 = vld [vmem:[#allocation68_spill] sm:$0xff] }
 0x1d6   : > { %3345 = vmatpush.bf16.msrb.mxu0 %v4574_v3  ;;  %v4933_v52 = vld [vmem:[#allocation7 + $0x368] sm:$0xf]  ;;  %v5806_v3 = vld [vmem:[#allocation7 + $0x4fc] sm:$0xf0] }
 0x1d7   : > { %3276 = vmatmul.bf16.gmra.mxu2 %v7454_v45  ;;  %3462 = vmatpush.bf16.msrb.mxu3 %v5150_v18  ;;  %v5716_v45 = vld [vmem:[#allocation7 + $0x22c] sm:$0xf0] }
 0x1d9   : > { %3315 = vmatmul.bf16.gmra.mxu3 %v7467_v29  ;;  %v4765_v29 = vld [vmem:[#allocation7 + $0x218] sm:$0xf] }
 0x1da   : > { %v2985_v63 = vpop.f32.mrf.mxu2  ;;  %v2909_v6 = vpop.f32.mrf.mxu0  ;;  %v4766_v26 = vor.u32 %v5716_v45, %v4765_v29  ;;  %v7665_v45 = vperm.slane %v7596_v31, 1  ;;  %v4549_v29 = vld [vmem:[#allocation7 + $0x68] sm:$0xf]  ;;  %v5710_v31 = vld [vmem:[#allocation7 + $0x1fc] sm:$0xf0] }
 0x1db   : > { %v2986_v34 = vadd.f32 %v2985_v63, %v2947_v36  ;;  %v2910_v50 = vadd.f32 %v2909_v6, %v7599_v32  ;;  %v2948_v58 = vpop.f32.mrf.mxu1 }
 0x1dc   : > { %v3024_v61 = vpop.f32.mrf.mxu3  ;;  %3384 = vmatpush.bf16.msrb.mxu1 %v4766_v26 }
 0x1dd   : > { %v7657_v22 = vadd.f32 %v3024_v61, %v2986_v34  ;;  %v2949_v43 = vadd.f32 %v2948_v58, %v2910_v50  ;;  %v5758_v34 = vld [vmem:[#allocation7 + $0x37c] sm:$0xf0]  ;;  %v5125_v50 = vld [vmem:[#allocation7 + $0x4e8] sm:$0xf] }
 0x1de   : > { %v4934_v26 = vor.u32 %v5758_v34, %v4933_v52  ;;  %v5126_v18 = vor.u32 %v5806_v3, %v5125_v50  ;;  %v4741_v61 = vld [vmem:[#allocation7 + $0x1e8] sm:$0xf]  ;;  %v4909_v34 = vld [vmem:[#allocation7 + $0x338] sm:$0xf]  ;;  %v5656_v50 = vld [vmem:[#allocation7 + $0x4c] sm:$0xf0] }
 0x1df   : > { %v5101_v3 = vld [vmem:[#allocation7 + $0x4b8] sm:$0xf] }
 0x1e0   : > { %3424 = vmatpush.bf16.msrb.mxu2 %v4934_v26  ;;  %3463 = vmatpush.bf16.msrb.mxu3 %v5126_v18  ;;  %v5752_v26 = vld [vmem:[#allocation7 + $0x34c] sm:$0xf0] }
 0x1e2   : > { %v2987_v60 = vpop.f32.mrf.mxu2  ;;  %v3038_v17 = vpop.f32.mrf.mxu0 }
 0x1e3   : > { %v2988_v36 = vadd.f32 %v2987_v60, %v2949_v43  ;;  %v3039_v32 = vadd.f32 %v3038_v17, %v7607_v38  ;;  %v3077_v63 = vpop.f32.mrf.mxu1  ;;  %v5662_v38 = vld [vmem:[#allocation7 + $0x7c] sm:$0xf0]  ;;  %v4742_v17 = vor.u32 %v5710_v31, %v4741_v61  ;;  %v5800_v61 = vld [vmem:[#allocation7 + $0x4cc] sm:$0xf0] }
 0x1e4   : > { %v3026_v33 = vpop.f32.mrf.mxu3  ;;  %v4550_v58 = vor.u32 %v5662_v38, %v4549_v29  ;;  %v4910_v29 = vor.u32 %v5752_v26, %v4909_v34  ;;  %v4525_v38 = vld [vmem:[#allocation7 + $0x38] sm:$0xf] }
 0x1e5   : > { %v7660_v6 = vadd.f32 %v3026_v33, %v2988_v36  ;;  %v3078_v19 = vadd.f32 %v3077_v63, %v3039_v32  ;;  %3203 = vmatmul.bf16.gmra.mxu0 %v8416_v57  ;;  %3242 = vmatmul.bf16.gmra.mxu1 %v8417_v35 }
 0x1e6   : > { %3346 = vmatpush.bf16.msrb.mxu0 %v4550_v58  ;;  %3385 = vmatpush.bf16.msrb.mxu1 %v4742_v17  ;;  %v4526_v58 = vor.u32 %v5656_v50, %v4525_v38 }
 0x1e7   : > { %4277 = vst [vmem:[%s7668_s21] sm:$0xff] %v3078_v19  ;;  %3281 = vmatmul.bf16.gmra.mxu2 %v7486_v48 }
 0x1e8   : > { %3425 = vmatpush.bf16.msrb.mxu2 %v4910_v29 }
 0x1e9   : > { %3320 = vmatmul.bf16.gmra.mxu3 %v7488_v51 }
 0x1ea   : > { %v3116_v43 = vpop.f32.mrf.mxu2  ;;  %v3040_v60 = vpop.f32.mrf.mxu0  ;;  %3347 = vmatpush.bf16.msrb.mxu0 %v4526_v58 }
 0x1eb   : > { %v3117_v36 = vadd.f32 %v3116_v43, %v7665_v45  ;;  %v3041_v32 = vadd.f32 %v3040_v60, %v7610_v41  ;;  %v3079_v63 = vpop.f32.mrf.mxu1  ;;  %v5102_v41 = vor.u32 %v5800_v61, %v5101_v3 }
 0x1ec   : > { %v3155_v33 = vpop.f32.mrf.mxu3 }
 0x1ed   : > { %v7675_v19 = vadd.f32 %v3155_v33, %v3117_v36  ;;  %v3080_v52 = vadd.f32 %v3079_v63, %v3041_v32  ;;  %3464 = vmatpush.bf16.msrb.mxu3 %v5102_v41  ;;  %v4717_v33 = vld [vmem:[#allocation7 + $0x1b8] sm:$0xf] }
 0x1ef   : > { %4283 = vst [vmem:[%s7668_s21 + $0x30] sm:$0xff] %v3080_v52  ;;  %v5704_v52 = vld [vmem:[#allocation7 + $0x1cc] sm:$0xf0] }
 0x1f0   : > { %v4718_v34 = vor.u32 %v5704_v52, %v4717_v33  ;;  %v4693_v33 = vld [vmem:[#allocation7 + $0x188] sm:$0xf] }
 0x1f2   : > { %v3118_v31 = vpop.f32.mrf.mxu2  ;;  %v3043_v43 = vpop.f32.mrf.mxu0  ;;  %3386 = vmatpush.bf16.msrb.mxu1 %v4718_v34  ;;  %v5698_v34 = vld [vmem:[#allocation7 + $0x19c] sm:$0xf0] }
 0x1f3   : > { %v3119_v18 = vadd.f32 %v3118_v31, %v7665_v45  ;;  %v3044_v60 = vadd.f32 %v3043_v43, %v7617_v40  ;;  %v3082_v17 = vpop.f32.mrf.mxu1  ;;  %v4885_v31 = vld [vmem:[#allocation7 + $0x308] sm:$0xf]  ;;  %v5746_v43 = vld [vmem:[#allocation7 + $0x31c] sm:$0xf0] }
 0x1f4   : > { %v3157_v36 = vpop.f32.mrf.mxu3  ;;  %v4886_v41 = vor.u32 %v5746_v43, %v4885_v31  ;;  %v5689_v43 = vld [vmem:[#allocation7 + $0x15c] sm:$0xf] }
 0x1f5   : > { %v7680_v32 = vadd.f32 %v3157_v36, %v3119_v18  ;;  %v3083_v63 = vadd.f32 %v3082_v17, %v3044_v60  ;;  %3208 = vmatmul.bf16.gmra.mxu0 %v7377_v28  ;;  %3247 = vmatmul.bf16.gmra.mxu1 %v7397_v23  ;;  %v4501_v18 = vld [vmem:[#allocation7 + $0x8] sm:$0xf]  ;;  %v5650_v60 = vld [vmem:[#allocation7 + $0x1c] sm:$0xf0] }
 0x1f6   : > { %3426 = vmatpush.bf16.msrb.mxu2 %v4886_v41  ;;  %v4502_v17 = vor.u32 %v5650_v60, %v4501_v18  ;;  %v5077_v36 = vld [vmem:[#allocation7 + $0x488] sm:$0xf]  ;;  %v4671_v41 = vld [vmem:[#allocation7 + $0x170] sm:$0xf0]  ;;  %v5437_v18 = vld [vmem:[#allocation7 + $0x758] sm:$0xf] }
 0x1f7   : > { %4289 = vst [vmem:[%s7668_s21 + $0x60] sm:$0xff] %v3083_v63  ;;  %3286 = vmatmul.bf16.gmra.mxu2 %v7544_v20  ;;  %v5794_v63 = vld [vmem:[#allocation7 + $0x49c] sm:$0xf0] }
 0x1f8   : > { %v5078_v52 = vor.u32 %v5794_v63, %v5077_v36  ;;  %3348 = vmatpush.bf16.msrb.mxu0 %v4502_v17  ;;  %v4674_v17 = vor.u32 %v5689_v43, %v4671_v41  ;;  %v5884_v36 = vld [vmem:[#allocation7 + $0x76c] sm:$0xf0]  ;;  %v5737_v63 = vld [vmem:[#allocation7 + $0x2dc] sm:$0xf] }
 0x1f9   : > { %3325 = vmatmul.bf16.gmra.mxu3 %v7546_v5 }
 0x1fa   : > { %v3121_v40 = vpop.f32.mrf.mxu2  ;;  %v3045_v26 = vpop.f32.mrf.mxu0  ;;  %3465 = vmatpush.bf16.msrb.mxu3 %v5078_v52  ;;  %3575 = vmatpush.bf16.msra.mxu2 %v4674_v17 }
 0x1fb   : > { %v3122_v29 = vadd.f32 %v3121_v40, %v7665_v45  ;;  %v3046_v38 = vadd.f32 %v3045_v26, %v7620_v16  ;;  %v3084_v50 = vpop.f32.mrf.mxu1  ;;  %v4694_v26 = vor.u32 %v5698_v34, %v4693_v33  ;;  %v4863_v33 = vld [vmem:[#allocation7 + $0x2f0] sm:$0xf0] }
 0x1fc   : > { %v3160_v3 = vpop.f32.mrf.mxu3 }
 0x1fd   : > { %v7689_v58 = vadd.f32 %v3160_v3, %v3122_v29  ;;  %v3085_v61 = vadd.f32 %v3084_v50, %v3046_v38  ;;  %3387 = vmatpush.bf16.msrb.mxu1 %v4694_v26  ;;  %v4866_v26 = vor.u32 %v5737_v63, %v4863_v33  ;;  %v5683_v33 = vld [vmem:[#allocation7 + $0x12c] sm:$0xf] }
 0x1ff   : > { %4295 = vst [vmem:[%s7668_s21 + $0x90] sm:$0xff] %v3085_v61  ;;  %3614 = vmatpush.bf16.msra.mxu3 %v4866_v26 }
 0x202   : > { %v3123_v16 = vpop.f32.mrf.mxu2  ;;  %v3048_v40 = vpop.f32.mrf.mxu0 }
 0x203   : > { %v3124_v29 = vadd.f32 %v3123_v16, %v7665_v45  ;;  %v3049_v38 = vadd.f32 %v3048_v40, %v7627_v53  ;;  %v3087_v50 = vpop.f32.mrf.mxu1  ;;  %v5438_v40 = vor.u32 %v5884_v36, %v5437_v18 }
 0x204   : > { %v3162_v3 = vpop.f32.mrf.mxu3 }
 0x205   : > { %v7694_v61 = vadd.f32 %v3162_v3, %v3124_v29  ;;  %v3088_v31 = vadd.f32 %v3087_v50, %v3049_v38  ;;  %3213 = vmatmul.bf16.gmra.mxu0 %v7477_v21  ;;  %3252 = vmatmul.bf16.gmra.mxu1 %v7495_v47  ;;  %v5629_v3 = vld [vmem:[#allocation7 + $0x8d8] sm:$0xf] }
 0x206   : > { %3497 = vmatpush.bf16.msra.mxu0 %v5438_v40  ;;  %v5878_v40 = vld [vmem:[#allocation7 + $0x73c] sm:$0xf0] }
 0x207   : > { %4301 = vst [vmem:[%s7668_s21 + $0xc0] sm:$0xff] %v3088_v31  ;;  %3291 = vmatmul.bf16.gmra.mxu2 %v7568_v54  ;;  %v5932_v31 = vld [vmem:[#allocation7 + $0x8ec] sm:$0xf0] }
 0x208   : > { %v5630_v43 = vor.u32 %v5932_v31, %v5629_v3  ;;  %v5605_v3 = vld [vmem:[#allocation7 + $0x8a8] sm:$0xf]  ;;  %v5926_v31 = vld [vmem:[#allocation7 + $0x8bc] sm:$0xf0] }
 0x209   : > { %3330 = vmatmul.bf16.gmra.mxu3 %v7570_v8 }
 0x20a   : > { %v3126_v53 = vpop.f32.mrf.mxu2  ;;  %v3050_v60 = vpop.f32.mrf.mxu0  ;;  %3536 = vmatpush.bf16.msra.mxu1 %v5630_v43 }
 0x20b   : > { %v3127_v52 = vadd.f32 %v3126_v53, %v7665_v45  ;;  %v3051_v34 = vadd.f32 %v3050_v60, %v7630_v13  ;;  %v3089_v16 = vpop.f32.mrf.mxu1 }
 0x20c   : > { %v3165_v29 = vpop.f32.mrf.mxu3 }
 0x20d   : > { %v7703_v38 = vadd.f32 %v3165_v29, %v3127_v52  ;;  %v3090_v50 = vadd.f32 %v3089_v16, %v3051_v34  ;;  %v4647_v52 = vld [vmem:[#allocation7 + $0x140] sm:$0xf0]  ;;  %v5413_v16 = vld [vmem:[#allocation7 + $0x728] sm:$0xf] }
 0x20e   : > { %v4650_v34 = vor.u32 %v5683_v33, %v4647_v52  ;;  %v5414_v26 = vor.u32 %v5878_v40, %v5413_v16  ;;  %v4839_v29 = vld [vmem:[#allocation7 + $0x2c0] sm:$0xf0]  ;;  %v5677_v52 = vld [vmem:[#allocation7 + $0xfc] sm:$0xf]  ;;  %v5389_v40 = vld [vmem:[#allocation7 + $0x6f8] sm:$0xf] }
 0x20f   : > { %4307 = vst [vmem:[%s7668_s21 + $0xf0] sm:$0xff] %v3090_v50 }
 0x210   : > { %3576 = vmatpush.bf16.msra.mxu2 %v4650_v34  ;;  %3498 = vmatpush.bf16.msra.mxu0 %v5414_v26  ;;  %v4623_v34 = vld [vmem:[#allocation7 + $0x110] sm:$0xf0] }
 0x211   : > { %v4626_v16 = vor.u32 %v5677_v52, %v4623_v34 }
 0x212   : > { %v3128_v41 = vpop.f32.mrf.mxu2  ;;  %v3053_v53 = vpop.f32.mrf.mxu0 }
 0x213   : > { %v3129_v13 = vadd.f32 %v3128_v41, %v7665_v45  ;;  %v3054_v18 = vadd.f32 %v3053_v53, %v7637_v37  ;;  %v3092_v60 = vpop.f32.mrf.mxu1  ;;  %v5731_v37 = vld [vmem:[#allocation7 + $0x2ac] sm:$0xf]  ;;  %v5606_v53 = vor.u32 %v5926_v31, %v5605_v3  ;;  %v4815_v3 = vld [vmem:[#allocation7 + $0x290] sm:$0xf0] }
 0x214   : > { %v3167_v36 = vpop.f32.mrf.mxu3  ;;  %v4842_v50 = vor.u32 %v5731_v37, %v4839_v29  ;;  %v5872_v37 = vld [vmem:[#allocation7 + $0x70c] sm:$0xf0]  ;;  %v5725_v29 = vld [vmem:[#allocation7 + $0x27c] sm:$0xf]  ;;  %3577 = vmatpush.bf16.msra.mxu2 %v4626_v16 }
 0x215   : > { %v7708_v17 = vadd.f32 %v3167_v36, %v3129_v13  ;;  %v3093_v63 = vadd.f32 %v3092_v60, %v3054_v18  ;;  %3218 = vmatmul.bf16.gmra.mxu0 %v7550_v44  ;;  %3257 = vmatmul.bf16.gmra.mxu1 %v7553_v14  ;;  %v5390_v26 = vor.u32 %v5872_v37, %v5389_v40 }
 0x216   : > { %3615 = vmatpush.bf16.msra.mxu3 %v4842_v50  ;;  %3537 = vmatpush.bf16.msra.mxu1 %v5606_v53 }
 0x217   : > { %4313 = vst [vmem:[%s7668_s21 + $0x120] sm:$0xff] %v3093_v63  ;;  %3296 = vmatmul.bf16.gmra.mxu2 %v7587_v0  ;;  %3499 = vmatpush.bf16.msra.mxu0 %v5390_v26 }
 0x219   : > { %3335 = vmatmul.bf16.gmra.mxu3 %v7589_v42 }
 0x21a   : > { %v3131_v43 = vpop.f32.mrf.mxu2  ;;  %v3055_v41 = vpop.f32.mrf.mxu0 }
 0x21b   : > { %v3132_v13 = vadd.f32 %v3131_v43, %v7665_v45  ;;  %v3056_v18 = vadd.f32 %v3055_v41, %v7640_v4  ;;  %v3094_v60 = vpop.f32.mrf.mxu1  ;;  %v4818_v4 = vor.u32 %v5725_v29, %v4815_v3 }
 0x21c   : > { %v3170_v36 = vpop.f32.mrf.mxu3 }
 0x21d   : > { %v7717_v63 = vadd.f32 %v3170_v36, %v3132_v13  ;;  %v3095_v33 = vadd.f32 %v3094_v60, %v3056_v18  ;;  %3616 = vmatpush.bf16.msra.mxu3 %v4818_v4  ;;  %v5581_v36 = vld [vmem:[#allocation7 + $0x878] sm:$0xf] }
 0x21f   : > { %4319 = vst [vmem:[%s7668_s21 + $0x150] sm:$0xff] %v3095_v33  ;;  %v5920_v33 = vld [vmem:[#allocation7 + $0x88c] sm:$0xf0] }
 0x220   : > { %v5582_v52 = vor.u32 %v5920_v33, %v5581_v36  ;;  %v5557_v36 = vld [vmem:[#allocation7 + $0x848] sm:$0xf]  ;;  %v5914_v33 = vld [vmem:[#allocation7 + $0x85c] sm:$0xf0] }
 0x222   : > { %v3133_v31 = vpop.f32.mrf.mxu2  ;;  %v3058_v43 = vpop.f32.mrf.mxu0  ;;  %3538 = vmatpush.bf16.msra.mxu1 %v5582_v52 }
 0x223   : > { %v3134_v50 = vadd.f32 %v3133_v31, %v7665_v45  ;;  %v3059_v41 = vadd.f32 %v3058_v43, %v7647_v9  ;;  %v3097_v53 = vpop.f32.mrf.mxu1  ;;  %v5671_v31 = vld [vmem:[#allocation7 + $0xcc] sm:$0xf]  ;;  %v4599_v43 = vld [vmem:[#allocation7 + $0xe0] sm:$0xf0] }
 0x224   : > { %v3172_v13 = vpop.f32.mrf.mxu3  ;;  %v4602_v4 = vor.u32 %v5671_v31, %v4599_v43  ;;  %v5665_v43 = vld [vmem:[#allocation7 + $0x9c] sm:$0xf] }
 0x225   : > { %v7722_v18 = vadd.f32 %v3172_v13, %v3134_v50  ;;  %v3098_v60 = vadd.f32 %v3097_v53, %v3059_v41  ;;  %3349 = vmatmul.bf16.vlgmr.msrb.gmra.mxu0 %v7072_v56  ;;  %3388 = vmatmul.bf16.vlgmr.msrb.gmra.mxu1 %v8410_v49  ;;  %v5365_v50 = vld [vmem:[#allocation7 + $0x6c8] sm:$0xf]  ;;  %v5866_v41 = vld [vmem:[#allocation7 + $0x6dc] sm:$0xf0]  ;;  %v5719_v53 = vld [vmem:[#allocation7 + $0x24c] sm:$0xf] }
 0x226   : > { %v5366_v13 = vor.u32 %v5866_v41, %v5365_v50  ;;  %3578 = vmatpush.bf16.msra.mxu2 %v4602_v4  ;;  %v4575_v4 = vld [vmem:[#allocation7 + $0xb0] sm:$0xf0] }
 0x227   : > { %4325 = vst [vmem:[%s7668_s21 + $0x180] sm:$0xff] %v3098_v60  ;;  %3427 = vmatmul.bf16.vlgmr.msrb.gmra.mxu2 %v8413_v62  ;;  %v4791_v60 = vld [vmem:[#allocation7 + $0x260] sm:$0xf0] }
 0x228   : > { %3500 = vmatpush.bf16.msra.mxu0 %v5366_v13  ;;  %v5860_v13 = vld [vmem:[#allocation7 + $0x6ac] sm:$0xf0] }
 0x229   : > { %3466 = vmatmul.bf16.vlgmr.msrb.gmra.mxu3 %v8414_v1 }
 0x22a   : > { %v3136_v9 = vpop.f32.mrf.mxu2  ;;  %v3060_v34 = vpop.f32.mrf.mxu0 }
 0x22b   : > { %v3137_v16 = vadd.f32 %v3136_v9, %v7665_v45  ;;  %v3061_v40 = vadd.f32 %v3060_v34, %v7650_v39  ;;  %v3099_v37 = vpop.f32.mrf.mxu1  ;;  %v4794_v39 = vor.u32 %v5719_v53, %v4791_v60  ;;  %v5558_v34 = vor.u32 %v5914_v33, %v5557_v36  ;;  %v5713_v60 = vld [vmem:[#allocation7 + $0x21c] sm:$0xf]  ;;  %v4767_v36 = vld [vmem:[#allocation7 + $0x230] sm:$0xf0] }
 0x22c   : > { %v3175_v29 = vpop.f32.mrf.mxu3  ;;  %v4578_v53 = vor.u32 %v5665_v43, %v4575_v4 }
 0x22d   : > { %v7731_v26 = vadd.f32 %v3175_v29, %v3137_v16  ;;  %v3100_v3 = vadd.f32 %v3099_v37, %v3061_v40  ;;  %3617 = vmatpush.bf16.msra.mxu3 %v4794_v39  ;;  %3539 = vmatpush.bf16.msra.mxu1 %v5558_v34  ;;  %v4770_v34 = vor.u32 %v5713_v60, %v4767_v36  ;;  %v4551_v60 = vld [vmem:[#allocation7 + $0x80] sm:$0xf0]  ;;  %v5317_v36 = vld [vmem:[#allocation7 + $0x668] sm:$0xf] }
 0x22e   : > { %3579 = vmatpush.bf16.msra.mxu2 %v4578_v53 }
 0x22f   : > { %4331 = vst [vmem:[%s7668_s21 + $0x1b0] sm:$0xff] %v3100_v3 }
 0x231   : > { %3618 = vmatpush.bf16.msra.mxu3 %v4770_v34 }
 0x232   : > { %v3138_v52 = vpop.f32.mrf.mxu2  ;;  %v3063_v9 = vpop.f32.mrf.mxu0 }
 0x233   : > { %v3139_v16 = vadd.f32 %v3138_v52, %v7665_v45  ;;  %v3064_v40 = vadd.f32 %v3063_v9, %v7657_v22  ;;  %v3102_v37 = vpop.f32.mrf.mxu1  ;;  %v5341_v22 = vld [vmem:[#allocation7 + $0x698] sm:$0xf] }
 0x234   : > { %v3177_v29 = vpop.f32.mrf.mxu3  ;;  %v5342_v39 = vor.u32 %v5860_v13, %v5341_v22  ;;  %v5659_v13 = vld [vmem:[#allocation7 + $0x6c] sm:$0xf] }
 0x235   : > { %v7736_v3 = vadd.f32 %v3177_v29, %v3139_v16  ;;  %v3103_v31 = vadd.f32 %v3102_v37, %v3064_v40  ;;  %3354 = vmatmul.bf16.gmra.mxu0 %v8411_v10  ;;  %3393 = vmatmul.bf16.gmra.mxu1 %v8412_v15  ;;  %v5533_v29 = vld [vmem:[#allocation7 + $0x818] sm:$0xf] }
 0x236   : > { %3501 = vmatpush.bf16.msra.mxu0 %v5342_v39  ;;  %v4743_v39 = vld [vmem:[#allocation7 + $0x200] sm:$0xf0] }
 0x237   : > { %4337 = vst [vmem:[%s7668_s21 + $0x1e0] sm:$0xff] %v3103_v31  ;;  %3432 = vmatmul.bf16.gmra.mxu2 %v7191_v7  ;;  %v5908_v31 = vld [vmem:[#allocation7 + $0x82c] sm:$0xf0] }
 0x238   : > { %v5534_v43 = vor.u32 %v5908_v31, %v5533_v29 }
 0x239   : > { %3471 = vmatmul.bf16.gmra.mxu3 %v8415_v24 }
 0x23a   : > { %v3141_v50 = vpop.f32.mrf.mxu2  ;;  %v3065_v41 = vpop.f32.mrf.mxu0  ;;  %3540 = vmatpush.bf16.msra.mxu1 %v5534_v43 }
 0x23b   : > { %v3142_v33 = vadd.f32 %v3141_v50, %v7665_v45  ;;  %v3066_v52 = vadd.f32 %v3065_v41, %v7660_v6  ;;  %v3104_v9 = vpop.f32.mrf.mxu1 }
 0x23c   : > { %v3180_v16 = vpop.f32.mrf.mxu3 }
 0x23d   : > { %v7745_v40 = vadd.f32 %v3180_v16, %v3142_v33  ;;  %v3105_v37 = vadd.f32 %v3104_v9, %v3066_v52  ;;  %v4554_v33 = vor.u32 %v5659_v13, %v4551_v60  ;;  %v5854_v52 = vld [vmem:[#allocation7 + $0x67c] sm:$0xf0]  ;;  %v5707_v9 = vld [vmem:[#allocation7 + $0x1ec] sm:$0xf]  ;;  %v4527_v13 = vld [vmem:[#allocation7 + $0x50] sm:$0xf0] }
 0x23e   : > { %v5318_v34 = vor.u32 %v5854_v52, %v5317_v36  ;;  %v4746_v16 = vor.u32 %v5707_v9, %v4743_v39  ;;  %v5293_v36 = vld [vmem:[#allocation7 + $0x638] sm:$0xf]  ;;  %v5848_v52 = vld [vmem:[#allocation7 + $0x64c] sm:$0xf0]  ;;  %v5701_v9 = vld [vmem:[#allocation7 + $0x1bc] sm:$0xf] }
 0x23f   : > { %4343 = vst [vmem:[%s7668_s21 + $0x210] sm:$0xff] %v3105_v37  ;;  %3580 = vmatpush.bf16.msra.mxu2 %v4554_v33  ;;  %v5294_v33 = vor.u32 %v5848_v52, %v5293_v36 }
 0x240   : > { %3502 = vmatpush.bf16.msra.mxu0 %v5318_v34  ;;  %3619 = vmatpush.bf16.msra.mxu3 %v4746_v16 }
 0x242   : > { %v3143_v4 = vpop.f32.mrf.mxu2  ;;  %v3194_v24 = vpop.f32.mrf.mxu0 }
 0x243   : > { %v3144_v50 = vadd.f32 %v3143_v4, %v7665_v45  ;;  %v3233_v6 = vpop.f32.mrf.mxu1  ;;  %v3195_v53 = vadd.f32 %v3194_v24, %v7675_v19  ;;  %v5509_v24 = vld [vmem:[#allocation7 + $0x7e8] sm:$0xf]  ;;  %v5902_v19 = vld [vmem:[#allocation7 + $0x7fc] sm:$0xf0] }
 0x244   : > { %v3182_v41 = vpop.f32.mrf.mxu3  ;;  %v5510_v31 = vor.u32 %v5902_v19, %v5509_v24  ;;  %v4719_v24 = vld [vmem:[#allocation7 + $0x1d0] sm:$0xf0]  ;;  %3503 = vmatpush.bf16.msra.mxu0 %v5294_v33 }
 0x245   : > { %v7749_v22 = vadd.f32 %v3182_v41, %v3144_v50  ;;  %3359 = vmatmul.bf16.gmra.mxu0 %v7264_v27  ;;  %3398 = vmatmul.bf16.gmra.mxu1 %v7267_v2  ;;  %v3234_v45 = vadd.f32 %v3233_v6, %v3195_v53  ;;  %v5653_v53 = vld [vmem:[#allocation7 + $0x3c] sm:$0xf]  ;;  %v4722_v34 = vor.u32 %v5701_v9, %v4719_v24  ;;  %v5647_v9 = vld [vmem:[#allocation7 + $0xc] sm:$0xf]  ;;  %v5269_v24 = vld [vmem:[#allocation7 + $0x608] sm:$0xf] }
 0x246   : > { %3541 = vmatpush.bf16.msra.mxu1 %v5510_v31  ;;  %v4530_v60 = vor.u32 %v5653_v53, %v4527_v13 }
 0x247   : > { %3437 = vmatmul.bf16.gmra.mxu2 %v8416_v57  ;;  %3620 = vmatpush.bf16.msra.mxu3 %v4722_v34 }
 0x248   : > { %3581 = vmatpush.bf16.msra.mxu2 %v4530_v60 }
 0x249   : > { %3476 = vmatmul.bf16.gmra.mxu3 %v8417_v35 }
 0x24a   : > { %v3272_v37 = vpop.f32.mrf.mxu2  ;;  %v3196_v29 = vpop.f32.mrf.mxu0 }
 0x24b   : > { %v3273_v43 = vadd.f32 %v3272_v37, %v3234_v45  ;;  %v3235_v4 = vpop.f32.mrf.mxu1  ;;  %v3197_v6 = vadd.f32 %v3196_v29, %v7680_v32 }
 0x24c   : > { %v3311_v50 = vpop.f32.mrf.mxu3 }
 0x24d   : > { %v3312_v41 = vadd.f32 %v3311_v50, %v3273_v43  ;;  %v3236_v39 = vadd.f32 %v3235_v4, %v3197_v6  ;;  %v5485_v43 = vld [vmem:[#allocation7 + $0x7b8] sm:$0xf]  ;;  %v5896_v4 = vld [vmem:[#allocation7 + $0x7cc] sm:$0xf0] }
 0x24e   : > { %v5486_v50 = vor.u32 %v5896_v4, %v5485_v43 }
 0x24f   : > { %4278 = vst [vmem:[%s7668_s21 + $0x8] sm:$0xff] %v3312_v41 }
 0x250   : > { %3542 = vmatpush.bf16.msra.mxu1 %v5486_v50 }
 0x252   : > { %v3274_v45 = vpop.f32.mrf.mxu2  ;;  %v3199_v19 = vpop.f32.mrf.mxu0 }
 0x253   : > { %v3275_v16 = vadd.f32 %v3274_v45, %v3236_v39  ;;  %v3238_v37 = vpop.f32.mrf.mxu1  ;;  %v3200_v29 = vadd.f32 %v3199_v19, %v7689_v58  ;;  %v4503_v39 = vld [vmem:[#allocation7 + $0x20] sm:$0xf0]  ;;  %v5842_v45 = vld [vmem:[#allocation7 + $0x61c] sm:$0xf0]  ;;  %v5695_v19 = vld [vmem:[#allocation7 + $0x18c] sm:$0xf] }
 0x254   : > { %v3313_v31 = vpop.f32.mrf.mxu3  ;;  %v4506_v33 = vor.u32 %v5647_v9, %v4503_v39 }
 0x255   : > { %v3314_v32 = vadd.f32 %v3313_v31, %v3275_v16  ;;  %3364 = vmatmul.bf16.gmra.mxu0 %v7348_v25  ;;  %3403 = vmatmul.bf16.gmra.mxu1 %v7361_v30  ;;  %v3239_v41 = vadd.f32 %v3238_v37, %v3200_v29  ;;  %v5270_v16 = vor.u32 %v5842_v45, %v5269_v24  ;;  %v4695_v37 = vld [vmem:[#allocation7 + $0x1a0] sm:$0xf0]  ;;  %v5461_v31 = vld [vmem:[#allocation7 + $0x788] sm:$0xf]  ;;  %v5055_v24 = vld [vmem:[#allocation7 + $0x470] sm:$0xf0] }
 0x256   : > { %3582 = vmatpush.bf16.msra.mxu2 %v4506_v33  ;;  %v4698_v4 = vor.u32 %v5695_v19, %v4695_v37  ;;  %v5929_v45 = vld [vmem:[#allocation7 + $0x8dc] sm:$0xf] }
 0x257   : > { %4284 = vst [vmem:[%s7668_s21 + $0x38] sm:$0xff] %v3314_v32  ;;  %3442 = vmatmul.bf16.gmra.mxu2 %v7377_v28  ;;  %v5890_v32 = vld [vmem:[#allocation7 + $0x79c] sm:$0xf0]  ;;  %3504 = vmatpush.bf16.msra.mxu0 %v5270_v16 }
 0x258   : > { %v5462_v50 = vor.u32 %v5890_v32, %v5461_v31  ;;  %3621 = vmatpush.bf16.msra.mxu3 %v4698_v4  ;;  %v5247_v4 = vld [vmem:[#allocation7 + $0x5f0] sm:$0xf0] }
 0x259   : > { %3481 = vmatmul.bf16.gmra.mxu3 %v7397_v23 }
 0x25a   : > { %v3277_v6 = vpop.f32.mrf.mxu2  ;;  %v3201_v53 = vpop.f32.mrf.mxu0  ;;  %3543 = vmatpush.bf16.msra.mxu1 %v5462_v50 }
 0x25b   : > { %v3278_v13 = vadd.f32 %v3277_v6, %v3239_v41  ;;  %v3240_v60 = vpop.f32.mrf.mxu1  ;;  %v3202_v52 = vadd.f32 %v3201_v53, %v7694_v61 }
 0x25c   : > { %v3316_v58 = vpop.f32.mrf.mxu3 }
 0x25d   : > { %v3317_v36 = vadd.f32 %v3316_v58, %v3278_v13  ;;  %v3241_v34 = vadd.f32 %v3240_v60, %v3202_v52  ;;  %v5881_v58 = vld [vmem:[#allocation7 + $0x75c] sm:$0xf] }
 0x25e   : > { %v5785_v52 = vld [vmem:[#allocation7 + $0x45c] sm:$0xf] }
 0x25f   : > { %4290 = vst [vmem:[%s7668_s21 + $0x68] sm:$0xff] %v3317_v36  ;;  %v5439_v36 = vld [vmem:[#allocation7 + $0x770] sm:$0xf0]  ;;  %v5058_v16 = vor.u32 %v5785_v52, %v5055_v24  ;;  %v5415_v52 = vld [vmem:[#allocation7 + $0x740] sm:$0xf0] }
 0x260   : > { %v5442_v33 = vor.u32 %v5881_v58, %v5439_v36  ;;  %v5923_v24 = vld [vmem:[#allocation7 + $0x8ac] sm:$0xf] }
 0x261   : > { %3653 = vmatpush.bf16.msrb.mxu0 %v5058_v16 }
 0x262   : > { %v3279_v29 = vpop.f32.mrf.mxu2  ;;  %v3204_v43 = vpop.f32.mrf.mxu0  ;;  %3731 = vmatpush.bf16.msrb.mxu2 %v5442_v33  ;;  %v5031_v33 = vld [vmem:[#allocation7 + $0x440] sm:$0xf0] }
 0x263   : > { %v3280_v41 = vadd.f32 %v3279_v29, %v3241_v34  ;;  %v3243_v61 = vpop.f32.mrf.mxu1  ;;  %v3205_v13 = vadd.f32 %v3204_v43, %v7703_v38  ;;  %v5631_v38 = vld [vmem:[#allocation7 + $0x8f0] sm:$0xf0]  ;;  %v5833_v43 = vld [vmem:[#allocation7 + $0x5dc] sm:$0xf] }
 0x264   : > { %v3318_v6 = vpop.f32.mrf.mxu3  ;;  %v5634_v37 = vor.u32 %v5929_v45, %v5631_v38  ;;  %v5250_v50 = vor.u32 %v5833_v43, %v5247_v4 }
 0x265   : > { %v3319_v53 = vadd.f32 %v3318_v6, %v3280_v41  ;;  %3369 = vmatmul.bf16.gmra.mxu0 %v7444_v55  ;;  %3408 = vmatmul.bf16.gmra.mxu1 %v7462_v11  ;;  %v3244_v60 = vadd.f32 %v3243_v61, %v3205_v13 }
 0x266   : > { %3770 = vmatpush.bf16.msrb.mxu3 %v5634_v37  ;;  %3692 = vmatpush.bf16.msrb.mxu1 %v5250_v50 }
 0x267   : > { %4296 = vst [vmem:[%s7668_s21 + $0x98] sm:$0xff] %v3319_v53  ;;  %3447 = vmatmul.bf16.gmra.mxu2 %v7477_v21 }
 0x269   : > { %3486 = vmatmul.bf16.gmra.mxu3 %v7495_v47 }
 0x26a   : > { %v3282_v9 = vpop.f32.mrf.mxu2  ;;  %v3206_v39 = vpop.f32.mrf.mxu0 }
 0x26b   : > { %v3283_v19 = vadd.f32 %v3282_v9, %v3244_v60  ;;  %v3245_v34 = vpop.f32.mrf.mxu1  ;;  %v3207_v29 = vadd.f32 %v3206_v39, %v7708_v17  ;;  %v5875_v17 = vld [vmem:[#allocation7 + $0x72c] sm:$0xf] }
 0x26c   : > { %v3321_v31 = vpop.f32.mrf.mxu3  ;;  %v5418_v9 = vor.u32 %v5875_v17, %v5415_v52  ;;  %v5779_v39 = vld [vmem:[#allocation7 + $0x42c] sm:$0xf]  ;;  %v5583_v52 = vld [vmem:[#allocation7 + $0x890] sm:$0xf0] }
 0x26d   : > { %v3322_v32 = vadd.f32 %v3321_v31, %v3283_v19  ;;  %v3246_v41 = vadd.f32 %v3245_v34, %v3207_v29  ;;  %v5034_v38 = vor.u32 %v5779_v39, %v5031_v33  ;;  %v5607_v19 = vld [vmem:[#allocation7 + $0x8c0] sm:$0xf0] }
 0x26e   : > { %v5223_v34 = vld [vmem:[#allocation7 + $0x5c0] sm:$0xf0]  ;;  %3732 = vmatpush.bf16.msrb.mxu2 %v5418_v9  ;;  %v5610_v31 = vor.u32 %v5923_v24, %v5607_v19 }
 0x26f   : > { %4302 = vst [vmem:[%s7668_s21 + $0xc8] sm:$0xff] %v3322_v32  ;;  %3654 = vmatpush.bf16.msrb.mxu0 %v5034_v38 }
 0x270   : > { %3771 = vmatpush.bf16.msrb.mxu3 %v5610_v31 }
 0x272   : > { %v3284_v61 = vpop.f32.mrf.mxu2  ;;  %v3209_v6 = vpop.f32.mrf.mxu0 }
 0x273   : > { %v3285_v53 = vadd.f32 %v3284_v61, %v3246_v41  ;;  %v3248_v13 = vpop.f32.mrf.mxu1  ;;  %v3210_v36 = vadd.f32 %v3209_v6, %v7717_v63  ;;  %v5827_v63 = vld [vmem:[#allocation7 + $0x5ac] sm:$0xf]  ;;  %v5869_v61 = vld [vmem:[#allocation7 + $0x6fc] sm:$0xf]  ;;  %v5391_v6 = vld [vmem:[#allocation7 + $0x710] sm:$0xf0] }
 0x274   : > { %v3323_v60 = vpop.f32.mrf.mxu3  ;;  %v5226_v32 = vor.u32 %v5827_v63, %v5223_v34  ;;  %v8418_v63 = vld [vmem:[#allocation29_spill] sm:$0xff]  ;;  %v5821_v34 = vld [vmem:[#allocation7 + $0x57c] sm:$0xf] }
 0x275   : > { %v3324_v58 = vadd.f32 %v3323_v60, %v3285_v53  ;;  %3374 = vmatmul.bf16.gmra.mxu0 %v7538_v46  ;;  %3413 = vmatmul.bf16.gmra.mxu1 %v7540_v59  ;;  %v3249_v45 = vadd.f32 %v3248_v13, %v3210_v36  ;;  %v5394_v53 = vor.u32 %v5869_v61, %v5391_v6  ;;  %v5773_v13 = vld [vmem:[#allocation7 + $0x3fc] sm:$0xf]  ;;  %v5007_v60 = vld [vmem:[#allocation7 + $0x410] sm:$0xf0]  ;;  %v5863_v61 = vld [vmem:[#allocation7 + $0x6cc] sm:$0xf] }
 0x276   : > { %3693 = vmatpush.bf16.msrb.mxu1 %v5226_v32  ;;  %v5010_v17 = vor.u32 %v5773_v13, %v5007_v60  ;;  %v5367_v6 = vld [vmem:[#allocation7 + $0x6e0] sm:$0xf0] }
 0x277   : > { %4308 = vst [vmem:[%s7668_s21 + $0xf8] sm:$0xff] %v3324_v58  ;;  %3452 = vmatmul.bf16.gmra.mxu2 %v7550_v44  ;;  %v5917_v58 = vld [vmem:[#allocation7 + $0x87c] sm:$0xf]  ;;  %v5370_v13 = vor.u32 %v5863_v61, %v5367_v6  ;;  %v4983_v60 = vld [vmem:[#allocation7 + $0x3e0] sm:$0xf0] }
 0x278   : > { %3733 = vmatpush.bf16.msrb.mxu2 %v5394_v53  ;;  %v5586_v33 = vor.u32 %v5917_v58, %v5583_v52  ;;  %3655 = vmatpush.bf16.msrb.mxu0 %v5010_v17  ;;  %v5767_v53 = vld [vmem:[#allocation7 + $0x3cc] sm:$0xf]  ;;  %v4959_v61 = vld [vmem:[#allocation7 + $0x3b0] sm:$0xf0]  ;;  %v5905_v6 = vld [vmem:[#allocation7 + $0x81c] sm:$0xf] }
 0x279   : > { %3491 = vmatmul.bf16.gmra.mxu3 %v7553_v14  ;;  %v5911_v58 = vld [vmem:[#allocation7 + $0x84c] sm:$0xf]  ;;  %v4986_v17 = vor.u32 %v5767_v53, %v4983_v60 }
 0x27a   : > { %v3287_v16 = vpop.f32.mrf.mxu2  ;;  %v3211_v37 = vpop.f32.mrf.mxu0  ;;  %3772 = vmatpush.bf16.msrb.mxu3 %v5586_v33 }
 0x27b   : > { %v3288_v29 = vadd.f32 %v3287_v16, %v3249_v45  ;;  %v3250_v43 = vpop.f32.mrf.mxu1  ;;  %v3212_v41 = vadd.f32 %v3211_v37, %v7722_v18  ;;  %v5199_v16 = vld [vmem:[#allocation7 + $0x590] sm:$0xf0] }
 0x27c   : > { %v3326_v4 = vpop.f32.mrf.mxu3  ;;  %v5202_v37 = vor.u32 %v5821_v34, %v5199_v16  ;;  %3734 = vmatpush.bf16.msrb.mxu2 %v5370_v13  ;;  %3656 = vmatpush.bf16.msrb.mxu0 %v4986_v17 }
 0x27d   : > { %v3327_v50 = vadd.f32 %v3326_v4, %v3288_v29  ;;  %v3251_v36 = vadd.f32 %v3250_v43, %v3212_v41 }
 0x27e   : > { %3694 = vmatpush.bf16.msrb.mxu1 %v5202_v37  ;;  %v8419_v37 = vld [vmem:[#allocation30_spill] sm:$0xff] }
 0x27f   : > { %4314 = vst [vmem:[%s7668_s21 + $0x128] sm:$0xff] %v3327_v50 }
 0x282   : > { %v3289_v9 = vpop.f32.mrf.mxu2  ;;  %v3214_v39 = vpop.f32.mrf.mxu0 }
 0x283   : > { %v3290_v24 = vadd.f32 %v3289_v9, %v3251_v36  ;;  %v3253_v45 = vpop.f32.mrf.mxu1  ;;  %v3215_v19 = vadd.f32 %v3214_v39, %v7731_v26  ;;  %v5559_v36 = vld [vmem:[#allocation7 + $0x860] sm:$0xf0]  ;;  %v5815_v9 = vld [vmem:[#allocation7 + $0x54c] sm:$0xf] }
 0x284   : > { %v3328_v38 = vpop.f32.mrf.mxu3  ;;  %v5562_v52 = vor.u32 %v5911_v58, %v5559_v36  ;;  %v5175_v39 = vld [vmem:[#allocation7 + $0x560] sm:$0xf0] }
 0x285   : > { %v3329_v18 = vadd.f32 %v3328_v38, %v3290_v24  ;;  %3505 = vmatmul.bf16.vlgmr.msra.gmra.mxu0 %v7424_v12  ;;  %3544 = vmatmul.bf16.vlgmr.msra.gmra.mxu1 %v8418_v63  ;;  %v3254_v31 = vadd.f32 %v3253_v45, %v3215_v19  ;;  %v5178_v33 = vor.u32 %v5815_v9, %v5175_v39  ;;  %v5809_v9 = vld [vmem:[#allocation7 + $0x51c] sm:$0xf]  ;;  %v5151_v39 = vld [vmem:[#allocation7 + $0x530] sm:$0xf0] }
 0x286   : > { %3773 = vmatpush.bf16.msrb.mxu3 %v5562_v52 }
 0x287   : > { %4320 = vst [vmem:[%s7668_s21 + $0x158] sm:$0xff] %v3329_v18  ;;  %3583 = vmatmul.bf16.vlgmr.msra.gmra.mxu2 %v7072_v56  ;;  %3695 = vmatpush.bf16.msrb.mxu1 %v5178_v33  ;;  %v5154_v33 = vor.u32 %v5809_v9, %v5151_v39 }
 0x289   : > { %3622 = vmatmul.bf16.vlgmr.msra.gmra.mxu3 %v8410_v49 }
 0x28a   : > { %v3292_v32 = vpop.f32.mrf.mxu2  ;;  %v3216_v29 = vpop.f32.mrf.mxu0 }
 0x28b   : > { %v3293_v43 = vadd.f32 %v3292_v32, %v3254_v31  ;;  %v3255_v4 = vpop.f32.mrf.mxu1  ;;  %v3217_v41 = vadd.f32 %v3216_v29, %v7736_v3  ;;  %v8420_v31 = vld [vmem:[#allocation34_spill] sm:$0xff]  ;;  %3696 = vmatpush.bf16.msrb.mxu1 %v5154_v33 }
 0x28c   : > { %v3331_v26 = vpop.f32.mrf.mxu3  ;;  %v5857_v29 = vld [vmem:[#allocation7 + $0x69c] sm:$0xf] }
 0x28d   : > { %v3332_v50 = vadd.f32 %v3331_v26, %v3293_v43  ;;  %v3256_v24 = vadd.f32 %v3255_v4, %v3217_v41  ;;  %v5343_v43 = vld [vmem:[#allocation7 + $0x6b0] sm:$0xf0]  ;;  %v5761_v4 = vld [vmem:[#allocation7 + $0x39c] sm:$0xf] }
 0x28e   : > { %v5346_v41 = vor.u32 %v5857_v29, %v5343_v43  ;;  %v4962_v60 = vor.u32 %v5761_v4, %v4959_v61  ;;  %v5851_v43 = vld [vmem:[#allocation7 + $0x66c] sm:$0xf]  ;;  %v5319_v4 = vld [vmem:[#allocation7 + $0x680] sm:$0xf0] }
 0x28f   : > { %4326 = vst [vmem:[%s7668_s21 + $0x188] sm:$0xff] %v3332_v50  ;;  %v5899_v61 = vld [vmem:[#allocation7 + $0x7ec] sm:$0xf] }
 0x290   : > { %3735 = vmatpush.bf16.msrb.mxu2 %v5346_v41  ;;  %3657 = vmatpush.bf16.msrb.mxu0 %v4962_v60  ;;  %v4935_v41 = vld [vmem:[#allocation7 + $0x380] sm:$0xf0] }
 0x291   : > { %v5127_v60 = vld [vmem:[#allocation7 + $0x500] sm:$0xf0] }
 0x292   : > { %v3294_v45 = vpop.f32.mrf.mxu2  ;;  %v3219_v3 = vpop.f32.mrf.mxu0 }
 0x293   : > { %v3295_v38 = vadd.f32 %v3294_v45, %v3256_v24  ;;  %v3258_v18 = vpop.f32.mrf.mxu1  ;;  %v3220_v16 = vadd.f32 %v3219_v3, %v7745_v40  ;;  %v5535_v40 = vld [vmem:[#allocation7 + $0x830] sm:$0xf0]  ;;  %v7798_v24 = vld [vmem:[#allocation8] sm:$0x3f] }
 0x294   : > { %v3333_v19 = vpop.f32.mrf.mxu3  ;;  %v5538_v58 = vor.u32 %v5905_v6, %v5535_v40  ;;  %v7801_v45 = vperm.slane %v7798_v24, 2  ;;  %v5511_v6 = vld [vmem:[#allocation7 + $0x800] sm:$0xf0] }
 0x295   : > { %v3334_v34 = vadd.f32 %v3333_v19, %v3295_v38  ;;  %3510 = vmatmul.bf16.gmra.mxu0 %v8419_v37  ;;  %3549 = vmatmul.bf16.gmra.mxu1 %v8420_v31  ;;  %v3259_v32 = vadd.f32 %v3258_v18, %v3220_v16 }
 0x296   : > { %3774 = vmatpush.bf16.msrb.mxu3 %v5538_v58 }
 0x297   : > { %4332 = vst [vmem:[%s7668_s21 + $0x1b8] sm:$0xff] %v3334_v34  ;;  %3588 = vmatmul.bf16.gmra.mxu2 %v8411_v10 }
 0x299   : > { %3627 = vmatmul.bf16.gmra.mxu3 %v8412_v15 }
 0x29a   : > { %v3297_v26 = vpop.f32.mrf.mxu2  ;;  %v3221_v50 = vpop.f32.mrf.mxu0 }
 0x29b   : > { %v3298_v53 = vadd.f32 %v3297_v26, %v3259_v32  ;;  %v3260_v13 = vpop.f32.mrf.mxu1  ;;  %v3222_v52 = vadd.f32 %v3221_v50, %v7749_v22  ;;  %v5755_v26 = vld [vmem:[#allocation7 + $0x36c] sm:$0xf]  ;;  %v5322_v50 = vor.u32 %v5851_v43, %v5319_v4  ;;  %v5487_v43 = vld [vmem:[#allocation7 + $0x7d0] sm:$0xf0] }
 0x29c   : > { %v3336_v36 = vpop.f32.mrf.mxu3  ;;  %v4938_v40 = vor.u32 %v5755_v26, %v4935_v41 }
 0x29d   : > { %v3337_v17 = vadd.f32 %v3336_v36, %v3298_v53  ;;  %v3261_v3 = vadd.f32 %v3260_v13, %v3222_v52  ;;  %v5514_v53 = vor.u32 %v5899_v61, %v5511_v6  ;;  %3736 = vmatpush.bf16.msrb.mxu2 %v5322_v50  ;;  %v5803_v13 = vld [vmem:[#allocation7 + $0x4ec] sm:$0xf] }
 0x29e   : > { %3658 = vmatpush.bf16.msrb.mxu0 %v4938_v40 }
 0x29f   : > { %4338 = vst [vmem:[%s7668_s21 + $0x1e8] sm:$0xff] %v3337_v17  ;;  %3775 = vmatpush.bf16.msrb.mxu3 %v5514_v53  ;;  %v5130_v17 = vor.u32 %v5803_v13, %v5127_v60  ;;  %v5797_v60 = vld [vmem:[#allocation7 + $0x4bc] sm:$0xf] }
 0x2a1   : > { %3697 = vmatpush.bf16.msrb.mxu1 %v5130_v17 }
 0x2a2   : > { %v3299_v38 = vpop.f32.mrf.mxu2  ;;  %v3350_v18 = vpop.f32.mrf.mxu0 }
 0x2a3   : > { %v3300_v19 = vadd.f32 %v3299_v38, %v3261_v3  ;;  %v3351_v34 = vadd.f32 %v3350_v18, %v7801_v45  ;;  %v3389_v22 = vpop.f32.mrf.mxu1  ;;  %v5845_v18 = vld [vmem:[#allocation7 + $0x63c] sm:$0xf] }
 0x2a4   : > { %v3338_v16 = vpop.f32.mrf.mxu3 }
 0x2a5   : > { %v3339_v32 = vadd.f32 %v3338_v16, %v3300_v19  ;;  %v3390_v29 = vadd.f32 %v3389_v22, %v3351_v34  ;;  %3515 = vmatmul.bf16.gmra.mxu0 %v7486_v48  ;;  %3554 = vmatmul.bf16.gmra.mxu1 %v7488_v51  ;;  %v5295_v19 = vld [vmem:[#allocation7 + $0x650] sm:$0xf0]  ;;  %v5749_v34 = vld [vmem:[#allocation7 + $0x33c] sm:$0xf] }
 0x2a6   : > { %v5298_v22 = vor.u32 %v5845_v18, %v5295_v19  ;;  %v4911_v16 = vld [vmem:[#allocation7 + $0x350] sm:$0xf0] }
 0x2a7   : > { %4344 = vst [vmem:[%s7668_s21 + $0x218] sm:$0xff] %v3339_v32  ;;  %3593 = vmatmul.bf16.gmra.mxu2 %v7264_v27  ;;  %v5893_v32 = vld [vmem:[#allocation7 + $0x7bc] sm:$0xf]  ;;  %v4914_v4 = vor.u32 %v5749_v34, %v4911_v16  ;;  %v5839_v34 = vld [vmem:[#allocation7 + $0x60c] sm:$0xf] }
 0x2a8   : > { %v5490_v26 = vor.u32 %v5893_v32, %v5487_v43  ;;  %3737 = vmatpush.bf16.msrb.mxu2 %v5298_v22  ;;  %v5271_v22 = vld [vmem:[#allocation7 + $0x620] sm:$0xf0]  ;;  %v5743_v16 = vld [vmem:[#allocation7 + $0x30c] sm:$0xf] }
 0x2a9   : > { %3632 = vmatmul.bf16.gmra.mxu3 %v7267_v2  ;;  %3659 = vmatpush.bf16.msrb.mxu0 %v4914_v4  ;;  %v5274_v32 = vor.u32 %v5839_v34, %v5271_v22  ;;  %v4887_v43 = vld [vmem:[#allocation7 + $0x320] sm:$0xf0]  ;;  %v5887_v4 = vld [vmem:[#allocation7 + $0x78c] sm:$0xf] }
 0x2aa   : > { %v3428_v58 = vpop.f32.mrf.mxu2  ;;  %v3352_v36 = vpop.f32.mrf.mxu0  ;;  %3776 = vmatpush.bf16.msrb.mxu3 %v5490_v26  ;;  %v5463_v26 = vld [vmem:[#allocation7 + $0x7a0] sm:$0xf0] }
 0x2ab   : > { %v3429_v52 = vadd.f32 %v3428_v58, %v3390_v29  ;;  %v3353_v9 = vadd.f32 %v3352_v36, %v7801_v45  ;;  %v3391_v39 = vpop.f32.mrf.mxu1  ;;  %v5103_v58 = vld [vmem:[#allocation7 + $0x4d0] sm:$0xf0] }
 0x2ac   : > { %v3467_v33 = vpop.f32.mrf.mxu3  ;;  %v5106_v36 = vor.u32 %v5797_v60, %v5103_v58  ;;  %3738 = vmatpush.bf16.msrb.mxu2 %v5274_v32  ;;  %v5253_v32 = vld [vmem:[#allocation7 + $0x5e0] sm:$0xf] }
 0x2ad   : > { %v7810_v3 = vadd.f32 %v3467_v33, %v3429_v52  ;;  %v3392_v38 = vadd.f32 %v3391_v39, %v3353_v9 }
 0x2ae   : > { %3698 = vmatpush.bf16.msrb.mxu1 %v5106_v36 }
 0x2b2   : > { %v3430_v29 = vpop.f32.mrf.mxu2  ;;  %v3355_v50 = vpop.f32.mrf.mxu0 }
 0x2b3   : > { %v3431_v41 = vadd.f32 %v3430_v29, %v3392_v38  ;;  %v3356_v61 = vadd.f32 %v3355_v50, %v7801_v45  ;;  %v3394_v6 = vpop.f32.mrf.mxu1  ;;  %v4890_v29 = vor.u32 %v5743_v16, %v4887_v43  ;;  %v5466_v50 = vor.u32 %v5887_v4, %v5463_v26  ;;  %v5693_v16 = vld [vmem:[#allocation7 + $0x174] sm:$0xf0] }
 0x2b4   : > { %v3469_v40 = vpop.f32.mrf.mxu3  ;;  %v5837_v43 = vld [vmem:[#allocation7 + $0x5f4] sm:$0xf0] }
 0x2b5   : > { %v7813_v53 = vadd.f32 %v3469_v40, %v3431_v41  ;;  %v3395_v13 = vadd.f32 %v3394_v6, %v3356_v61  ;;  %3520 = vmatmul.bf16.gmra.mxu0 %v7544_v20  ;;  %3559 = vmatmul.bf16.gmra.mxu1 %v7546_v5  ;;  %v5791_v41 = vld [vmem:[#allocation7 + $0x48c] sm:$0xf]  ;;  %v5079_v61 = vld [vmem:[#allocation7 + $0x4a0] sm:$0xf0] }
 0x2b6   : > { %v5082_v6 = vor.u32 %v5791_v41, %v5079_v61  ;;  %3660 = vmatpush.bf16.msrb.mxu0 %v4890_v29  ;;  %3777 = vmatpush.bf16.msrb.mxu3 %v5466_v50  ;;  %v5254_v41 = vor.u32 %v5837_v43, %v5253_v32  ;;  %v4653_v32 = vld [vmem:[#allocation7 + $0x130] sm:$0xf] }
 0x2b7   : > { %3598 = vmatmul.bf16.gmra.mxu2 %v7348_v25 }
 0x2b8   : > { %3699 = vmatpush.bf16.msrb.mxu1 %v5082_v6 }
 0x2b9   : > { %3637 = vmatmul.bf16.gmra.mxu3 %v7361_v30 }
 0x2ba   : > { %v3433_v17 = vpop.f32.mrf.mxu2  ;;  %v3357_v52 = vpop.f32.mrf.mxu0  ;;  %3926 = vmatpush.bf16.msra.mxu3 %v5254_v41 }
 0x2bb   : > { %v3434_v9 = vadd.f32 %v3433_v17, %v3395_v13  ;;  %v3358_v39 = vadd.f32 %v3357_v52, %v7801_v45  ;;  %v3396_v33 = vpop.f32.mrf.mxu1 }
 0x2bc   : > { %v3472_v38 = vpop.f32.mrf.mxu3 }
 0x2bd   : > { %v7820_v18 = vadd.f32 %v3472_v38, %v3434_v9  ;;  %v3397_v19 = vadd.f32 %v3396_v33, %v3358_v39  ;;  %v5061_v39 = vld [vmem:[#allocation7 + $0x460] sm:$0xf]  ;;  %v5789_v33 = vld [vmem:[#allocation7 + $0x474] sm:$0xf0] }
 0x2be   : > { %v4677_v38 = vld [vmem:[#allocation7 + $0x160] sm:$0xf]  ;;  %v5062_v22 = vor.u32 %v5789_v33, %v5061_v39 }
 0x2bf   : > { %v4678_v50 = vor.u32 %v5693_v16, %v4677_v38  ;;  %v5783_v16 = vld [vmem:[#allocation7 + $0x444] sm:$0xf0] }
 0x2c0   : > { %3887 = vmatpush.bf16.msra.mxu2 %v5062_v22  ;;  %v5037_v22 = vld [vmem:[#allocation7 + $0x430] sm:$0xf] }
 0x2c1   : > { %3809 = vmatpush.bf16.msra.mxu0 %v4678_v50  ;;  %v5038_v43 = vor.u32 %v5783_v16, %v5037_v22  ;;  %v5013_v22 = vld [vmem:[#allocation7 + $0x400] sm:$0xf]  ;;  %v5777_v16 = vld [vmem:[#allocation7 + $0x414] sm:$0xf0] }
 0x2c2   : > { %v3435_v40 = vpop.f32.mrf.mxu2  ;;  %v3360_v13 = vpop.f32.mrf.mxu0 }
 0x2c3   : > { %v3436_v60 = vadd.f32 %v3435_v40, %v3397_v19  ;;  %v3361_v58 = vadd.f32 %v3360_v13, %v7801_v45  ;;  %v3399_v36 = vpop.f32.mrf.mxu1  ;;  %v4869_v13 = vld [vmem:[#allocation7 + $0x2e0] sm:$0xf] }
 0x2c4   : > { %v3474_v17 = vpop.f32.mrf.mxu3  ;;  %3888 = vmatpush.bf16.msra.mxu2 %v5038_v43  ;;  %v5014_v43 = vor.u32 %v5777_v16, %v5013_v22 }
 0x2c5   : > { %v7823_v52 = vadd.f32 %v3474_v17, %v3436_v60  ;;  %v3400_v9 = vadd.f32 %v3399_v36, %v3361_v58  ;;  %3525 = vmatmul.bf16.gmra.mxu0 %v7568_v54  ;;  %3564 = vmatmul.bf16.gmra.mxu1 %v7570_v8  ;;  %v5741_v60 = vld [vmem:[#allocation7 + $0x2f4] sm:$0xf0] }
 0x2c6   : > { %v4870_v58 = vor.u32 %v5741_v60, %v4869_v13 }
 0x2c7   : > { %3603 = vmatmul.bf16.gmra.mxu2 %v7444_v55 }
 0x2c8   : > { %3848 = vmatpush.bf16.msra.mxu1 %v4870_v58  ;;  %3889 = vmatpush.bf16.msra.mxu2 %v5014_v43 }
 0x2c9   : > { %3642 = vmatmul.bf16.gmra.mxu3 %v7462_v11 }
 0x2ca   : > { %v3438_v34 = vpop.f32.mrf.mxu2  ;;  %v3362_v19 = vpop.f32.mrf.mxu0 }
 0x2cb   : > { %v3439_v4 = vadd.f32 %v3438_v34, %v3400_v9  ;;  %v3363_v26 = vadd.f32 %v3362_v19, %v7801_v45  ;;  %v3401_v29 = vpop.f32.mrf.mxu1 }
 0x2cc   : > { %v3477_v61 = vpop.f32.mrf.mxu3 }
 0x2cd   : > { %v7830_v6 = vadd.f32 %v3477_v61, %v3439_v4  ;;  %v3402_v40 = vadd.f32 %v3401_v29, %v3363_v26  ;;  %v5687_v4 = vld [vmem:[#allocation7 + $0x144] sm:$0xf0]  ;;  %v5229_v26 = vld [vmem:[#allocation7 + $0x5b0] sm:$0xf] }
 0x2ce   : > { %v5831_v29 = vld [vmem:[#allocation7 + $0x5c4] sm:$0xf0]  ;;  %v4654_v50 = vor.u32 %v5687_v4, %v4653_v32  ;;  %v4845_v61 = vld [vmem:[#allocation7 + $0x2b0] sm:$0xf]  ;;  %v4629_v32 = vld [vmem:[#allocation7 + $0x100] sm:$0xf] }
 0x2cf   : > { %v5230_v41 = vor.u32 %v5831_v29, %v5229_v26  ;;  %v5681_v4 = vld [vmem:[#allocation7 + $0x114] sm:$0xf0]  ;;  %v5205_v26 = vld [vmem:[#allocation7 + $0x580] sm:$0xf] }
 0x2d0   : > { %3810 = vmatpush.bf16.msra.mxu0 %v4654_v50  ;;  %v5825_v29 = vld [vmem:[#allocation7 + $0x594] sm:$0xf0]  ;;  %v4630_v50 = vor.u32 %v5681_v4, %v4629_v32 }
 0x2d1   : > { %3927 = vmatpush.bf16.msra.mxu3 %v5230_v41 }
 0x2d2   : > { %v3440_v36 = vpop.f32.mrf.mxu2  ;;  %v3365_v17 = vpop.f32.mrf.mxu0 }
 0x2d3   : > { %v3441_v39 = vadd.f32 %v3440_v36, %v3402_v40  ;;  %v3366_v9 = vadd.f32 %v3365_v17, %v7801_v45  ;;  %v3404_v33 = vpop.f32.mrf.mxu1  ;;  %v5735_v40 = vld [vmem:[#allocation7 + $0x2c4] sm:$0xf0] }
 0x2d4   : > { %v3479_v34 = vpop.f32.mrf.mxu3  ;;  %v4846_v58 = vor.u32 %v5735_v40, %v4845_v61  ;;  %3811 = vmatpush.bf16.msra.mxu0 %v4630_v50  ;;  %v5771_v50 = vld [vmem:[#allocation7 + $0x3e4] sm:$0xf0] }
 0x2d5   : > { %v7833_v38 = vadd.f32 %v3479_v34, %v3441_v39  ;;  %v3405_v19 = vadd.f32 %v3404_v33, %v3366_v9  ;;  %3530 = vmatmul.bf16.gmra.mxu0 %v7587_v0  ;;  %3569 = vmatmul.bf16.gmra.mxu1 %v7589_v42 }
 0x2d6   : > { %3849 = vmatpush.bf16.msra.mxu1 %v4846_v58 }
 0x2d7   : > { %3608 = vmatmul.bf16.gmra.mxu2 %v7538_v46 }
 0x2d9   : > { %3647 = vmatmul.bf16.gmra.mxu3 %v7540_v59  ;;  %v5206_v59 = vor.u32 %v5825_v29, %v5205_v26  ;;  %v4989_v29 = vld [vmem:[#allocation7 + $0x3d0] sm:$0xf] }
 0x2da   : > { %v3443_v13 = vpop.f32.mrf.mxu2  ;;  %v3367_v60 = vpop.f32.mrf.mxu0 }
 0x2db   : > { %v3444_v36 = vadd.f32 %v3443_v13, %v3405_v19  ;;  %v3368_v17 = vadd.f32 %v3367_v60, %v7801_v45  ;;  %v3406_v39 = vpop.f32.mrf.mxu1  ;;  %3928 = vmatpush.bf16.msra.mxu3 %v5206_v59 }
 0x2dc   : > { %v3482_v9 = vpop.f32.mrf.mxu3 }
 0x2dd   : > { %v7840_v33 = vadd.f32 %v3482_v9, %v3444_v36  ;;  %v3407_v34 = vadd.f32 %v3406_v39, %v3368_v17  ;;  %v4821_v17 = vld [vmem:[#allocation7 + $0x280] sm:$0xf]  ;;  %v5729_v39 = vld [vmem:[#allocation7 + $0x294] sm:$0xf0] }
 0x2de   : > { %v4822_v9 = vor.u32 %v5729_v39, %v4821_v17  ;;  %v4797_v17 = vld [vmem:[#allocation7 + $0x250] sm:$0xf]  ;;  %v5723_v39 = vld [vmem:[#allocation7 + $0x264] sm:$0xf0] }
 0x2e0   : > { %3850 = vmatpush.bf16.msra.mxu1 %v4822_v9 }
 0x2e2   : > { %v3445_v19 = vpop.f32.mrf.mxu2  ;;  %v3370_v41 = vpop.f32.mrf.mxu0 }
 0x2e3   : > { %v3446_v61 = vadd.f32 %v3445_v19, %v3407_v34  ;;  %v3371_v40 = vadd.f32 %v3370_v41, %v7801_v45  ;;  %v3409_v13 = vpop.f32.mrf.mxu1  ;;  %v4990_v19 = vor.u32 %v5771_v50, %v4989_v29  ;;  %v4605_v41 = vld [vmem:[#allocation7 + $0xd0] sm:$0xf]  ;;  %v8421_v50 = vld [vmem:[#allocation66_spill] sm:$0xff] }
 0x2e4   : > { %v3484_v60 = vpop.f32.mrf.mxu3 }
 0x2e5   : > { %v7843_v58 = vadd.f32 %v3484_v60, %v3446_v61  ;;  %v3410_v36 = vadd.f32 %v3409_v13, %v3371_v40  ;;  %3661 = vmatmul.bf16.vlgmr.msrb.gmra.mxu0 %v8413_v62  ;;  %3700 = vmatmul.bf16.vlgmr.msrb.gmra.mxu1 %v8414_v1  ;;  %v5675_v61 = vld [vmem:[#allocation7 + $0xe4] sm:$0xf0]  ;;  %v5181_v40 = vld [vmem:[#allocation7 + $0x550] sm:$0xf] }
 0x2e6   : > { %3890 = vmatpush.bf16.msra.mxu2 %v4990_v19  ;;  %v4606_v13 = vor.u32 %v5675_v61, %v4605_v41  ;;  %v5819_v60 = vld [vmem:[#allocation7 + $0x564] sm:$0xf0]  ;;  %v4965_v19 = vld [vmem:[#allocation7 + $0x3a0] sm:$0xf]  ;;  %v5765_v41 = vld [vmem:[#allocation7 + $0x3b4] sm:$0xf0] }
 0x2e7   : > { %3739 = vmatmul.bf16.vlgmr.msrb.gmra.mxu2 %v7424_v12  ;;  %v5182_v9 = vor.u32 %v5819_v60, %v5181_v40  ;;  %v5669_v60 = vld [vmem:[#allocation7 + $0xb4] sm:$0xf0] }
 0x2e8   : > { %3812 = vmatpush.bf16.msra.mxu0 %v4606_v13  ;;  %v4966_v13 = vor.u32 %v5765_v41, %v4965_v19 }
 0x2e9   : > { %3778 = vmatmul.bf16.vlgmr.msrb.gmra.mxu3 %v8418_v63 }
 0x2ea   : > { %v3448_v59 = vpop.f32.mrf.mxu2  ;;  %v3372_v34 = vpop.f32.mrf.mxu0  ;;  %3929 = vmatpush.bf16.msra.mxu3 %v5182_v9  ;;  %3891 = vmatpush.bf16.msra.mxu2 %v4966_v13 }
 0x2eb   : > { %v3449_v22 = vadd.f32 %v3448_v59, %v3410_v36  ;;  %v3373_v16 = vadd.f32 %v3372_v34, %v7801_v45  ;;  %v3411_v32 = vpop.f32.mrf.mxu1  ;;  %v4798_v36 = vor.u32 %v5723_v39, %v4797_v17  ;;  %v5157_v17 = vld [vmem:[#allocation7 + $0x520] sm:$0xf]  ;;  %v5813_v39 = vld [vmem:[#allocation7 + $0x534] sm:$0xf0] }
 0x2ec   : > { %v3487_v43 = vpop.f32.mrf.mxu3 }
 0x2ed   : > { %v7850_v4 = vadd.f32 %v3487_v43, %v3449_v22  ;;  %v3412_v26 = vadd.f32 %v3411_v32, %v3373_v16  ;;  %3851 = vmatpush.bf16.msra.mxu1 %v4798_v36 }
 0x2f2   : > { %v3450_v59 = vpop.f32.mrf.mxu2  ;;  %v3375_v34 = vpop.f32.mrf.mxu0 }
 0x2f3   : > { %v3451_v63 = vadd.f32 %v3450_v59, %v3412_v26  ;;  %v3376_v22 = vadd.f32 %v3375_v34, %v7801_v45  ;;  %v3414_v16 = vpop.f32.mrf.mxu1  ;;  %v4581_v26 = vld [vmem:[#allocation7 + $0xa0] sm:$0xf]  ;;  %v5158_v34 = vor.u32 %v5813_v39, %v5157_v17  ;;  %v5759_v17 = vld [vmem:[#allocation7 + $0x384] sm:$0xf0] }
 0x2f4   : > { %v3489_v32 = vpop.f32.mrf.mxu3  ;;  %v4582_v59 = vor.u32 %v5669_v60, %v4581_v26  ;;  %v4941_v60 = vld [vmem:[#allocation7 + $0x370] sm:$0xf] }
 0x2f5   : > { %v7853_v43 = vadd.f32 %v3489_v32, %v3451_v63  ;;  %v3415_v29 = vadd.f32 %v3414_v16, %v3376_v22  ;;  %3666 = vmatmul.bf16.gmra.mxu0 %v7191_v7  ;;  %3705 = vmatmul.bf16.gmra.mxu1 %v8421_v50  ;;  %v4942_v39 = vor.u32 %v5759_v17, %v4941_v60  ;;  %v5753_v60 = vld [vmem:[#allocation7 + $0x354] sm:$0xf0] }
 0x2f6   : > { %3813 = vmatpush.bf16.msra.mxu0 %v4582_v59  ;;  %3930 = vmatpush.bf16.msra.mxu3 %v5158_v34  ;;  %v4749_v59 = vld [vmem:[#allocation7 + $0x1f0] sm:$0xf]  ;;  %v5711_v34 = vld [vmem:[#allocation7 + $0x204] sm:$0xf0] }
 0x2f7   : > { %3744 = vmatmul.bf16.gmra.mxu2 %v8419_v37  ;;  %v5717_v37 = vld [vmem:[#allocation7 + $0x234] sm:$0xf0] }
 0x2f8   : > { %3892 = vmatpush.bf16.msra.mxu2 %v4942_v39  ;;  %v4533_v39 = vld [vmem:[#allocation7 + $0x40] sm:$0xf] }
 0x2f9   : > { %3783 = vmatmul.bf16.gmra.mxu3 %v8420_v31  ;;  %v4773_v31 = vld [vmem:[#allocation7 + $0x220] sm:$0xf] }
 0x2fa   : > { %v3453_v61 = vpop.f32.mrf.mxu2  ;;  %v3377_v40 = vpop.f32.mrf.mxu0  ;;  %v4774_v19 = vor.u32 %v5717_v37, %v4773_v31  ;;  %v7870_v37 = vperm.slane %v7798_v24, 3  ;;  %v4557_v31 = vld [vmem:[#allocation7 + $0x70] sm:$0xf] }
 0x2fb   : > { %v3454_v63 = vadd.f32 %v3453_v61, %v3415_v29  ;;  %v3378_v9 = vadd.f32 %v3377_v40, %v7801_v45  ;;  %v3416_v36 = vpop.f32.mrf.mxu1 }
 0x2fc   : > { %v3492_v22 = vpop.f32.mrf.mxu3  ;;  %3852 = vmatpush.bf16.msra.mxu1 %v4774_v19  ;;  %v4750_v19 = vor.u32 %v5711_v34, %v4749_v59 }
 0x2fd   : > { %v7860_v16 = vadd.f32 %v3492_v22, %v3454_v63  ;;  %v3417_v32 = vadd.f32 %v3416_v36, %v3378_v9  ;;  %v5133_v63 = vld [vmem:[#allocation7 + $0x4f0] sm:$0xf]  ;;  %v5807_v9 = vld [vmem:[#allocation7 + $0x504] sm:$0xf0] }
 0x2fe   : > { %v5134_v36 = vor.u32 %v5807_v9, %v5133_v63  ;;  %v5801_v63 = vld [vmem:[#allocation7 + $0x4d4] sm:$0xf0] }
 0x300   : > { %3931 = vmatpush.bf16.msra.mxu3 %v5134_v36  ;;  %3853 = vmatpush.bf16.msra.mxu1 %v4750_v19 }
 0x302   : > { %v3455_v41 = vpop.f32.mrf.mxu2  ;;  %v3506_v12 = vpop.f32.mrf.mxu0 }
 0x303   : > { %v3456_v29 = vadd.f32 %v3455_v41, %v3417_v32  ;;  %v3507_v45 = vadd.f32 %v3506_v12, %v7810_v3  ;;  %v3545_v61 = vpop.f32.mrf.mxu1  ;;  %v5663_v12 = vld [vmem:[#allocation7 + $0x84] sm:$0xf0] }
 0x304   : > { %v3494_v26 = vpop.f32.mrf.mxu3  ;;  %v4558_v3 = vor.u32 %v5663_v12, %v4557_v31  ;;  %v5657_v31 = vld [vmem:[#allocation7 + $0x54] sm:$0xf0]  ;;  %v5109_v12 = vld [vmem:[#allocation7 + $0x4c0] sm:$0xf] }
 0x305   : > { %v7863_v40 = vadd.f32 %v3494_v26, %v3456_v29  ;;  %v3546_v13 = vadd.f32 %v3545_v61, %v3507_v45  ;;  %3671 = vmatmul.bf16.gmra.mxu0 %v8416_v57  ;;  %3710 = vmatmul.bf16.gmra.mxu1 %v8417_v35 }
 0x306   : > { %3814 = vmatpush.bf16.msra.mxu0 %v4558_v3  ;;  %v4534_v3 = vor.u32 %v5657_v31, %v4533_v39 }
 0x307   : > { %4279 = vst [vmem:[%s7668_s21 + $0x10] sm:$0xff] %v3546_v13  ;;  %3749 = vmatmul.bf16.gmra.mxu2 %v7486_v48  ;;  %v4917_v13 = vld [vmem:[#allocation7 + $0x340] sm:$0xf] }
 0x308   : > { %v4918_v17 = vor.u32 %v5753_v60, %v4917_v13 }
 0x309   : > { %3788 = vmatmul.bf16.gmra.mxu3 %v7488_v51 }
 0x30a   : > { %v3584_v22 = vpop.f32.mrf.mxu2  ;;  %v3508_v32 = vpop.f32.mrf.mxu0  ;;  %3893 = vmatpush.bf16.msra.mxu2 %v4918_v17  ;;  %3815 = vmatpush.bf16.msra.mxu0 %v4534_v3  ;;  %v4893_v3 = vld [vmem:[#allocation7 + $0x310] sm:$0xf] }
 0x30b   : > { %v3585_v41 = vadd.f32 %v3584_v22, %v7870_v37  ;;  %v3509_v24 = vadd.f32 %v3508_v32, %v7813_v53  ;;  %v3547_v29 = vpop.f32.mrf.mxu1  ;;  %v5110_v53 = vor.u32 %v5801_v63, %v5109_v12  ;;  %v5747_v63 = vld [vmem:[#allocation7 + $0x324] sm:$0xf0] }
 0x30c   : > { %v3623_v45 = vpop.f32.mrf.mxu3 }
 0x30d   : > { %v7875_v61 = vadd.f32 %v3623_v45, %v3585_v41  ;;  %v3548_v26 = vadd.f32 %v3547_v29, %v3509_v24  ;;  %3932 = vmatpush.bf16.msra.mxu3 %v5110_v53  ;;  %v4725_v24 = vld [vmem:[#allocation7 + $0x1c0] sm:$0xf]  ;;  %v5705_v29 = vld [vmem:[#allocation7 + $0x1d4] sm:$0xf0]  ;;  %v5651_v53 = vld [vmem:[#allocation7 + $0x24] sm:$0xf0] }
 0x30e   : > { %v4726_v45 = vor.u32 %v5705_v29, %v4725_v24  ;;  %v5699_v24 = vld [vmem:[#allocation7 + $0x1a4] sm:$0xf0] }
 0x30f   : > { %4285 = vst [vmem:[%s7668_s21 + $0x40] sm:$0xff] %v3548_v26 }
 0x310   : > { %3854 = vmatpush.bf16.msra.mxu1 %v4726_v45 }
 0x312   : > { %v3586_v9 = vpop.f32.mrf.mxu2  ;;  %v3511_v59 = vpop.f32.mrf.mxu0 }
 0x313   : > { %v3587_v36 = vadd.f32 %v3586_v9, %v7870_v37  ;;  %v3512_v34 = vadd.f32 %v3511_v59, %v7820_v18  ;;  %v3550_v22 = vpop.f32.mrf.mxu1  ;;  %v4894_v9 = vor.u32 %v5747_v63, %v4893_v3  ;;  %v4509_v59 = vld [vmem:[#allocation7 + $0x10] sm:$0xf]  ;;  %v4679_v3 = vld [vmem:[#allocation7 + $0x178] sm:$0xf0]  ;;  %v5445_v63 = vld [vmem:[#allocation7 + $0x760] sm:$0xf] }
 0x314   : > { %v3625_v32 = vpop.f32.mrf.mxu3 }
 0x315   : > { %v7880_v19 = vadd.f32 %v3625_v32, %v3587_v36  ;;  %v3551_v41 = vadd.f32 %v3550_v22, %v3512_v34  ;;  %3676 = vmatmul.bf16.gmra.mxu0 %v7377_v28  ;;  %3715 = vmatmul.bf16.gmra.mxu1 %v7397_v23  ;;  %v4510_v36 = vor.u32 %v5651_v53, %v4509_v59  ;;  %v5085_v34 = vld [vmem:[#allocation7 + $0x490] sm:$0xf]  ;;  %v5795_v22 = vld [vmem:[#allocation7 + $0x4a4] sm:$0xf0]  ;;  %v5885_v53 = vld [vmem:[#allocation7 + $0x774] sm:$0xf0] }
 0x316   : > { %3894 = vmatpush.bf16.msra.mxu2 %v4894_v9  ;;  %v4701_v32 = vld [vmem:[#allocation7 + $0x190] sm:$0xf] }
 0x317   : > { %4291 = vst [vmem:[%s7668_s21 + $0x70] sm:$0xff] %v3551_v41  ;;  %3754 = vmatmul.bf16.gmra.mxu2 %v7544_v20  ;;  %v5086_v41 = vor.u32 %v5795_v22, %v5085_v34  ;;  %3816 = vmatpush.bf16.msra.mxu0 %v4510_v36  ;;  %v4702_v45 = vor.u32 %v5699_v24, %v4701_v32  ;;  %v5738_v36 = vld [vmem:[#allocation7 + $0x2e4] sm:$0xf]  ;;  %v4871_v34 = vld [vmem:[#allocation7 + $0x2f8] sm:$0xf0] }
 0x318   : > { %v5446_v24 = vor.u32 %v5885_v53, %v5445_v63  ;;  %v5684_v53 = vld [vmem:[#allocation7 + $0x134] sm:$0xf] }
 0x319   : > { %3793 = vmatmul.bf16.gmra.mxu3 %v7546_v5  ;;  %3855 = vmatpush.bf16.msra.mxu1 %v4702_v45 }
 0x31a   : > { %v3589_v18 = vpop.f32.mrf.mxu2  ;;  %v3513_v26 = vpop.f32.mrf.mxu0  ;;  %3933 = vmatpush.bf16.msra.mxu3 %v5086_v41 }
 0x31b   : > { %v3590_v13 = vadd.f32 %v3589_v18, %v7870_v37  ;;  %v3514_v60 = vadd.f32 %v3513_v26, %v7823_v52  ;;  %v3552_v17 = vpop.f32.mrf.mxu1  ;;  %3965 = vmatpush.bf16.msrb.mxu0 %v5446_v24  ;;  %v4847_v24 = vld [vmem:[#allocation7 + $0x2c8] sm:$0xf0] }
 0x31c   : > { %v3628_v39 = vpop.f32.mrf.mxu3 }
 0x31d   : > { %v7889_v31 = vadd.f32 %v3628_v39, %v3590_v13  ;;  %v3553_v12 = vadd.f32 %v3552_v17, %v3514_v60 }
 0x31f   : > { %4297 = vst [vmem:[%s7668_s21 + $0xa0] sm:$0xff] %v3553_v12  ;;  %v5690_v12 = vld [vmem:[#allocation7 + $0x164] sm:$0xf] }
 0x320   : > { %v4682_v59 = vor.u32 %v5690_v12, %v4679_v3 }
 0x322   : > { %v3591_v52 = vpop.f32.mrf.mxu2  ;;  %v3516_v29 = vpop.f32.mrf.mxu0  ;;  %4043 = vmatpush.bf16.msrb.mxu2 %v4682_v59 }
 0x323   : > { %v3592_v18 = vadd.f32 %v3591_v52, %v7870_v37  ;;  %v3517_v26 = vadd.f32 %v3516_v29, %v7830_v6  ;;  %v3555_v13 = vpop.f32.mrf.mxu1  ;;  %v4874_v52 = vor.u32 %v5738_v36, %v4871_v34  ;;  %v4655_v36 = vld [vmem:[#allocation7 + $0x148] sm:$0xf0] }
 0x324   : > { %v3630_v60 = vpop.f32.mrf.mxu3  ;;  %v4658_v34 = vor.u32 %v5684_v53, %v4655_v36  ;;  %v4631_v53 = vld [vmem:[#allocation7 + $0x118] sm:$0xf0] }
 0x325   : > { %v7894_v17 = vadd.f32 %v3630_v60, %v3592_v18  ;;  %v3556_v39 = vadd.f32 %v3555_v13, %v3517_v26  ;;  %3681 = vmatmul.bf16.gmra.mxu0 %v7477_v21  ;;  %3720 = vmatmul.bf16.gmra.mxu1 %v7495_v47  ;;  %v5637_v26 = vld [vmem:[#allocation7 + $0x8e0] sm:$0xf]  ;;  %v5933_v13 = vld [vmem:[#allocation7 + $0x8f4] sm:$0xf0] }
 0x326   : > { %4082 = vmatpush.bf16.msrb.mxu3 %v4874_v52  ;;  %v5638_v60 = vor.u32 %v5933_v13, %v5637_v26  ;;  %4044 = vmatpush.bf16.msrb.mxu2 %v4658_v34  ;;  %v5397_v34 = vld [vmem:[#allocation7 + $0x700] sm:$0xf] }
 0x327   : > { %4303 = vst [vmem:[%s7668_s21 + $0xd0] sm:$0xff] %v3556_v39  ;;  %3759 = vmatmul.bf16.gmra.mxu2 %v7568_v54 }
 0x328   : > { %4004 = vmatpush.bf16.msrb.mxu1 %v5638_v60 }
 0x329   : > { %3798 = vmatmul.bf16.gmra.mxu3 %v7570_v8 }
 0x32a   : > { %v3594_v6 = vpop.f32.mrf.mxu2  ;;  %v3518_v9 = vpop.f32.mrf.mxu0 }
 0x32b   : > { %v3595_v22 = vadd.f32 %v3594_v6, %v7870_v37  ;;  %v3519_v32 = vadd.f32 %v3518_v9, %v7833_v38  ;;  %v3557_v41 = vpop.f32.mrf.mxu1 }
 0x32c   : > { %v3633_v29 = vpop.f32.mrf.mxu3 }
 0x32d   : > { %v7903_v45 = vadd.f32 %v3633_v29, %v3595_v22  ;;  %v3558_v18 = vadd.f32 %v3557_v41, %v3519_v32  ;;  %v5421_v22 = vld [vmem:[#allocation7 + $0x730] sm:$0xf]  ;;  %v5879_v32 = vld [vmem:[#allocation7 + $0x744] sm:$0xf0] }
 0x32e   : > { %v5422_v41 = vor.u32 %v5879_v32, %v5421_v22  ;;  %v5613_v29 = vld [vmem:[#allocation7 + $0x8b0] sm:$0xf]  ;;  %v5873_v22 = vld [vmem:[#allocation7 + $0x714] sm:$0xf0]  ;;  %v5726_v32 = vld [vmem:[#allocation7 + $0x284] sm:$0xf] }
 0x32f   : > { %4309 = vst [vmem:[%s7668_s21 + $0x100] sm:$0xff] %v3558_v18  ;;  %v5927_v18 = vld [vmem:[#allocation7 + $0x8c4] sm:$0xf0] }
 0x330   : > { %3966 = vmatpush.bf16.msrb.mxu0 %v5422_v41  ;;  %v5614_v60 = vor.u32 %v5927_v18, %v5613_v29  ;;  %v5398_v41 = vor.u32 %v5873_v22, %v5397_v34 }
 0x332   : > { %v3596_v39 = vpop.f32.mrf.mxu2  ;;  %v3521_v12 = vpop.f32.mrf.mxu0  ;;  %4005 = vmatpush.bf16.msrb.mxu1 %v5614_v60 }
 0x333   : > { %v3597_v38 = vadd.f32 %v3596_v39, %v7870_v37  ;;  %v3522_v3 = vadd.f32 %v3521_v12, %v7840_v33  ;;  %v3560_v63 = vpop.f32.mrf.mxu1  ;;  %v5732_v33 = vld [vmem:[#allocation7 + $0x2b4] sm:$0xf] }
 0x334   : > { %v3635_v6 = vpop.f32.mrf.mxu3  ;;  %v4850_v52 = vor.u32 %v5732_v33, %v4847_v24  ;;  %v4823_v33 = vld [vmem:[#allocation7 + $0x298] sm:$0xf0]  ;;  %3967 = vmatpush.bf16.msrb.mxu0 %v5398_v41  ;;  %v5672_v41 = vld [vmem:[#allocation7 + $0xd4] sm:$0xf] }
 0x335   : > { %v7908_v9 = vadd.f32 %v3635_v6, %v3597_v38  ;;  %v3561_v59 = vadd.f32 %v3560_v63, %v3522_v3  ;;  %3686 = vmatmul.bf16.gmra.mxu0 %v7550_v44  ;;  %3725 = vmatmul.bf16.gmra.mxu1 %v7553_v14 }
 0x336   : > { %4083 = vmatpush.bf16.msrb.mxu3 %v4850_v52 }
 0x337   : > { %4315 = vst [vmem:[%s7668_s21 + $0x130] sm:$0xff] %v3561_v59  ;;  %3764 = vmatmul.bf16.gmra.mxu2 %v7587_v0  ;;  %v5678_v59 = vld [vmem:[#allocation7 + $0x104] sm:$0xf] }
 0x338   : > { %v4634_v36 = vor.u32 %v5678_v59, %v4631_v53 }
 0x339   : > { %3803 = vmatmul.bf16.gmra.mxu3 %v7589_v42 }
 0x33a   : > { %v3599_v26 = vpop.f32.mrf.mxu2  ;;  %v3523_v13 = vpop.f32.mrf.mxu0  ;;  %4045 = vmatpush.bf16.msrb.mxu2 %v4634_v36 }
 0x33b   : > { %v3600_v39 = vadd.f32 %v3599_v26, %v7870_v37  ;;  %v3524_v12 = vadd.f32 %v3523_v13, %v7843_v58  ;;  %v3562_v38 = vpop.f32.mrf.mxu1  ;;  %v4826_v58 = vor.u32 %v5726_v32, %v4823_v33  ;;  %v4607_v33 = vld [vmem:[#allocation7 + $0xe8] sm:$0xf0] }
 0x33c   : > { %v3638_v3 = vpop.f32.mrf.mxu3 }
 0x33d   : > { %v7917_v63 = vadd.f32 %v3638_v3, %v3600_v39  ;;  %v3563_v6 = vadd.f32 %v3562_v38, %v3524_v12  ;;  %4084 = vmatpush.bf16.msrb.mxu3 %v4826_v58  ;;  %v5589_v12 = vld [vmem:[#allocation7 + $0x880] sm:$0xf]  ;;  %v5921_v38 = vld [vmem:[#allocation7 + $0x894] sm:$0xf0]  ;;  %v5867_v58 = vld [vmem:[#allocation7 + $0x6e4] sm:$0xf0] }
 0x33e   : > { %v5590_v3 = vor.u32 %v5921_v38, %v5589_v12 }
 0x33f   : > { %4321 = vst [vmem:[%s7668_s21 + $0x160] sm:$0xff] %v3563_v6 }
 0x340   : > { %4006 = vmatpush.bf16.msrb.mxu1 %v5590_v3 }
 0x342   : > { %v3601_v24 = vpop.f32.mrf.mxu2  ;;  %v3526_v29 = vpop.f32.mrf.mxu0 }
 0x343   : > { %v3602_v52 = vadd.f32 %v3601_v24, %v7870_v37  ;;  %v3527_v18 = vadd.f32 %v3526_v29, %v7850_v4  ;;  %v3565_v26 = vpop.f32.mrf.mxu1  ;;  %v4610_v24 = vor.u32 %v5672_v41, %v4607_v33  ;;  %v5373_v29 = vld [vmem:[#allocation7 + $0x6d0] sm:$0xf]  ;;  %v4583_v41 = vld [vmem:[#allocation7 + $0xb8] sm:$0xf0] }
 0x344   : > { %v3640_v13 = vpop.f32.mrf.mxu3 }
 0x345   : > { %v7922_v60 = vadd.f32 %v3640_v13, %v3602_v52  ;;  %v3566_v39 = vadd.f32 %v3565_v26, %v3527_v18  ;;  %3817 = vmatmul.bf16.vlgmr.msra.gmra.mxu0 %v7072_v56  ;;  %3856 = vmatmul.bf16.vlgmr.msra.gmra.mxu1 %v8410_v49  ;;  %v5720_v52 = vld [vmem:[#allocation7 + $0x254] sm:$0xf]  ;;  %v5374_v18 = vor.u32 %v5867_v58, %v5373_v29  ;;  %v4799_v26 = vld [vmem:[#allocation7 + $0x268] sm:$0xf0]  ;;  %v5565_v13 = vld [vmem:[#allocation7 + $0x850] sm:$0xf] }
 0x346   : > { %4046 = vmatpush.bf16.msrb.mxu2 %v4610_v24  ;;  %v5861_v58 = vld [vmem:[#allocation7 + $0x6b4] sm:$0xf0] }
 0x347   : > { %4327 = vst [vmem:[%s7668_s21 + $0x190] sm:$0xff] %v3566_v39  ;;  %3895 = vmatmul.bf16.vlgmr.msra.gmra.mxu2 %v8413_v62  ;;  %v5915_v39 = vld [vmem:[#allocation7 + $0x864] sm:$0xf0]  ;;  %3968 = vmatpush.bf16.msrb.mxu0 %v5374_v18  ;;  %v4775_v18 = vld [vmem:[#allocation7 + $0x238] sm:$0xf0] }
 0x348   : > { %v5566_v3 = vor.u32 %v5915_v39, %v5565_v13 }
 0x349   : > { %3934 = vmatmul.bf16.vlgmr.msra.gmra.mxu3 %v8414_v1 }
 0x34a   : > { %v3604_v4 = vpop.f32.mrf.mxu2  ;;  %v3528_v6 = vpop.f32.mrf.mxu0  ;;  %4007 = vmatpush.bf16.msrb.mxu1 %v5566_v3 }
 0x34b   : > { %v3605_v59 = vadd.f32 %v3604_v4, %v7870_v37  ;;  %v3529_v53 = vadd.f32 %v3528_v6, %v7853_v43  ;;  %v3567_v36 = vpop.f32.mrf.mxu1  ;;  %v4802_v43 = vor.u32 %v5720_v52, %v4799_v26  ;;  %v5714_v52 = vld [vmem:[#allocation7 + $0x224] sm:$0xf] }
 0x34c   : > { %v3643_v34 = vpop.f32.mrf.mxu3 }
 0x34d   : > { %v7931_v22 = vadd.f32 %v3643_v34, %v3605_v59  ;;  %v3568_v32 = vadd.f32 %v3567_v36, %v3529_v53  ;;  %4085 = vmatpush.bf16.msrb.mxu3 %v4802_v43 }
 0x34f   : > { %4333 = vst [vmem:[%s7668_s21 + $0x1c0] sm:$0xff] %v3568_v32  ;;  %v5666_v32 = vld [vmem:[#allocation7 + $0xa4] sm:$0xf] }
 0x350   : > { %v4586_v29 = vor.u32 %v5666_v32, %v4583_v41 }
 0x352   : > { %v3606_v12 = vpop.f32.mrf.mxu2  ;;  %v3531_v38 = vpop.f32.mrf.mxu0  ;;  %4047 = vmatpush.bf16.msrb.mxu2 %v4586_v29  ;;  %v5660_v29 = vld [vmem:[#allocation7 + $0x74] sm:$0xf] }
 0x353   : > { %v3607_v4 = vadd.f32 %v3606_v12, %v7870_v37  ;;  %v3532_v6 = vadd.f32 %v3531_v38, %v7860_v16  ;;  %v3570_v59 = vpop.f32.mrf.mxu1  ;;  %v5349_v16 = vld [vmem:[#allocation7 + $0x6a0] sm:$0xf]  ;;  %v4778_v38 = vor.u32 %v5714_v52, %v4775_v18  ;;  %v5325_v52 = vld [vmem:[#allocation7 + $0x670] sm:$0xf] }
 0x354   : > { %v3645_v53 = vpop.f32.mrf.mxu3  ;;  %v5350_v12 = vor.u32 %v5861_v58, %v5349_v16  ;;  %v4559_v58 = vld [vmem:[#allocation7 + $0x88] sm:$0xf0] }
 0x355   : > { %v7936_v36 = vadd.f32 %v3645_v53, %v3607_v4  ;;  %v3571_v34 = vadd.f32 %v3570_v59, %v3532_v6  ;;  %3822 = vmatmul.bf16.gmra.mxu0 %v8411_v10  ;;  %3861 = vmatmul.bf16.gmra.mxu1 %v8412_v15  ;;  %v5541_v6 = vld [vmem:[#allocation7 + $0x820] sm:$0xf]  ;;  %v5909_v59 = vld [vmem:[#allocation7 + $0x834] sm:$0xf0]  ;;  %v4562_v18 = vor.u32 %v5660_v29, %v4559_v58 }
 0x356   : > { %3969 = vmatpush.bf16.msrb.mxu0 %v5350_v12  ;;  %4086 = vmatpush.bf16.msrb.mxu3 %v4778_v38  ;;  %v5542_v53 = vor.u32 %v5909_v59, %v5541_v6  ;;  %v5301_v58 = vld [vmem:[#allocation7 + $0x640] sm:$0xf] }
 0x357   : > { %4339 = vst [vmem:[%s7668_s21 + $0x1f0] sm:$0xff] %v3571_v34  ;;  %3900 = vmatmul.bf16.gmra.mxu2 %v7191_v7 }
 0x358   : > { %4008 = vmatpush.bf16.msrb.mxu1 %v5542_v53  ;;  %4048 = vmatpush.bf16.msrb.mxu2 %v4562_v18 }
 0x359   : > { %3939 = vmatmul.bf16.gmra.mxu3 %v8421_v50 }
 0x35a   : > { %v3609_v33 = vpop.f32.mrf.mxu2  ;;  %v3533_v24 = vpop.f32.mrf.mxu0 }
 0x35b   : > { %v3610_v26 = vadd.f32 %v3609_v33, %v7870_v37  ;;  %v3534_v13 = vadd.f32 %v3533_v24, %v7863_v40  ;;  %v3572_v39 = vpop.f32.mrf.mxu1 }
 0x35c   : > { %v3648_v43 = vpop.f32.mrf.mxu3 }
 0x35d   : > { %v7945_v3 = vadd.f32 %v3648_v43, %v3610_v26  ;;  %v3573_v4 = vadd.f32 %v3572_v39, %v3534_v13  ;;  %v5855_v26 = vld [vmem:[#allocation7 + $0x684] sm:$0xf0]  ;;  %v5708_v13 = vld [vmem:[#allocation7 + $0x1f4] sm:$0xf]  ;;  %v4751_v39 = vld [vmem:[#allocation7 + $0x208] sm:$0xf0] }
 0x35e   : > { %v5326_v12 = vor.u32 %v5855_v26, %v5325_v52  ;;  %v4754_v38 = vor.u32 %v5708_v13, %v4751_v39  ;;  %v5903_v43 = vld [vmem:[#allocation7 + $0x804] sm:$0xf0]  ;;  %v5849_v52 = vld [vmem:[#allocation7 + $0x654] sm:$0xf0]  ;;  %v5702_v26 = vld [vmem:[#allocation7 + $0x1c4] sm:$0xf] }
 0x35f   : > { %4345 = vst [vmem:[%s7668_s21 + $0x220] sm:$0xff] %v3573_v4  ;;  %v5302_v18 = vor.u32 %v5849_v52, %v5301_v58  ;;  %v4727_v39 = vld [vmem:[#allocation7 + $0x1d8] sm:$0xf0]  ;;  %v5648_v52 = vld [vmem:[#allocation7 + $0x14] sm:$0xf] }
 0x360   : > { %3970 = vmatpush.bf16.msrb.mxu0 %v5326_v12  ;;  %4087 = vmatpush.bf16.msrb.mxu3 %v4754_v38  ;;  %v4730_v12 = vor.u32 %v5702_v26, %v4727_v39  ;;  %v4511_v26 = vld [vmem:[#allocation7 + $0x28] sm:$0xf0]  ;;  %v5843_v39 = vld [vmem:[#allocation7 + $0x624] sm:$0xf0] }
 0x362   : > { %v3611_v34 = vpop.f32.mrf.mxu2  ;;  %v3662_v32 = vpop.f32.mrf.mxu0 }
 0x363   : > { %v3612_v41 = vadd.f32 %v3611_v34, %v7870_v37  ;;  %v3701_v40 = vpop.f32.mrf.mxu1  ;;  %v3663_v24 = vadd.f32 %v3662_v32, %v7875_v61  ;;  %v5517_v61 = vld [vmem:[#allocation7 + $0x7f0] sm:$0xf] }
 0x364   : > { %v3650_v33 = vpop.f32.mrf.mxu3  ;;  %v5518_v59 = vor.u32 %v5903_v43, %v5517_v61  ;;  %3971 = vmatpush.bf16.msrb.mxu0 %v5302_v18  ;;  %4088 = vmatpush.bf16.msrb.mxu3 %v4730_v12  ;;  %v5277_v18 = vld [vmem:[#allocation7 + $0x610] sm:$0xf] }
 0x365   : > { %v7949_v16 = vadd.f32 %v3650_v33, %v3612_v41  ;;  %3827 = vmatmul.bf16.gmra.mxu0 %v7264_v27  ;;  %3866 = vmatmul.bf16.gmra.mxu1 %v7267_v2  ;;  %v3702_v37 = vadd.f32 %v3701_v40, %v3663_v24  ;;  %v5654_v33 = vld [vmem:[#allocation7 + $0x44] sm:$0xf]  ;;  %v4535_v24 = vld [vmem:[#allocation7 + $0x58] sm:$0xf0]  ;;  %v5278_v12 = vor.u32 %v5843_v39, %v5277_v18 }
 0x366   : > { %4009 = vmatpush.bf16.msrb.mxu1 %v5518_v59  ;;  %v4538_v29 = vor.u32 %v5654_v33, %v4535_v24  ;;  %v5493_v59 = vld [vmem:[#allocation7 + $0x7c0] sm:$0xf]  ;;  %v5930_v18 = vld [vmem:[#allocation7 + $0x8e4] sm:$0xf] }
 0x367   : > { %3905 = vmatmul.bf16.gmra.mxu2 %v8416_v57 }
 0x368   : > { %4049 = vmatpush.bf16.msrb.mxu2 %v4538_v29  ;;  %3972 = vmatpush.bf16.msrb.mxu0 %v5278_v12 }
 0x369   : > { %3944 = vmatmul.bf16.gmra.mxu3 %v8417_v35 }
 0x36a   : > { %v3740_v4 = vpop.f32.mrf.mxu2  ;;  %v3664_v6 = vpop.f32.mrf.mxu0 }
 0x36b   : > { %v3741_v53 = vadd.f32 %v3740_v4, %v3702_v37  ;;  %v3703_v34 = vpop.f32.mrf.mxu1  ;;  %v3665_v40 = vadd.f32 %v3664_v6, %v7880_v19 }
 0x36c   : > { %v3779_v32 = vpop.f32.mrf.mxu3 }
 0x36d   : > { %v3780_v41 = vadd.f32 %v3779_v32, %v3741_v53  ;;  %v3704_v13 = vadd.f32 %v3703_v34, %v3665_v40  ;;  %v5897_v53 = vld [vmem:[#allocation7 + $0x7d4] sm:$0xf0] }
 0x36e   : > { %v5494_v34 = vor.u32 %v5897_v53, %v5493_v59 }
 0x36f   : > { %4280 = vst [vmem:[%s7668_s21 + $0x18] sm:$0xff] %v3780_v41 }
 0x370   : > { %4010 = vmatpush.bf16.msrb.mxu1 %v5494_v34 }
 0x372   : > { %v3742_v37 = vpop.f32.mrf.mxu2  ;;  %v3667_v61 = vpop.f32.mrf.mxu0 }
 0x373   : > { %v3743_v38 = vadd.f32 %v3742_v37, %v3704_v13  ;;  %v3706_v43 = vpop.f32.mrf.mxu1  ;;  %v3668_v6 = vadd.f32 %v3667_v61, %v7889_v31  ;;  %v4514_v13 = vor.u32 %v5648_v52, %v4511_v26  ;;  %v5696_v37 = vld [vmem:[#allocation7 + $0x194] sm:$0xf] }
 0x374   : > { %v3781_v4 = vpop.f32.mrf.mxu3 }
 0x375   : > { %v3782_v19 = vadd.f32 %v3781_v4, %v3743_v38  ;;  %3832 = vmatmul.bf16.gmra.mxu0 %v7348_v25  ;;  %3871 = vmatmul.bf16.gmra.mxu1 %v7361_v30  ;;  %v3707_v32 = vadd.f32 %v3706_v43, %v3668_v6  ;;  %v4703_v38 = vld [vmem:[#allocation7 + $0x1a8] sm:$0xf0]  ;;  %v5469_v43 = vld [vmem:[#allocation7 + $0x790] sm:$0xf]  ;;  %v5891_v4 = vld [vmem:[#allocation7 + $0x7a4] sm:$0xf0] }
 0x376   : > { %4050 = vmatpush.bf16.msrb.mxu2 %v4514_v13  ;;  %v4706_v59 = vor.u32 %v5696_v37, %v4703_v38  ;;  %v5470_v53 = vor.u32 %v5891_v4, %v5469_v43  ;;  %v5063_v13 = vld [vmem:[#allocation7 + $0x478] sm:$0xf0] }
 0x377   : > { %4286 = vst [vmem:[%s7668_s21 + $0x48] sm:$0xff] %v3782_v19  ;;  %3910 = vmatmul.bf16.gmra.mxu2 %v7377_v28 }
 0x378   : > { %4089 = vmatpush.bf16.msrb.mxu3 %v4706_v59  ;;  %4011 = vmatpush.bf16.msrb.mxu1 %v5470_v53 }
 0x379   : > { %3949 = vmatmul.bf16.gmra.mxu3 %v7397_v23 }
 0x37a   : > { %v3745_v41 = vpop.f32.mrf.mxu2  ;;  %v3669_v40 = vpop.f32.mrf.mxu0 }
 0x37b   : > { %v3746_v33 = vadd.f32 %v3745_v41, %v3707_v32  ;;  %v3708_v24 = vpop.f32.mrf.mxu1  ;;  %v3670_v58 = vadd.f32 %v3669_v40, %v7894_v17 }
 0x37c   : > { %v3784_v31 = vpop.f32.mrf.mxu3 }
 0x37d   : > { %v3785_v29 = vadd.f32 %v3784_v31, %v3746_v33  ;;  %v3709_v61 = vadd.f32 %v3708_v24, %v3670_v58  ;;  %v5882_v24 = vld [vmem:[#allocation7 + $0x764] sm:$0xf]  ;;  %v5447_v31 = vld [vmem:[#allocation7 + $0x778] sm:$0xf0] }
 0x37e   : > { %v5450_v26 = vor.u32 %v5882_v24, %v5447_v31  ;;  %v5876_v31 = vld [vmem:[#allocation7 + $0x734] sm:$0xf] }
 0x37f   : > { %4292 = vst [vmem:[%s7668_s21 + $0x78] sm:$0xff] %v3785_v29  ;;  %v5786_v29 = vld [vmem:[#allocation7 + $0x464] sm:$0xf] }
 0x380   : > { %4199 = vmatpush.bf16.msra.mxu2 %v5450_v26  ;;  %v5039_v26 = vld [vmem:[#allocation7 + $0x448] sm:$0xf0] }
 0x382   : > { %v3747_v19 = vpop.f32.mrf.mxu2  ;;  %v3672_v6 = vpop.f32.mrf.mxu0 }
 0x383   : > { %v3748_v34 = vadd.f32 %v3747_v19, %v3709_v61  ;;  %v3711_v17 = vpop.f32.mrf.mxu1  ;;  %v3673_v40 = vadd.f32 %v3672_v6, %v7903_v45  ;;  %v5639_v45 = vld [vmem:[#allocation7 + $0x8f8] sm:$0xf0]  ;;  %v5066_v61 = vor.u32 %v5786_v29, %v5063_v13  ;;  %v5834_v19 = vld [vmem:[#allocation7 + $0x5e4] sm:$0xf]  ;;  %v5423_v29 = vld [vmem:[#allocation7 + $0x748] sm:$0xf0] }
 0x384   : > { %v3786_v32 = vpop.f32.mrf.mxu3  ;;  %v5642_v12 = vor.u32 %v5930_v18, %v5639_v45  ;;  %v5255_v6 = vld [vmem:[#allocation7 + $0x5f8] sm:$0xf0]  ;;  %v5924_v13 = vld [vmem:[#allocation7 + $0x8b4] sm:$0xf] }
 0x385   : > { %v3787_v41 = vadd.f32 %v3786_v32, %v3748_v34  ;;  %3837 = vmatmul.bf16.gmra.mxu0 %v7444_v55  ;;  %3876 = vmatmul.bf16.gmra.mxu1 %v7462_v11  ;;  %v3712_v33 = vadd.f32 %v3711_v17, %v3673_v40  ;;  %v5258_v59 = vor.u32 %v5834_v19, %v5255_v6 }
 0x386   : > { %4121 = vmatpush.bf16.msra.mxu0 %v5066_v61  ;;  %4238 = vmatpush.bf16.msra.mxu3 %v5642_v12 }
 0x387   : > { %4298 = vst [vmem:[%s7668_s21 + $0xa8] sm:$0xff] %v3787_v41  ;;  %3915 = vmatmul.bf16.gmra.mxu2 %v7477_v21  ;;  %4160 = vmatpush.bf16.msra.mxu1 %v5258_v59 }
 0x389   : > { %3954 = vmatmul.bf16.gmra.mxu3 %v7495_v47 }
 0x38a   : > { %v3750_v58 = vpop.f32.mrf.mxu2  ;;  %v3674_v52 = vpop.f32.mrf.mxu0 }
 0x38b   : > { %v3751_v39 = vadd.f32 %v3750_v58, %v3712_v33  ;;  %v3713_v37 = vpop.f32.mrf.mxu1  ;;  %v3675_v4 = vadd.f32 %v3674_v52, %v7908_v9  ;;  %v8422_v9 = vld [vmem:[#allocation35_spill] sm:$0xff]  ;;  %v5426_v58 = vor.u32 %v5876_v31, %v5423_v29  ;;  %v5780_v52 = vld [vmem:[#allocation7 + $0x434] sm:$0xf] }
 0x38c   : > { %v3789_v38 = vpop.f32.mrf.mxu3  ;;  %v5042_v45 = vor.u32 %v5780_v52, %v5039_v26  ;;  %v5591_v29 = vld [vmem:[#allocation7 + $0x898] sm:$0xf0] }
 0x38d   : > { %v3790_v43 = vadd.f32 %v3789_v38, %v3751_v39  ;;  %v3714_v53 = vadd.f32 %v3713_v37, %v3675_v4  ;;  %v5615_v39 = vld [vmem:[#allocation7 + $0x8c8] sm:$0xf0]  ;;  %4200 = vmatpush.bf16.msra.mxu2 %v5426_v58 }
 0x38e   : > { %v5231_v37 = vld [vmem:[#allocation7 + $0x5c8] sm:$0xf0]  ;;  %v5618_v38 = vor.u32 %v5924_v13, %v5615_v39  ;;  %4122 = vmatpush.bf16.msra.mxu0 %v5042_v45 }
 0x38f   : > { %4304 = vst [vmem:[%s7668_s21 + $0xd8] sm:$0xff] %v3790_v43 }
 0x390   : > { %4239 = vmatpush.bf16.msra.mxu3 %v5618_v38 }
 0x392   : > { %v3752_v34 = vpop.f32.mrf.mxu2  ;;  %v3677_v17 = vpop.f32.mrf.mxu0 }
 0x393   : > { %v3753_v32 = vadd.f32 %v3752_v34, %v3714_v53  ;;  %v3716_v41 = vpop.f32.mrf.mxu1  ;;  %v3678_v24 = vadd.f32 %v3677_v17, %v7917_v63  ;;  %v5828_v63 = vld [vmem:[#allocation7 + $0x5b4] sm:$0xf]  ;;  %v5870_v34 = vld [vmem:[#allocation7 + $0x704] sm:$0xf]  ;;  %v5399_v17 = vld [vmem:[#allocation7 + $0x718] sm:$0xf0] }
 0x394   : > { %v3791_v40 = vpop.f32.mrf.mxu3  ;;  %v5234_v43 = vor.u32 %v5828_v63, %v5231_v37  ;;  %v8423_v63 = vld [vmem:[#allocation28_spill] sm:$0xff]  ;;  %v8424_v37 = vld [vmem:[#allocation29_spill] sm:$0xff] }
 0x395   : > { %v3792_v33 = vadd.f32 %v3791_v40, %v3753_v32  ;;  %3842 = vmatmul.bf16.gmra.mxu0 %v7538_v46  ;;  %3881 = vmatmul.bf16.gmra.mxu1 %v8422_v9  ;;  %v3717_v18 = vadd.f32 %v3716_v41, %v3678_v24  ;;  %v5402_v32 = vor.u32 %v5870_v34, %v5399_v17  ;;  %v5774_v41 = vld [vmem:[#allocation7 + $0x404] sm:$0xf]  ;;  %v5015_v40 = vld [vmem:[#allocation7 + $0x418] sm:$0xf0]  ;;  %v5864_v17 = vld [vmem:[#allocation7 + $0x6d4] sm:$0xf] }
 0x396   : > { %4161 = vmatpush.bf16.msra.mxu1 %v5234_v43  ;;  %v5018_v31 = vor.u32 %v5774_v41, %v5015_v40  ;;  %v5768_v41 = vld [vmem:[#allocation7 + $0x3d4] sm:$0xf]  ;;  %v4991_v40 = vld [vmem:[#allocation7 + $0x3e8] sm:$0xf0] }
 0x397   : > { %4310 = vst [vmem:[%s7668_s21 + $0x108] sm:$0xff] %v3792_v33  ;;  %3920 = vmatmul.bf16.gmra.mxu2 %v7550_v44  ;;  %v5918_v33 = vld [vmem:[#allocation7 + $0x884] sm:$0xf] }
 0x398   : > { %4201 = vmatpush.bf16.msra.mxu2 %v5402_v32  ;;  %v5594_v26 = vor.u32 %v5918_v33, %v5591_v29  ;;  %4123 = vmatpush.bf16.msra.mxu0 %v5018_v31  ;;  %v5375_v32 = vld [vmem:[#allocation7 + $0x6e8] sm:$0xf0]  ;;  %v5912_v33 = vld [vmem:[#allocation7 + $0x854] sm:$0xf]  ;;  %v4994_v31 = vor.u32 %v5768_v41, %v4991_v40 }
 0x399   : > { %3959 = vmatmul.bf16.gmra.mxu3 %v7553_v14  ;;  %v5816_v29 = vld [vmem:[#allocation7 + $0x554] sm:$0xf] }
 0x39a   : > { %v3755_v61 = vpop.f32.mrf.mxu2  ;;  %v3679_v12 = vpop.f32.mrf.mxu0  ;;  %4240 = vmatpush.bf16.msra.mxu3 %v5594_v26 }
 0x39b   : > { %v3756_v4 = vadd.f32 %v3755_v61, %v3717_v18  ;;  %v3718_v19 = vpop.f32.mrf.mxu1  ;;  %v3680_v53 = vadd.f32 %v3679_v12, %v7922_v60  ;;  %v5822_v61 = vld [vmem:[#allocation7 + $0x584] sm:$0xf]  ;;  %v5207_v12 = vld [vmem:[#allocation7 + $0x598] sm:$0xf0] }
 0x39c   : > { %v3794_v6 = vpop.f32.mrf.mxu3  ;;  %v5210_v38 = vor.u32 %v5822_v61, %v5207_v12  ;;  %4124 = vmatpush.bf16.msra.mxu0 %v4994_v31  ;;  %v8425_v12 = vld [vmem:[#allocation30_spill] sm:$0xff] }
 0x39d   : > { %v3795_v59 = vadd.f32 %v3794_v6, %v3756_v4  ;;  %v3719_v24 = vadd.f32 %v3718_v19, %v3680_v53  ;;  %v5159_v31 = vld [vmem:[#allocation7 + $0x538] sm:$0xf0] }
 0x39e   : > { %4162 = vmatpush.bf16.msra.mxu1 %v5210_v38  ;;  %v8426_v38 = vld [vmem:[#allocation34_spill] sm:$0xff] }
 0x39f   : > { %4316 = vst [vmem:[%s7668_s21 + $0x138] sm:$0xff] %v3795_v59 }
 0x3a2   : > { %v3757_v58 = vpop.f32.mrf.mxu2  ;;  %v3682_v52 = vpop.f32.mrf.mxu0 }
 0x3a3   : > { %v3758_v13 = vadd.f32 %v3757_v58, %v3719_v24  ;;  %v3721_v18 = vpop.f32.mrf.mxu1  ;;  %v3683_v39 = vadd.f32 %v3682_v52, %v7931_v22  ;;  %v5567_v24 = vld [vmem:[#allocation7 + $0x868] sm:$0xf0] }
 0x3a4   : > { %v3796_v45 = vpop.f32.mrf.mxu3  ;;  %v5183_v58 = vld [vmem:[#allocation7 + $0x568] sm:$0xf0] }
 0x3a5   : > { %v3797_v60 = vadd.f32 %v3796_v45, %v3758_v13  ;;  %3973 = vmatmul.bf16.vlgmr.msrb.gmra.mxu0 %v8423_v63  ;;  %4012 = vmatmul.bf16.vlgmr.msrb.gmra.mxu1 %v8424_v37  ;;  %v3722_v43 = vadd.f32 %v3721_v18, %v3683_v39  ;;  %v5186_v52 = vor.u32 %v5816_v29, %v5183_v58  ;;  %v7998_v29 = vld [vmem:[#allocation8] sm:$0x3f] }
 0x3a6   : > { %v8001_v58 = vperm.slane %v7998_v29, 4 }
 0x3a7   : > { %4322 = vst [vmem:[%s7668_s21 + $0x168] sm:$0xff] %v3797_v60  ;;  %4051 = vmatmul.bf16.vlgmr.msrb.gmra.mxu2 %v7072_v56  ;;  %v5378_v56 = vor.u32 %v5864_v17, %v5375_v32  ;;  %4163 = vmatpush.bf16.msra.mxu1 %v5186_v52  ;;  %v5906_v17 = vld [vmem:[#allocation7 + $0x824] sm:$0xf] }
 0x3a9   : > { %4090 = vmatmul.bf16.vlgmr.msrb.gmra.mxu3 %v8410_v49  ;;  %v5570_v49 = vor.u32 %v5912_v33, %v5567_v24  ;;  %4202 = vmatpush.bf16.msra.mxu2 %v5378_v56 }
 0x3aa   : > { %v3760_v4 = vpop.f32.mrf.mxu2  ;;  %v3684_v19 = vpop.f32.mrf.mxu0 }
 0x3ab   : > { %v3761_v6 = vadd.f32 %v3760_v4, %v3722_v43  ;;  %v3723_v59 = vpop.f32.mrf.mxu1  ;;  %v3685_v34 = vadd.f32 %v3684_v19, %v7936_v36  ;;  %4241 = vmatpush.bf16.msra.mxu3 %v5570_v49  ;;  %v5858_v4 = vld [vmem:[#allocation7 + $0x6a4] sm:$0xf]  ;;  %v5351_v19 = vld [vmem:[#allocation7 + $0x6b8] sm:$0xf0] }
 0x3ac   : > { %v3799_v22 = vpop.f32.mrf.mxu3 }
 0x3ad   : > { %v3800_v53 = vadd.f32 %v3799_v22, %v3761_v6  ;;  %v3724_v26 = vadd.f32 %v3723_v59, %v3685_v34  ;;  %v5762_v6 = vld [vmem:[#allocation7 + $0x3a4] sm:$0xf]  ;;  %v4967_v34 = vld [vmem:[#allocation7 + $0x3b8] sm:$0xf0] }
 0x3ae   : > { %v4970_v56 = vor.u32 %v5762_v6, %v4967_v34  ;;  %v4943_v6 = vld [vmem:[#allocation7 + $0x388] sm:$0xf0] }
 0x3af   : > { %4328 = vst [vmem:[%s7668_s21 + $0x198] sm:$0xff] %v3800_v53  ;;  %v5354_v53 = vor.u32 %v5858_v4, %v5351_v19  ;;  %v5756_v4 = vld [vmem:[#allocation7 + $0x374] sm:$0xf] }
 0x3b0   : > { %4125 = vmatpush.bf16.msra.mxu0 %v4970_v56 }
 0x3b1   : > { %4203 = vmatpush.bf16.msra.mxu2 %v5354_v53  ;;  %v4946_v53 = vor.u32 %v5756_v4, %v4943_v6 }
 0x3b2   : > { %v3762_v13 = vpop.f32.mrf.mxu2  ;;  %v3687_v36 = vpop.f32.mrf.mxu0 }
 0x3b3   : > { %v3763_v18 = vadd.f32 %v3762_v13, %v3724_v26  ;;  %v3726_v45 = vpop.f32.mrf.mxu1  ;;  %v3688_v61 = vadd.f32 %v3687_v36, %v7945_v3  ;;  %v5543_v3 = vld [vmem:[#allocation7 + $0x838] sm:$0xf0] }
 0x3b4   : > { %v3801_v60 = vpop.f32.mrf.mxu3  ;;  %v5546_v40 = vor.u32 %v5906_v17, %v5543_v3  ;;  %4126 = vmatpush.bf16.msra.mxu0 %v4946_v53  ;;  %v5804_v17 = vld [vmem:[#allocation7 + $0x4f4] sm:$0xf]  ;;  %v5135_v3 = vld [vmem:[#allocation7 + $0x508] sm:$0xf0] }
 0x3b5   : > { %v3802_v39 = vadd.f32 %v3801_v60, %v3763_v18  ;;  %3978 = vmatmul.bf16.gmra.mxu0 %v8425_v12  ;;  %4017 = vmatmul.bf16.gmra.mxu1 %v8426_v38  ;;  %v3727_v43 = vadd.f32 %v3726_v45, %v3688_v61  ;;  %v5852_v61 = vld [vmem:[#allocation7 + $0x674] sm:$0xf]  ;;  %v5138_v56 = vor.u32 %v5804_v17, %v5135_v3 }
 0x3b6   : > { %4242 = vmatpush.bf16.msra.mxu3 %v5546_v40 }
 0x3b7   : > { %4334 = vst [vmem:[%s7668_s21 + $0x1c8] sm:$0xff] %v3802_v39  ;;  %4056 = vmatmul.bf16.gmra.mxu2 %v8411_v10 }
 0x3b9   : > { %4095 = vmatmul.bf16.gmra.mxu3 %v8412_v15  ;;  %v5810_v15 = vld [vmem:[#allocation7 + $0x524] sm:$0xf] }
 0x3ba   : > { %v3765_v59 = vpop.f32.mrf.mxu2  ;;  %v3689_v22 = vpop.f32.mrf.mxu0  ;;  %v5162_v49 = vor.u32 %v5810_v15, %v5159_v31  ;;  %v5846_v31 = vld [vmem:[#allocation7 + $0x644] sm:$0xf] }
 0x3bb   : > { %v3766_v32 = vadd.f32 %v3765_v59, %v3727_v43  ;;  %v3728_v41 = vpop.f32.mrf.mxu1  ;;  %v3690_v24 = vadd.f32 %v3689_v22, %v7949_v16  ;;  %v5327_v43 = vld [vmem:[#allocation7 + $0x688] sm:$0xf0]  ;;  %v5900_v59 = vld [vmem:[#allocation7 + $0x7f4] sm:$0xf] }
 0x3bc   : > { %v3804_v33 = vpop.f32.mrf.mxu3  ;;  %4164 = vmatpush.bf16.msra.mxu1 %v5162_v49  ;;  %v5330_v19 = vor.u32 %v5852_v61, %v5327_v43  ;;  %v5519_v22 = vld [vmem:[#allocation7 + $0x808] sm:$0xf0]  ;;  %v5303_v49 = vld [vmem:[#allocation7 + $0x658] sm:$0xf0] }
 0x3bd   : > { %v3805_v10 = vadd.f32 %v3804_v33, %v3766_v32  ;;  %v3729_v52 = vadd.f32 %v3728_v41, %v3690_v24  ;;  %v5522_v34 = vor.u32 %v5900_v59, %v5519_v22  ;;  %v5798_v59 = vld [vmem:[#allocation7 + $0x4c4] sm:$0xf]  ;;  %v5111_v22 = vld [vmem:[#allocation7 + $0x4d8] sm:$0xf0] }
 0x3be   : > { %4204 = vmatpush.bf16.msra.mxu2 %v5330_v19  ;;  %v5114_v53 = vor.u32 %v5798_v59, %v5111_v22 }
 0x3bf   : > { %4340 = vst [vmem:[%s7668_s21 + $0x1f8] sm:$0xff] %v3805_v10  ;;  %4243 = vmatpush.bf16.msra.mxu3 %v5522_v34 }
 0x3c0   : > { %4165 = vmatpush.bf16.msra.mxu1 %v5138_v56 }
 0x3c2   : > { %v3767_v26 = vpop.f32.mrf.mxu2  ;;  %v3818_v13 = vpop.f32.mrf.mxu0 }
 0x3c3   : > { %v3768_v36 = vadd.f32 %v3767_v26, %v3729_v52  ;;  %v3819_v18 = vadd.f32 %v3818_v13, %v8001_v58  ;;  %v3857_v16 = vpop.f32.mrf.mxu1  ;;  %v5750_v52 = vld [vmem:[#allocation7 + $0x344] sm:$0xf]  ;;  %v4919_v26 = vld [vmem:[#allocation7 + $0x358] sm:$0xf0] }
 0x3c4   : > { %v3806_v45 = vpop.f32.mrf.mxu3  ;;  %v5894_v13 = vld [vmem:[#allocation7 + $0x7c4] sm:$0xf]  ;;  %4166 = vmatpush.bf16.msra.mxu1 %v5114_v53 }
 0x3c5   : > { %v3807_v60 = vadd.f32 %v3806_v45, %v3768_v36  ;;  %v3858_v39 = vadd.f32 %v3857_v16, %v3819_v18  ;;  %3983 = vmatmul.bf16.gmra.mxu0 %v7486_v48  ;;  %4022 = vmatmul.bf16.gmra.mxu1 %v7488_v51  ;;  %v5495_v36 = vld [vmem:[#allocation7 + $0x7d8] sm:$0xf0]  ;;  %v4922_v18 = vor.u32 %v5750_v52, %v4919_v26  ;;  %v5888_v52 = vld [vmem:[#allocation7 + $0x794] sm:$0xf] }
 0x3c6   : > { %v5498_v16 = vor.u32 %v5894_v13, %v5495_v36  ;;  %v5087_v13 = vld [vmem:[#allocation7 + $0x4a8] sm:$0xf0] }
 0x3c7   : > { %4346 = vst [vmem:[%s7668_s21 + $0x228] sm:$0xff] %v3807_v60  ;;  %4061 = vmatmul.bf16.gmra.mxu2 %v7264_v27  ;;  %4127 = vmatpush.bf16.msra.mxu0 %v4922_v18 }
 0x3c8   : > { %4244 = vmatpush.bf16.msra.mxu3 %v5498_v16 }
 0x3c9   : > { %4100 = vmatmul.bf16.gmra.mxu3 %v7267_v2  ;;  %v5306_v2 = vor.u32 %v5846_v31, %v5303_v49  ;;  %v4895_v49 = vld [vmem:[#allocation7 + $0x328] sm:$0xf0] }
 0x3ca   : > { %v3896_v32 = vpop.f32.mrf.mxu2  ;;  %v3820_v41 = vpop.f32.mrf.mxu0 }
 0x3cb   : > { %v3897_v40 = vadd.f32 %v3896_v32, %v3858_v39  ;;  %v3821_v33 = vadd.f32 %v3820_v41, %v8001_v58  ;;  %v3859_v10 = vpop.f32.mrf.mxu1  ;;  %4205 = vmatpush.bf16.msra.mxu2 %v5306_v2 }
 0x3cc   : > { %v3935_v24 = vpop.f32.mrf.mxu3 }
 0x3cd   : > { %v8010_v15 = vadd.f32 %v3935_v24, %v3897_v40  ;;  %v3860_v27 = vadd.f32 %v3859_v10, %v3821_v33  ;;  %v5840_v10 = vld [vmem:[#allocation7 + $0x614] sm:$0xf]  ;;  %v5279_v24 = vld [vmem:[#allocation7 + $0x628] sm:$0xf0] }
 0x3ce   : > { %v5282_v31 = vor.u32 %v5840_v10, %v5279_v24 }
 0x3d0   : > { %4206 = vmatpush.bf16.msra.mxu2 %v5282_v31 }
 0x3d2   : > { %v3898_v45 = vpop.f32.mrf.mxu2  ;;  %v3823_v60 = vpop.f32.mrf.mxu0 }
 0x3d3   : > { %v3899_v39 = vadd.f32 %v3898_v45, %v3860_v27  ;;  %v3824_v61 = vadd.f32 %v3823_v60, %v8001_v58  ;;  %v3862_v43 = vpop.f32.mrf.mxu1  ;;  %v5744_v27 = vld [vmem:[#allocation7 + $0x314] sm:$0xf] }
 0x3d4   : > { %v3937_v4 = vpop.f32.mrf.mxu3  ;;  %v4898_v2 = vor.u32 %v5744_v27, %v4895_v49 }
 0x3d5   : > { %v8013_v19 = vadd.f32 %v3937_v4, %v3899_v39  ;;  %v3863_v6 = vadd.f32 %v3862_v43, %v3824_v61  ;;  %3988 = vmatmul.bf16.gmra.mxu0 %v7544_v20  ;;  %4027 = vmatmul.bf16.gmra.mxu1 %v7546_v5 }
 0x3d6   : > { %4128 = vmatpush.bf16.msra.mxu0 %v4898_v2 }
 0x3d7   : > { %4066 = vmatmul.bf16.gmra.mxu2 %v7348_v25  ;;  %v5471_v25 = vld [vmem:[#allocation7 + $0x7a8] sm:$0xf0] }
 0x3d8   : > { %v5474_v26 = vor.u32 %v5888_v52, %v5471_v25 }
 0x3d9   : > { %4105 = vmatmul.bf16.gmra.mxu3 %v7361_v30  ;;  %v5792_v30 = vld [vmem:[#allocation7 + $0x494] sm:$0xf] }
 0x3da   : > { %v3901_v34 = vpop.f32.mrf.mxu2  ;;  %v3825_v17 = vpop.f32.mrf.mxu0  ;;  %v5090_v36 = vor.u32 %v5792_v30, %v5087_v13  ;;  %4245 = vmatpush.bf16.msra.mxu3 %v5474_v26 }
 0x3db   : > { %v3902_v3 = vadd.f32 %v3901_v34, %v3863_v6  ;;  %v3826_v32 = vadd.f32 %v3825_v17, %v8001_v58  ;;  %v3864_v41 = vpop.f32.mrf.mxu1 }
 0x3dc   : > { %v3940_v56 = vpop.f32.mrf.mxu3  ;;  %4167 = vmatpush.bf16.msra.mxu1 %v5090_v36 }
 0x3dd   : > { %v8020_v40 = vadd.f32 %v3940_v56, %v3902_v3  ;;  %v3865_v33 = vadd.f32 %v3864_v41, %v3826_v32 }
 0x3e2   : > { %v3903_v18 = vpop.f32.mrf.mxu2  ;;  %v3828_v16 = vpop.f32.mrf.mxu0 }
 0x3e3   : > { %v3904_v45 = vadd.f32 %v3903_v18, %v3865_v33  ;;  %v3829_v60 = vadd.f32 %v3828_v16, %v8001_v58  ;;  %v3867_v39 = vpop.f32.mrf.mxu1 }
 0x3e4   : > { %v3942_v61 = vpop.f32.mrf.mxu3 }
 0x3e5   : > { %v8023_v43 = vadd.f32 %v3942_v61, %v3904_v45  ;;  %v3868_v4 = vadd.f32 %v3867_v39, %v3829_v60  ;;  %3993 = vmatmul.bf16.gmra.mxu0 %v7568_v54  ;;  %4032 = vmatmul.bf16.gmra.mxu1 %v7570_v8 }
 0x3e7   : > { %4071 = vmatmul.bf16.gmra.mxu2 %v7444_v55 }
 0x3e9   : > { %4110 = vmatmul.bf16.gmra.mxu3 %v7462_v11 }
 0x3ea   : > { %v3906_v6 = vpop.f32.mrf.mxu2  ;;  %v3830_v59 = vpop.f32.mrf.mxu0 }
 0x3eb   : > { %v3907_v22 = vadd.f32 %v3906_v6, %v3868_v4  ;;  %v3831_v53 = vadd.f32 %v3830_v59, %v8001_v58  ;;  %v3869_v34 = vpop.f32.mrf.mxu1 }
 0x3ec   : > { %v3945_v17 = vpop.f32.mrf.mxu3 }
 0x3ed   : > { %v8030_v3 = vadd.f32 %v3945_v17, %v3907_v22  ;;  %v3870_v32 = vadd.f32 %v3869_v34, %v3831_v53 }
 0x3f2   : > { %v3908_v41 = vpop.f32.mrf.mxu2  ;;  %v3833_v56 = vpop.f32.mrf.mxu0 }
 0x3f3   : > { %v3909_v33 = vadd.f32 %v3908_v41, %v3870_v32  ;;  %v3834_v10 = vadd.f32 %v3833_v56, %v8001_v58  ;;  %v3872_v24 = vpop.f32.mrf.mxu1 }
 0x3f4   : > { %v3947_v27 = vpop.f32.mrf.mxu3 }
 0x3f5   : > { %v8033_v55 = vadd.f32 %v3947_v27, %v3909_v33  ;;  %v3873_v11 = vadd.f32 %v3872_v24, %v3834_v10  ;;  %3998 = vmatmul.bf16.gmra.mxu0 %v7587_v0  ;;  %4037 = vmatmul.bf16.gmra.mxu1 %v7589_v42 }
 0x3f7   : > { %4076 = vmatmul.bf16.gmra.mxu2 %v7538_v46 }
 0x3f9   : > { %4115 = vmatmul.bf16.gmra.mxu3 %v8422_v9 }
 0x3fa   : > { %v3911_v31 = vpop.f32.mrf.mxu2  ;;  %v3835_v49 = vpop.f32.mrf.mxu0 }
 0x3fb   : > { %v3912_v52 = vadd.f32 %v3911_v31, %v3873_v11  ;;  %v3836_v25 = vadd.f32 %v3835_v49, %v8001_v58  ;;  %v3874_v2 = vpop.f32.mrf.mxu1 }
 0x3fc   : > { %v3950_v26 = vpop.f32.mrf.mxu3 }
 0x3fd   : > { %v8040_v30 = vadd.f32 %v3950_v26, %v3912_v52  ;;  %v3875_v13 = vadd.f32 %v3874_v2, %v3836_v25 }
 0x402   : > { %v3913_v36 = vpop.f32.mrf.mxu2  ;;  %v3838_v18 = vpop.f32.mrf.mxu0 }
 0x403   : > { %v3914_v16 = vadd.f32 %v3913_v36, %v3875_v13  ;;  %v3839_v45 = vadd.f32 %v3838_v18, %v8001_v58  ;;  %v3877_v60 = vpop.f32.mrf.mxu1 }
 0x404   : > { %v3952_v39 = vpop.f32.mrf.mxu3 }
 0x405   : > { %v8043_v46 = vadd.f32 %v3952_v39, %v3914_v16  ;;  %v3878_v9 = vadd.f32 %v3877_v60, %v3839_v45  ;;  %4129 = vmatmul.bf16.vlgmr.msra.gmra.mxu0 %v8413_v62  ;;  %4168 = vmatmul.bf16.vlgmr.msra.gmra.mxu1 %v8414_v1 }
 0x407   : > { %4207 = vmatmul.bf16.vlgmr.msra.gmra.mxu2 %v8423_v63 }
 0x409   : > { %4246 = vmatmul.bf16.vlgmr.msra.gmra.mxu3 %v8424_v37 }
 0x40a   : > { %v3916_v61 = vpop.f32.mrf.mxu2  ;;  %v3840_v4 = vpop.f32.mrf.mxu0 }
 0x40b   : > { %v3917_v6 = vadd.f32 %v3916_v61, %v3878_v9  ;;  %v3841_v59 = vadd.f32 %v3840_v4, %v8001_v58  ;;  %v3879_v22 = vpop.f32.mrf.mxu1 }
 0x40c   : > { %v3955_v53 = vpop.f32.mrf.mxu3 }
 0x40d   : > { %v8050_v34 = vadd.f32 %v3955_v53, %v3917_v6  ;;  %v3880_v17 = vadd.f32 %v3879_v22, %v3841_v59 }
 0x412   : > { %v3918_v32 = vpop.f32.mrf.mxu2  ;;  %v3843_v41 = vpop.f32.mrf.mxu0 }
 0x413   : > { %v3919_v56 = vadd.f32 %v3918_v32, %v3880_v17  ;;  %v3844_v62 = vadd.f32 %v3843_v41, %v8001_v58  ;;  %v3882_v1 = vpop.f32.mrf.mxu1 }
 0x414   : > { %v3957_v33 = vpop.f32.mrf.mxu3 }
 0x415   : > { %v8053_v63 = vadd.f32 %v3957_v33, %v3919_v56  ;;  %v3883_v37 = vadd.f32 %v3882_v1, %v3844_v62  ;;  %4134 = vmatmul.bf16.gmra.mxu0 %v7191_v7  ;;  %4173 = vmatmul.bf16.gmra.mxu1 %v8421_v50 }
 0x417   : > { %4212 = vmatmul.bf16.gmra.mxu2 %v8425_v12 }
 0x419   : > { %4251 = vmatmul.bf16.gmra.mxu3 %v8426_v38 }
 0x41a   : > { %v3921_v10 = vpop.f32.mrf.mxu2  ;;  %v3845_v24 = vpop.f32.mrf.mxu0 }
 0x41b   : > { %v3922_v27 = vadd.f32 %v3921_v10, %v3883_v37  ;;  %v3846_v11 = vadd.f32 %v3845_v24, %v8001_v58  ;;  %v3884_v31 = vpop.f32.mrf.mxu1  ;;  %v8070_v58 = vperm.slane %v7998_v29, 5 }
 0x41c   : > { %v3960_v49 = vpop.f32.mrf.mxu3 }
 0x41d   : > { %v8060_v52 = vadd.f32 %v3960_v49, %v3922_v27  ;;  %v3885_v25 = vadd.f32 %v3884_v31, %v3846_v11 }
 0x422   : > { %v3923_v2 = vpop.f32.mrf.mxu2  ;;  %v3974_v26 = vpop.f32.mrf.mxu0 }
 0x423   : > { %v3924_v7 = vadd.f32 %v3923_v2, %v3885_v25  ;;  %v3975_v50 = vadd.f32 %v3974_v26, %v8010_v15  ;;  %v4013_v13 = vpop.f32.mrf.mxu1 }
 0x424   : > { %v3962_v12 = vpop.f32.mrf.mxu3 }
 0x425   : > { %v8063_v36 = vadd.f32 %v3962_v12, %v3924_v7  ;;  %v4014_v38 = vadd.f32 %v4013_v13, %v3975_v50  ;;  %4139 = vmatmul.bf16.gmra.mxu0 %v8416_v57  ;;  %4178 = vmatmul.bf16.gmra.mxu1 %v8417_v35 }
 0x427   : > { %4281 = vst [vmem:[%s7668_s21 + $0x20] sm:$0xff] %v4014_v38  ;;  %4217 = vmatmul.bf16.gmra.mxu2 %v7486_v48 }
 0x429   : > { %4256 = vmatmul.bf16.gmra.mxu3 %v7488_v51 }
 0x42a   : > { %v4052_v18 = vpop.f32.mrf.mxu2  ;;  %v3976_v15 = vpop.f32.mrf.mxu0 }
 0x42b   : > { %v4053_v16 = vadd.f32 %v4052_v18, %v8070_v58  ;;  %v3977_v45 = vadd.f32 %v3976_v15, %v8013_v19  ;;  %v4015_v60 = vpop.f32.mrf.mxu1 }
 0x42c   : > { %v4091_v39 = vpop.f32.mrf.mxu3 }
 0x42d   : > { %v8075_v57 = vadd.f32 %v4091_v39, %v4053_v16  ;;  %v4016_v35 = vadd.f32 %v4015_v60, %v3977_v45 }
 0x42f   : > { %4287 = vst [vmem:[%s7668_s21 + $0x50] sm:$0xff] %v4016_v35 }
 0x432   : > { %v4054_v9 = vpop.f32.mrf.mxu2  ;;  %v3979_v48 = vpop.f32.mrf.mxu0 }
 0x433   : > { %v4055_v29 = vadd.f32 %v4054_v9, %v8070_v58  ;;  %v3980_v61 = vadd.f32 %v3979_v48, %v8020_v40  ;;  %v4018_v51 = vpop.f32.mrf.mxu1 }
 0x434   : > { %v4093_v4 = vpop.f32.mrf.mxu3 }
 0x435   : > { %v8080_v6 = vadd.f32 %v4093_v4, %v4055_v29  ;;  %v4019_v59 = vadd.f32 %v4018_v51, %v3980_v61  ;;  %4144 = vmatmul.bf16.gmra.mxu0 %v7377_v28  ;;  %4183 = vmatmul.bf16.gmra.mxu1 %v7397_v23 }
 0x437   : > { %4293 = vst [vmem:[%s7668_s21 + $0x80] sm:$0xff] %v4019_v59  ;;  %4222 = vmatmul.bf16.gmra.mxu2 %v7544_v20 }
 0x439   : > { %4261 = vmatmul.bf16.gmra.mxu3 %v7546_v5 }
 0x43a   : > { %v4057_v19 = vpop.f32.mrf.mxu2  ;;  %v3981_v22 = vpop.f32.mrf.mxu0 }
 0x43b   : > { %v4058_v53 = vadd.f32 %v4057_v19, %v8070_v58  ;;  %v3982_v40 = vadd.f32 %v3981_v22, %v8023_v43  ;;  %v4020_v17 = vpop.f32.mrf.mxu1 }
 0x43c   : > { %v4096_v32 = vpop.f32.mrf.mxu3 }
 0x43d   : > { %v8089_v41 = vadd.f32 %v4096_v32, %v4058_v53  ;;  %v4021_v56 = vadd.f32 %v4020_v17, %v3982_v40 }
 0x43f   : > { %4299 = vst [vmem:[%s7668_s21 + $0xb0] sm:$0xff] %v4021_v56 }
 0x442   : > { %v4059_v28 = vpop.f32.mrf.mxu2  ;;  %v3984_v23 = vpop.f32.mrf.mxu0 }
 0x443   : > { %v4060_v62 = vadd.f32 %v4059_v28, %v8070_v58  ;;  %v3985_v20 = vadd.f32 %v3984_v23, %v8030_v3  ;;  %v4023_v5 = vpop.f32.mrf.mxu1 }
 0x444   : > { %v4098_v1 = vpop.f32.mrf.mxu3 }
 0x445   : > { %v8094_v33 = vadd.f32 %v4098_v1, %v4060_v62  ;;  %v4024_v37 = vadd.f32 %v4023_v5, %v3985_v20  ;;  %4149 = vmatmul.bf16.gmra.mxu0 %v7477_v21  ;;  %4188 = vmatmul.bf16.gmra.mxu1 %v7495_v47 }
 0x447   : > { %4305 = vst [vmem:[%s7668_s21 + $0xe0] sm:$0xff] %v4024_v37  ;;  %4227 = vmatmul.bf16.gmra.mxu2 %v7568_v54 }
 0x449   : > { %4266 = vmatmul.bf16.gmra.mxu3 %v7570_v8 }
 0x44a   : > { %v4062_v43 = vpop.f32.mrf.mxu2  ;;  %v3986_v10 = vpop.f32.mrf.mxu0 }
 0x44b   : > { %v4063_v24 = vadd.f32 %v4062_v43, %v8070_v58  ;;  %v3987_v3 = vadd.f32 %v3986_v10, %v8033_v55  ;;  %v4025_v27 = vpop.f32.mrf.mxu1 }
 0x44c   : > { %v4101_v11 = vpop.f32.mrf.mxu3 }
 0x44d   : > { %v8103_v31 = vadd.f32 %v4101_v11, %v4063_v24  ;;  %v4026_v49 = vadd.f32 %v4025_v27, %v3987_v3 }
 0x44f   : > { %4311 = vst [vmem:[%s7668_s21 + $0x110] sm:$0xff] %v4026_v49 }
 0x452   : > { %v4064_v21 = vpop.f32.mrf.mxu2  ;;  %v3989_v47 = vpop.f32.mrf.mxu0 }
 0x453   : > { %v4065_v25 = vadd.f32 %v4064_v21, %v8070_v58  ;;  %v3990_v54 = vadd.f32 %v3989_v47, %v8040_v30  ;;  %v4028_v8 = vpop.f32.mrf.mxu1 }
 0x454   : > { %v4103_v2 = vpop.f32.mrf.mxu3 }
 0x455   : > { %v8108_v26 = vadd.f32 %v4103_v2, %v4065_v25  ;;  %v4029_v7 = vadd.f32 %v4028_v8, %v3990_v54  ;;  %4154 = vmatmul.bf16.gmra.mxu0 %v7550_v44  ;;  %4193 = vmatmul.bf16.gmra.mxu1 %v7553_v14 }
 0x457   : > { %4317 = vst [vmem:[%s7668_s21 + $0x140] sm:$0xff] %v4029_v7  ;;  %4232 = vmatmul.bf16.gmra.mxu2 %v7587_v0 }
 0x459   : > { %4271 = vmatmul.bf16.gmra.mxu3 %v7589_v42 }
 0x45a   : > { %v4067_v55 = vpop.f32.mrf.mxu2  ;;  %v3991_v50 = vpop.f32.mrf.mxu0 }
 0x45b   : > { %v4068_v30 = vadd.f32 %v4067_v55, %v8070_v58  ;;  %v3992_v13 = vadd.f32 %v3991_v50, %v8043_v46  ;;  %v4030_v12 = vpop.f32.mrf.mxu1 }
 0x45c   : > { %v4106_v38 = vpop.f32.mrf.mxu3 }
 0x45d   : > { %v8117_v18 = vadd.f32 %v4106_v38, %v4068_v30  ;;  %v4031_v15 = vadd.f32 %v4030_v12, %v3992_v13 }
 0x45f   : > { %4323 = vst [vmem:[%s7668_s21 + $0x170] sm:$0xff] %v4031_v15 }
 0x462   : > { %v4069_v44 = vpop.f32.mrf.mxu2  ;;  %v3994_v14 = vpop.f32.mrf.mxu0 }
 0x463   : > { %v4070_v0 = vadd.f32 %v4069_v44, %v8070_v58  ;;  %v3995_v42 = vadd.f32 %v3994_v14, %v8050_v34  ;;  %v4033_v16 = vpop.f32.mrf.mxu1 }
 0x464   : > { %v4108_v45 = vpop.f32.mrf.mxu3 }
 0x465   : > { %v8122_v60 = vadd.f32 %v4108_v45, %v4070_v0  ;;  %v4034_v39 = vadd.f32 %v4033_v16, %v3995_v42 }
 0x467   : > { %4329 = vst [vmem:[%s7668_s21 + $0x1a0] sm:$0xff] %v4034_v39 }
 0x46a   : > { %v4072_v46 = vpop.f32.mrf.mxu2  ;;  %v3996_v35 = vpop.f32.mrf.mxu0 }
 0x46b   : > { %v4073_v9 = vadd.f32 %v4072_v46, %v8070_v58  ;;  %v3997_v48 = vadd.f32 %v3996_v35, %v8053_v63  ;;  %v4035_v29 = vpop.f32.mrf.mxu1 }
 0x46c   : > { %v4111_v61 = vpop.f32.mrf.mxu3 }
 0x46d   : > { %v8127_v51 = vadd.f32 %v4111_v61, %v4073_v9  ;;  %v4036_v4 = vadd.f32 %v4035_v29, %v3997_v48 }
 0x46f   : > { %4335 = vst [vmem:[%s7668_s21 + $0x1d0] sm:$0xff] %v4036_v4 }
 0x472   : > { %v4074_v34 = vpop.f32.mrf.mxu2  ;;  %v3999_v59 = vpop.f32.mrf.mxu0 }
 0x473   : > { %v4075_v19 = vadd.f32 %v4074_v34, %v8070_v58  ;;  %v4000_v22 = vadd.f32 %v3999_v59, %v8060_v52  ;;  %v4038_v53 = vpop.f32.mrf.mxu1 }
 0x474   : > { %v4113_v40 = vpop.f32.mrf.mxu3 }
 0x475   : > { %v8132_v17 = vadd.f32 %v4113_v40, %v4075_v19  ;;  %v4039_v32 = vadd.f32 %v4038_v53, %v4000_v22 }
 0x477   : > { %4341 = vst [vmem:[%s7668_s21 + $0x200] sm:$0xff] %v4039_v32 }
 0x47a   : > { %v4077_v63 = vpop.f32.mrf.mxu2  ;;  %v4001_v56 = vpop.f32.mrf.mxu0 }
 0x47b   : > { %v4078_v28 = vadd.f32 %v4077_v63, %v8070_v58  ;;  %v4002_v23 = vadd.f32 %v4001_v56, %v8063_v36  ;;  %v4040_v62 = vpop.f32.mrf.mxu1 }
 0x47c   : > { %v4116_v20 = vpop.f32.mrf.mxu3 }
 0x47d   : > { %v8137_v5 = vadd.f32 %v4116_v20, %v4078_v28  ;;  %v4041_v1 = vadd.f32 %v4040_v62, %v4002_v23 }
 0x47f   : > { %4347 = vst [vmem:[%s7668_s21 + $0x230] sm:$0xff] %v4041_v1 }
 0x482   : > { %v4079_v52 = vpop.f32.mrf.mxu2  ;;  %v4130_v37 = vpop.f32.mrf.mxu0 }
 0x483   : > { %v4080_v43 = vadd.f32 %v4079_v52, %v8070_v58  ;;  %v4169_v10 = vpop.f32.mrf.mxu1  ;;  %v4131_v27 = vadd.f32 %v4130_v37, %v8075_v57 }
 0x484   : > { %v4118_v24 = vpop.f32.mrf.mxu3 }
 0x485   : > { %v8141_v3 = vadd.f32 %v4118_v24, %v4080_v43  ;;  %v4170_v11 = vadd.f32 %v4169_v10, %v4131_v27 }
 0x48a   : > { %v4208_v49 = vpop.f32.mrf.mxu2  ;;  %v4132_v36 = vpop.f32.mrf.mxu0 }
 0x48b   : > { %v4209_v21 = vadd.f32 %v4208_v49, %v4170_v11  ;;  %v4171_v47 = vpop.f32.mrf.mxu1  ;;  %v4133_v8 = vadd.f32 %v4132_v36, %v8080_v6 }
 0x48c   : > { %v4247_v25 = vpop.f32.mrf.mxu3 }
 0x48d   : > { %v4248_v54 = vadd.f32 %v4247_v25, %v4209_v21  ;;  %v4172_v2 = vadd.f32 %v4171_v47, %v4133_v8 }
 0x48f   : > { %4282 = vst [vmem:[%s7668_s21 + $0x28] sm:$0xff] %v4248_v54 }
 0x492   : > { %v4210_v7 = vpop.f32.mrf.mxu2  ;;  %v4135_v58 = vpop.f32.mrf.mxu0 }
 0x493   : > { %v4211_v55 = vadd.f32 %v4210_v7, %v4172_v2  ;;  %v4174_v50 = vpop.f32.mrf.mxu1  ;;  %v4136_v57 = vadd.f32 %v4135_v58, %v8089_v41 }
 0x494   : > { %v4249_v30 = vpop.f32.mrf.mxu3 }
 0x495   : > { %v4250_v13 = vadd.f32 %v4249_v30, %v4211_v55  ;;  %v4175_v12 = vadd.f32 %v4174_v50, %v4136_v57 }
 0x497   : > { %4288 = vst [vmem:[%s7668_s21 + $0x58] sm:$0xff] %v4250_v13 }
 0x49a   : > { %v4213_v38 = vpop.f32.mrf.mxu2  ;;  %v4137_v15 = vpop.f32.mrf.mxu0 }
 0x49b   : > { %v4214_v44 = vadd.f32 %v4213_v38, %v4175_v12  ;;  %v4176_v14 = vpop.f32.mrf.mxu1  ;;  %v4138_v42 = vadd.f32 %v4137_v15, %v8094_v33 }
 0x49c   : > { %v4252_v0 = vpop.f32.mrf.mxu3 }
 0x49d   : > { %v4253_v6 = vadd.f32 %v4252_v0, %v4214_v44  ;;  %v4177_v16 = vadd.f32 %v4176_v14, %v4138_v42 }
 0x49f   : > { %4294 = vst [vmem:[%s7668_s21 + $0x88] sm:$0xff] %v4253_v6 }
 0x4a2   : > { %v4215_v45 = vpop.f32.mrf.mxu2  ;;  %v4140_v39 = vpop.f32.mrf.mxu0 }
 0x4a3   : > { %v4216_v46 = vadd.f32 %v4215_v45, %v4177_v16  ;;  %v4179_v35 = vpop.f32.mrf.mxu1  ;;  %v4141_v48 = vadd.f32 %v4140_v39, %v8103_v31 }
 0x4a4   : > { %v4254_v9 = vpop.f32.mrf.mxu3 }
 0x4a5   : > { %v4255_v41 = vadd.f32 %v4254_v9, %v4216_v46  ;;  %v4180_v29 = vadd.f32 %v4179_v35, %v4141_v48 }
 0x4a7   : > { %4300 = vst [vmem:[%s7668_s21 + $0xb8] sm:$0xff] %v4255_v41 }
 0x4aa   : > { %v4218_v61 = vpop.f32.mrf.mxu2  ;;  %v4142_v4 = vpop.f32.mrf.mxu0 }
 0x4ab   : > { %v4219_v34 = vadd.f32 %v4218_v61, %v4180_v29  ;;  %v4181_v59 = vpop.f32.mrf.mxu1  ;;  %v4143_v22 = vadd.f32 %v4142_v4, %v8108_v26 }
 0x4ac   : > { %v4257_v19 = vpop.f32.mrf.mxu3 }
 0x4ad   : > { %v4258_v33 = vadd.f32 %v4257_v19, %v4219_v34  ;;  %v4182_v53 = vadd.f32 %v4181_v59, %v4143_v22 }
 0x4af   : > { %4306 = vst [vmem:[%s7668_s21 + $0xe8] sm:$0xff] %v4258_v33 }
 0x4b2   : > { %v4220_v40 = vpop.f32.mrf.mxu2  ;;  %v4145_v32 = vpop.f32.mrf.mxu0 }
 0x4b3   : > { %v4221_v63 = vadd.f32 %v4220_v40, %v4182_v53  ;;  %v4184_v56 = vpop.f32.mrf.mxu1  ;;  %v4146_v23 = vadd.f32 %v4145_v32, %v8117_v18 }
 0x4b4   : > { %v4259_v28 = vpop.f32.mrf.mxu3 }
 0x4b5   : > { %v4260_v31 = vadd.f32 %v4259_v28, %v4221_v63  ;;  %v4185_v62 = vadd.f32 %v4184_v56, %v4146_v23 }
 0x4b7   : > { %4312 = vst [vmem:[%s7668_s21 + $0x118] sm:$0xff] %v4260_v31 }
 0x4ba   : > { %v4223_v20 = vpop.f32.mrf.mxu2  ;;  %v4147_v1 = vpop.f32.mrf.mxu0 }
 0x4bb   : > { %v4224_v52 = vadd.f32 %v4223_v20, %v4185_v62  ;;  %v4186_v37 = vpop.f32.mrf.mxu1  ;;  %v4148_v10 = vadd.f32 %v4147_v1, %v8122_v60 }
 0x4bc   : > { %v4262_v43 = vpop.f32.mrf.mxu3 }
 0x4bd   : > { %v4263_v26 = vadd.f32 %v4262_v43, %v4224_v52  ;;  %v4187_v24 = vadd.f32 %v4186_v37, %v4148_v10 }
 0x4bf   : > { %4318 = vst [vmem:[%s7668_s21 + $0x148] sm:$0xff] %v4263_v26 }
 0x4c2   : > { %v4225_v27 = vpop.f32.mrf.mxu2  ;;  %v4150_v11 = vpop.f32.mrf.mxu0 }
 0x4c3   : > { %v4226_v49 = vadd.f32 %v4225_v27, %v4187_v24  ;;  %v4189_v36 = vpop.f32.mrf.mxu1  ;;  %v4151_v47 = vadd.f32 %v4150_v11, %v8127_v51 }
 0x4c4   : > { %v4264_v21 = vpop.f32.mrf.mxu3 }
 0x4c5   : > { %v4265_v18 = vadd.f32 %v4264_v21, %v4226_v49  ;;  %v4190_v25 = vadd.f32 %v4189_v36, %v4151_v47 }
 0x4c7   : > { %4324 = vst [vmem:[%s7668_s21 + $0x178] sm:$0xff] %v4265_v18 }
 0x4ca   : > { %v4228_v54 = vpop.f32.mrf.mxu2  ;;  %v4152_v8 = vpop.f32.mrf.mxu0 }
 0x4cb   : > { %v4229_v2 = vadd.f32 %v4228_v54, %v4190_v25  ;;  %v4191_v58 = vpop.f32.mrf.mxu1  ;;  %v4153_v55 = vadd.f32 %v4152_v8, %v8132_v17 }
 0x4cc   : > { %v4267_v7 = vpop.f32.mrf.mxu3 }
 0x4cd   : > { %v4268_v60 = vadd.f32 %v4267_v7, %v4229_v2  ;;  %v4192_v50 = vadd.f32 %v4191_v58, %v4153_v55 }
 0x4cf   : > { %4330 = vst [vmem:[%s7668_s21 + $0x1a8] sm:$0xff] %v4268_v60 }
 0x4d2   : > { %v4230_v30 = vpop.f32.mrf.mxu2  ;;  %v4155_v13 = vpop.f32.mrf.mxu0 }
 0x4d3   : > { %v4231_v57 = vadd.f32 %v4230_v30, %v4192_v50  ;;  %v4156_v38 = vadd.f32 %v4155_v13, %v8137_v5  ;;  %v4194_v15 = vpop.f32.mrf.mxu1 }
 0x4d4   : > { %v4269_v12 = vpop.f32.mrf.mxu3 }
 0x4d5   : > { %v4270_v51 = vadd.f32 %v4269_v12, %v4231_v57  ;;  %v4195_v44 = vadd.f32 %v4194_v15, %v4156_v38 }
 0x4d7   : > { %4336 = vst [vmem:[%s7668_s21 + $0x1d8] sm:$0xff] %v4270_v51 }
 0x4da   : > { %v4233_v14 = vpop.f32.mrf.mxu2  ;;  %v4157_v0 = vpop.f32.mrf.mxu0 }
 0x4db   : > { %v4234_v6 = vadd.f32 %v4233_v14, %v4195_v44  ;;  %v4158_v16 = vadd.f32 %v4157_v0, %v8141_v3  ;;  %v4196_v45 = vpop.f32.mrf.mxu1 }
 0x4dc   : > { %v4272_v17 = vpop.f32.mrf.mxu3 }
 0x4dd   : > { %v4273_v42 = vadd.f32 %v4272_v17, %v4234_v6  ;;  %v4197_v5 = vadd.f32 %v4196_v45, %v4158_v16 }
 0x4df   : > { %4342 = vst [vmem:[%s7668_s21 + $0x208] sm:$0xff] %v4273_v42 }
 0x4e2   : > { %v4235_v39 = vpop.f32.mrf.mxu2 }
 0x4e3   : > { %v4236_v46 = vadd.f32 %v4235_v39, %v4197_v5 }
 0x4e4   : > { %v4274_v35 = vpop.f32.mrf.mxu3 }
 0x4e5   : > { %v4275_v9 = vadd.f32 %v4274_v35, %v4236_v46 }
 0x4e7   : > { %4348 = vst [vmem:[%s7668_s21 + $0x238] sm:$0xff] %v4275_v9 }
 0x4e8   : > { %6197 = shalt.err (!%p6194_p10)
}
 0x4e9   : > { %s6257_s23 = smov 768   ;;  %s6258_s0 = smov 48  }
 0x4ea   : > { %5952 = dma.vmem_to_hbm [thread:$0]  (%p6353_p5), %s4364_s9, 9216, %s4366_s25, %s4350_s19, %s6257_s23, %s6257_s23, %s6258_s0  }
 0x4eb PF: > { %p5980_p11 = scmp.ge.s32.totalorder %s6248_s18, 2  ;;  %s4380_s3 = sand.u32 1, %s6236_s15  }
 0x4ec   : > { %s4381_s26 = scalar_lea.sflag [#allocation4], %s4380_s3 }
 0x4ed   : > { %p5969_p12 = pnand %p5980_p11, %p6319_p6 }
 0x4ef   : > { %p5970_p13 = pneg %p5969_p12 }
 0x4f1   : > { %6231 = dma.done.wait (%p5970_p13), %s4381_s26, 9216  }
 0x4f2   : > { %6233 = vsyncadd (%p5970_p13), %s4381_s26, 4294958080  ;;  %p21_p0 = scmp.ge.s32.totalorder %s6339_s10, 6   ;;  %s8427_s15 = smov %s6240_s16 }
 0x4f3   : > { %s8428_s16 = smov %s6244_s17  ;;  %s8429_s17 = smov %s6349_s13 }
 0x4f4   : > { %s8430_s18 = smov %s6339_s10  ;;  %23 = sbr.rel (!%p21_p0) target bundleno = 12 (0xc), region = 102 }
 0x4f9   :  { %4387 = vsyncpa [#allocation3], 1 }
 0x4fa   :  { %4389 = vsyncpa [#allocation3 + $0x1], 1 }
 0x4fb   :  { %4390 = vsyncpa [#allocation6], 1 }
 0x4fc   :  { %4392 = vsyncpa [#allocation6 + $0x1], 1 }
 0x4fd   :  { %4393 = vsyncpa [#allocation9], 1 }
 0x4fe   :  { %4394 = vsyncpa [#allocation4], 1 }
 0x4ff   :  { %4396 = vsyncpa [#allocation4 + $0x1], 1 }

</bundles_post_ra>
